<compile_context>
chip_gen: v7x
topology: tpu7x:2x2x1
jax: 0.10.0
libtpu: 0.0.40
codegen_flags: <defaults>
</compile_context>

<pallas_src>
import jax
import jax.numpy as jnp
from jax import lax
from jax.experimental import pallas as pl
from jax.experimental.pallas import tpu as pltpu

INV_SMOOTHNESS = 1.0     # SoftPolygon(inv_smoothness=1.0) -- deterministic "parameter"
_LANES = 128
_MAX_CHUNK_ROWS = 16     # pixel slab = (<=16, 128); keeps ~10-12 live slab values < vreg file


def _make_raster_loss_kernel(P, W, T, HW, HWp, rows_per_chunk):
    n_chunks = HWp // rows_per_chunk
    inv_w = 1.0 / float(W)

    def kernel(points_ref, gt_ref, stats_ref):
        # points_ref: (BF*T*2*P,) f32 SMEM, flat [bf][t][p][xy] layout
        # gt_ref    : (1, HWp, 128) f32 VMEM, lane-dense gt mask for this bf
        # stats_ref : (1, T, 128)  f32 VMEM, per-iteration stats rows for this bf
        bf = pl.program_id(0)

        # ---- per-(t, edge) scalar precompute (scalar unit; hoisted above pixels) ----
        edges_t = []
        for t in range(T):
            base = (bf * T + t) * (2 * P)
            vx = [points_ref[base + 2 * k] for k in range(P)]
            vy = [points_ref[base + 2 * k + 1] for k in range(P)]
            edges = []
            for k in range(P):
                kn = (k + 1) % P
                x0, y0 = vx[k], vy[k]
                x1, y1 = vx[kn], vy[kn]
                ex = x1 - x0
                ey = y1 - y0
                inv_len2 = 1.0 / (ex * ex + ey * ey + 1e-9)   # scalar, once per edge
                exl = ex * inv_len2
                eyl = ey * inv_len2
                s = jnp.where(ey < 0.0, -1.0, 1.0)            # sign for division-free side test
                edges.append((x0, y0, y1, ex, ey, exl, eyl, ey * s, ex * s))
            edges_t.append(edges)

        zero = jnp.float32(0.0)
        inter = [zero] * T
        psum = [zero] * T
        hinter = [zero] * T
        hsum = [zero] * T

        # ---- pixel-slab loop OUTER, refinement-iteration (t) loop INNER ----
        # TODO(synk): for very large masks (n_chunks >> 16) switch this static unroll
        #             to lax.fori_loop with the 4*T scalar accumulators as carry.
        for c in range(n_chunks):
            r0 = c * rows_per_chunk
            gt_c = gt_ref[0, r0:r0 + rows_per_chunk, :]                 # (rows, 128) f32

            # t-invariant pixel coordinates: exact integer div/mod via float
            # estimate + integer fixup (no per-pixel divide, no rounding error).
            row_i = lax.broadcasted_iota(jnp.int32, (rows_per_chunk, _LANES), 0)
            lane_i = lax.broadcasted_iota(jnp.int32, (rows_per_chunk, _LANES), 1)
            idx = (row_i + r0) * _LANES + lane_i
            y_est = jnp.floor(idx.astype(jnp.float32) * inv_w).astype(jnp.int32)
            rem = idx - y_est * W
            y_i = jnp.where(rem < 0, y_est - 1, jnp.where(rem >= W, y_est + 1, y_est))
            x_i = jnp.where(rem < 0, rem + W, jnp.where(rem >= W, rem - W, rem))
            xs = x_i.astype(jnp.float32) + 0.5                          # pixel centers
            ys = y_i.astype(jnp.float32) + 0.5
            gt_bin = (gt_c > 0.5).astype(jnp.float32)
            need_tail = (r0 + rows_per_chunk) * _LANES > HW
            if need_tail:
                valid = (idx < HW).astype(jnp.float32)

            for t in range(T):
                min_d2 = jnp.full((rows_per_chunk, _LANES), 1e30, jnp.float32)
                inside = jnp.zeros((rows_per_chunk, _LANES), jnp.bool_)
                for (x0, y0, y1, ex, ey, exl, eyl, a, b) in edges_t[t]:
                    px = xs - x0
                    py = ys - y0
                    # point -> segment distance (no per-pixel divide)
                    tt = jnp.clip(px * exl + py * eyl, 0.0, 1.0)
                    dx = px - tt * ex
                    dy = py - tt * ey
                    min_d2 = jnp.minimum(min_d2, dx * dx + dy * dy)
                    # division-free even-odd crossing test (sign folded into a, b)
                    yrange = (y0 > ys) != (y1 > ys)
                    inside = inside ^ (yrange & ((px * a - py * b) < 0.0))

                dist = jnp.sqrt(min_d2)
                signed = jnp.where(inside, dist, -dist)
                # SoftPolygon "mask" mode: logistic via EUP exp + approx reciprocal
                soft = pl.reciprocal(1.0 + jnp.exp(-signed * INV_SMOOTHNESS), approx=True)
                hard = jnp.where(inside, 1.0, 0.0)                      # hard rasterization
                if need_tail:                                           # mask padded tail px
                    soft = soft * valid
                    hard = hard * valid

                inter[t] = inter[t] + jnp.sum(soft * gt_c)              # dice numerator term
                psum[t] = psum[t] + jnp.sum(soft)
                hinter[t] = hinter[t] + jnp.sum(hard * gt_bin)          # IoU intersection
                hsum[t] = hsum[t] + jnp.sum(hard)                       # for union (incl-excl)

        # ---- single lane-dense (T,128) stats tile store, once per bf grid step ----
        lane = lax.broadcasted_iota(jnp.int32, (T, _LANES), 1)
        sub = lax.broadcasted_iota(jnp.int32, (T, _LANES), 0)
        tile = jnp.zeros((T, _LANES), jnp.float32)
        for t in range(T):
            rsel = sub == t
            tile = (tile
                    + jnp.where(rsel & (lane == 0), inter[t], 0.0)
                    + jnp.where(rsel & (lane == 1), psum[t], 0.0)
                    + jnp.where(rsel & (lane == 2), hinter[t], 0.0)
                    + jnp.where(rsel & (lane == 3), hsum[t], 0.0))
        stats_ref[0] = tile

    return kernel


def iter_video_loss(pred_points, gt_masks):
    """pred_points: (N, B, I, F, P, 2) f32; gt_masks: (B, F, H, W) masks in [0,1]."""
    N, B, I, F, P, _ = pred_points.shape
    _, _, H, W = gt_masks.shape
    BF = B * F
    T = N * I                                   # flattened (outer, inner) iterations
    HW = H * W
    HWr = -(-HW // _LANES)
    rows_per_chunk = min(_MAX_CHUNK_ROWS, HWr)
    n_chunks = -(-HWr // rows_per_chunk)
    HWp = n_chunks * rows_per_chunk             # rows padded to a chunk multiple

    # VideoLoss rearranges 'b i f p xy -> i (b f) p xy' per outer n; flatten with a
    # [bf][t][p][xy]-major layout so each sample's T*2P coords are contiguous in SMEM.
    pts = jnp.transpose(pred_points, (1, 3, 0, 2, 4, 5)).reshape(BF * T * 2 * P)
    pts = pts.astype(jnp.float32)

    # Lane-dense packing of gt masks: (BF, H*W) -> (BF, HWp, 128), f32 (exact for any gt).
    gt_flat = gt_masks.reshape(BF, HW).astype(jnp.float32)
    pad = HWp * _LANES - HW
    if pad:
        gt_flat = jnp.pad(gt_flat, ((0, 0), (0, pad)))
    gt_packed = gt_flat.reshape(BF, HWp, _LANES)

    stats = pl.pallas_call(
        _make_raster_loss_kernel(P, W, T, HW, HWp, rows_per_chunk),
        out_shape=jax.ShapeDtypeStruct((BF, T, _LANES), jnp.float32),
        grid=(BF,),
        in_specs=[
            pl.BlockSpec(memory_space=pltpu.MemorySpace.SMEM),           # flat points table
            pl.BlockSpec((1, HWp, _LANES), lambda bf: (bf, 0, 0)),       # gt mask per sample
        ],
        out_specs=pl.BlockSpec((1, T, _LANES), lambda bf: (bf, 0, 0)),   # stats per sample
        compiler_params=pltpu.CompilerParams(
            dimension_semantics=("parallel",)),   # bf axis shards across v7x TensorCores
    )(pts, gt_packed)

    # Polygon-independent gt sums, hoisted out of the kernel (plain XLA reductions).
    gt_bf = gt_masks.reshape(BF, HW).astype(jnp.float32)
    gsum = jnp.sum(gt_bf, axis=1)                                        # (BF,)
    gbsum = jnp.sum((gt_bf > 0.5).astype(jnp.float32), axis=1)           # (BF,)

    # stats[bf, t, 0:4] = (inter, psum, hinter, hsum), t = n*I + i
    stats = jnp.transpose(stats, (1, 0, 2)).reshape(N, I, BF, _LANES)
    inter, psum = stats[..., 0], stats[..., 1]
    hinter, hsum = stats[..., 2], stats[..., 3]

    # RasLoss (dice stand-in) per sample -> mean over (b f) -> mean over inner iterations I
    dice = 1.0 - (2.0 * inter + 1.0) / (psum + gsum + 1.0)               # (N, I, BF)
    loss_per_iter = dice.mean(axis=-1)                                   # (N, I)
    total_loss_per_n = loss_per_iter.sum(axis=-1) / I                    # VideoLoss total_loss
    avg_loss = total_loss_per_n.sum() / N                                # IterVideoLoss avg_loss

    # Hard-mask IoU of the last inner iteration (union via inclusion-exclusion).
    hunion = hsum[N - 1, I - 1] + gbsum - hinter[N - 1, I - 1]
    iou_per_sample = hinter[N - 1, I - 1] / jnp.maximum(hunion, 1e-6)
    last_iou = iou_per_sample.mean()
    return avg_loss, last_iou


if __name__ == "__main__":
    key = jax.random.PRNGKey(0)
    N, B, I, F, P, H, W = 2, 2, 2, 3, 8, 16, 16

    # Predicted polygons: circle of radius 5 around the image center + noise.
    ang = jnp.linspace(0.0, 2.0 * jnp.pi, P, endpoint=False)
    base = jnp.stack([W / 2.0 + 5.0 * jnp.cos(ang),
                      H / 2.0 + 5.0 * jnp.sin(ang)], axis=-1)            # (P, 2)
    noise = 0.5 * jax.random.normal(key, (N, B, I, F, P, 2), dtype=jnp.float32)
    pred_points = base[None, None, None, None] + noise                   # (N,B,I,F,P,2)

    # GT masks: a disc of radius 5 around the image center.
    yy, xx = jnp.meshgrid(jnp.arange(H, dtype=jnp.float32),
                          jnp.arange(W, dtype=jnp.float32), indexing="ij")
    disc = (((xx - W / 2.0) ** 2 + (yy - H / 2.0) ** 2) <= 25.0).astype(jnp.float32)
    gt_masks = jnp.broadcast_to(disc, (B, F, H, W))

    avg_loss, last_iou = jax.jit(iter_video_loss)(pred_points, gt_masks)
    jax.block_until_ready((avg_loss, last_iou))
    assert avg_loss.shape == () and last_iou.shape == ()
    assert bool(jnp.isfinite(avg_loss)) and bool(jnp.isfinite(last_iou))
    print("KERNEL_OK")
</pallas_src>

<mosaic_0001>
module attributes {stable_mosaic.version = 11 : i64} {
  func.func @kernel(%arg0: i32, %arg1: memref<384xf32, #tpu.memory_space<smem>>, %arg2: memref<1x2x128xf32, #tpu.memory_space<vmem>>, %arg3: memref<1x4x128xf32, #tpu.memory_space<vmem>>) attributes {dimension_semantics = [#tpu.dimension_semantics<parallel>], iteration_bounds = array<i64: 6>, scalar_prefetch = 0 : i64, scratch_operands = 0 : i64, tpu.core_type = #tpu.core_type<tc>, window_params = [{transform_indices = @transform_0, window_bounds = array<i64: 384>}, {transform_indices = @transform_1, window_bounds = array<i64: 1, 2, 128>}, {transform_indices = @transform_2, window_bounds = array<i64: 1, 4, 128>}]} {
    %c4_i32 = arith.constant 4 : i32
    %0 = arith.muli %arg0, %c4_i32 : i32
    %c0_i32 = arith.constant 0 : i32
    %1 = arith.addi %0, %c0_i32 : i32
    %c16_i32 = arith.constant 16 : i32
    %2 = arith.muli %1, %c16_i32 : i32
    %c0_i32_0 = arith.constant 0 : i32
    %3 = arith.addi %2, %c0_i32_0 : i32
    %4 = arith.index_cast %3 : i32 to index
    %5 = memref.load %arg1[%4] : memref<384xf32, #tpu.memory_space<smem>>
    %c2_i32 = arith.constant 2 : i32
    %6 = arith.addi %2, %c2_i32 : i32
    %7 = arith.index_cast %6 : i32 to index
    %8 = memref.load %arg1[%7] : memref<384xf32, #tpu.memory_space<smem>>
    %c4_i32_1 = arith.constant 4 : i32
    %9 = arith.addi %2, %c4_i32_1 : i32
    %10 = arith.index_cast %9 : i32 to index
    %11 = memref.load %arg1[%10] : memref<384xf32, #tpu.memory_space<smem>>
    %c6_i32 = arith.constant 6 : i32
    %12 = arith.addi %2, %c6_i32 : i32
    %13 = arith.index_cast %12 : i32 to index
    %14 = memref.load %arg1[%13] : memref<384xf32, #tpu.memory_space<smem>>
    %c8_i32 = arith.constant 8 : i32
    %15 = arith.addi %2, %c8_i32 : i32
    %16 = arith.index_cast %15 : i32 to index
    %17 = memref.load %arg1[%16] : memref<384xf32, #tpu.memory_space<smem>>
    %c10_i32 = arith.constant 10 : i32
    %18 = arith.addi %2, %c10_i32 : i32
    %19 = arith.index_cast %18 : i32 to index
    %20 = memref.load %arg1[%19] : memref<384xf32, #tpu.memory_space<smem>>
    %c12_i32 = arith.constant 12 : i32
    %21 = arith.addi %2, %c12_i32 : i32
    %22 = arith.index_cast %21 : i32 to index
    %23 = memref.load %arg1[%22] : memref<384xf32, #tpu.memory_space<smem>>
    %c14_i32 = arith.constant 14 : i32
    %24 = arith.addi %2, %c14_i32 : i32
    %25 = arith.index_cast %24 : i32 to index
    %26 = memref.load %arg1[%25] : memref<384xf32, #tpu.memory_space<smem>>
    %c0_i32_2 = arith.constant 0 : i32
    %27 = arith.addi %2, %c0_i32_2 : i32
    %c1_i32 = arith.constant 1 : i32
    %28 = arith.addi %27, %c1_i32 : i32
    %29 = arith.index_cast %28 : i32 to index
    %30 = memref.load %arg1[%29] : memref<384xf32, #tpu.memory_space<smem>>
    %c2_i32_3 = arith.constant 2 : i32
    %31 = arith.addi %2, %c2_i32_3 : i32
    %c1_i32_4 = arith.constant 1 : i32
    %32 = arith.addi %31, %c1_i32_4 : i32
    %33 = arith.index_cast %32 : i32 to index
    %34 = memref.load %arg1[%33] : memref<384xf32, #tpu.memory_space<smem>>
    %c4_i32_5 = arith.constant 4 : i32
    %35 = arith.addi %2, %c4_i32_5 : i32
    %c1_i32_6 = arith.constant 1 : i32
    %36 = arith.addi %35, %c1_i32_6 : i32
    %37 = arith.index_cast %36 : i32 to index
    %38 = memref.load %arg1[%37] : memref<384xf32, #tpu.memory_space<smem>>
    %c6_i32_7 = arith.constant 6 : i32
    %39 = arith.addi %2, %c6_i32_7 : i32
    %c1_i32_8 = arith.constant 1 : i32
    %40 = arith.addi %39, %c1_i32_8 : i32
    %41 = arith.index_cast %40 : i32 to index
    %42 = memref.load %arg1[%41] : memref<384xf32, #tpu.memory_space<smem>>
    %c8_i32_9 = arith.constant 8 : i32
    %43 = arith.addi %2, %c8_i32_9 : i32
    %c1_i32_10 = arith.constant 1 : i32
    %44 = arith.addi %43, %c1_i32_10 : i32
    %45 = arith.index_cast %44 : i32 to index
    %46 = memref.load %arg1[%45] : memref<384xf32, #tpu.memory_space<smem>>
    %c10_i32_11 = arith.constant 10 : i32
    %47 = arith.addi %2, %c10_i32_11 : i32
    %c1_i32_12 = arith.constant 1 : i32
    %48 = arith.addi %47, %c1_i32_12 : i32
    %49 = arith.index_cast %48 : i32 to index
    %50 = memref.load %arg1[%49] : memref<384xf32, #tpu.memory_space<smem>>
    %c12_i32_13 = arith.constant 12 : i32
    %51 = arith.addi %2, %c12_i32_13 : i32
    %c1_i32_14 = arith.constant 1 : i32
    %52 = arith.addi %51, %c1_i32_14 : i32
    %53 = arith.index_cast %52 : i32 to index
    %54 = memref.load %arg1[%53] : memref<384xf32, #tpu.memory_space<smem>>
    %c14_i32_15 = arith.constant 14 : i32
    %55 = arith.addi %2, %c14_i32_15 : i32
    %c1_i32_16 = arith.constant 1 : i32
    %56 = arith.addi %55, %c1_i32_16 : i32
    %57 = arith.index_cast %56 : i32 to index
    %58 = memref.load %arg1[%57] : memref<384xf32, #tpu.memory_space<smem>>
    %59 = arith.subf %8, %5 : f32
    %60 = arith.subf %34, %30 : f32
    %61 = arith.mulf %59, %59 : f32
    %62 = arith.mulf %60, %60 : f32
    %63 = arith.addf %61, %62 : f32
    %cst = arith.constant 9.99999971E-10 : f32
    %64 = arith.addf %63, %cst : f32
    %cst_17 = arith.constant 1.000000e+00 : f32
    %65 = arith.divf %cst_17, %64 : f32
    %66 = arith.mulf %59, %65 : f32
    %67 = arith.mulf %60, %65 : f32
    %cst_18 = arith.constant 0.000000e+00 : f32
    %68 = arith.cmpf olt, %60, %cst_18 : f32
    %cst_19 = arith.constant -1.000000e+00 : f32
    %cst_20 = arith.constant 1.000000e+00 : f32
    %69 = arith.select %68, %cst_19, %cst_20 : f32
    %70 = arith.mulf %60, %69 : f32
    %71 = arith.mulf %59, %69 : f32
    %72 = arith.subf %11, %8 : f32
    %73 = arith.subf %38, %34 : f32
    %74 = arith.mulf %72, %72 : f32
    %75 = arith.mulf %73, %73 : f32
    %76 = arith.addf %74, %75 : f32
    %cst_21 = arith.constant 9.99999971E-10 : f32
    %77 = arith.addf %76, %cst_21 : f32
    %cst_22 = arith.constant 1.000000e+00 : f32
    %78 = arith.divf %cst_22, %77 : f32
    %79 = arith.mulf %72, %78 : f32
    %80 = arith.mulf %73, %78 : f32
    %cst_23 = arith.constant 0.000000e+00 : f32
    %81 = arith.cmpf olt, %73, %cst_23 : f32
    %cst_24 = arith.constant -1.000000e+00 : f32
    %cst_25 = arith.constant 1.000000e+00 : f32
    %82 = arith.select %81, %cst_24, %cst_25 : f32
    %83 = arith.mulf %73, %82 : f32
    %84 = arith.mulf %72, %82 : f32
    %85 = arith.subf %14, %11 : f32
    %86 = arith.subf %42, %38 : f32
    %87 = arith.mulf %85, %85 : f32
    %88 = arith.mulf %86, %86 : f32
    %89 = arith.addf %87, %88 : f32
    %cst_26 = arith.constant 9.99999971E-10 : f32
    %90 = arith.addf %89, %cst_26 : f32
    %cst_27 = arith.constant 1.000000e+00 : f32
    %91 = arith.divf %cst_27, %90 : f32
    %92 = arith.mulf %85, %91 : f32
    %93 = arith.mulf %86, %91 : f32
    %cst_28 = arith.constant 0.000000e+00 : f32
    %94 = arith.cmpf olt, %86, %cst_28 : f32
    %cst_29 = arith.constant -1.000000e+00 : f32
    %cst_30 = arith.constant 1.000000e+00 : f32
    %95 = arith.select %94, %cst_29, %cst_30 : f32
    %96 = arith.mulf %86, %95 : f32
    %97 = arith.mulf %85, %95 : f32
    %98 = arith.subf %17, %14 : f32
    %99 = arith.subf %46, %42 : f32
    %100 = arith.mulf %98, %98 : f32
    %101 = arith.mulf %99, %99 : f32
    %102 = arith.addf %100, %101 : f32
    %cst_31 = arith.constant 9.99999971E-10 : f32
    %103 = arith.addf %102, %cst_31 : f32
    %cst_32 = arith.constant 1.000000e+00 : f32
    %104 = arith.divf %cst_32, %103 : f32
    %105 = arith.mulf %98, %104 : f32
    %106 = arith.mulf %99, %104 : f32
    %cst_33 = arith.constant 0.000000e+00 : f32
    %107 = arith.cmpf olt, %99, %cst_33 : f32
    %cst_34 = arith.constant -1.000000e+00 : f32
    %cst_35 = arith.constant 1.000000e+00 : f32
    %108 = arith.select %107, %cst_34, %cst_35 : f32
    %109 = arith.mulf %99, %108 : f32
    %110 = arith.mulf %98, %108 : f32
    %111 = arith.subf %20, %17 : f32
    %112 = arith.subf %50, %46 : f32
    %113 = arith.mulf %111, %111 : f32
    %114 = arith.mulf %112, %112 : f32
    %115 = arith.addf %113, %114 : f32
    %cst_36 = arith.constant 9.99999971E-10 : f32
    %116 = arith.addf %115, %cst_36 : f32
    %cst_37 = arith.constant 1.000000e+00 : f32
    %117 = arith.divf %cst_37, %116 : f32
    %118 = arith.mulf %111, %117 : f32
    %119 = arith.mulf %112, %117 : f32
    %cst_38 = arith.constant 0.000000e+00 : f32
    %120 = arith.cmpf olt, %112, %cst_38 : f32
    %cst_39 = arith.constant -1.000000e+00 : f32
    %cst_40 = arith.constant 1.000000e+00 : f32
    %121 = arith.select %120, %cst_39, %cst_40 : f32
    %122 = arith.mulf %112, %121 : f32
    %123 = arith.mulf %111, %121 : f32
    %124 = arith.subf %23, %20 : f32
    %125 = arith.subf %54, %50 : f32
    %126 = arith.mulf %124, %124 : f32
    %127 = arith.mulf %125, %125 : f32
    %128 = arith.addf %126, %127 : f32
    %cst_41 = arith.constant 9.99999971E-10 : f32
    %129 = arith.addf %128, %cst_41 : f32
    %cst_42 = arith.constant 1.000000e+00 : f32
    %130 = arith.divf %cst_42, %129 : f32
    %131 = arith.mulf %124, %130 : f32
    %132 = arith.mulf %125, %130 : f32
    %cst_43 = arith.constant 0.000000e+00 : f32
    %133 = arith.cmpf olt, %125, %cst_43 : f32
    %cst_44 = arith.constant -1.000000e+00 : f32
    %cst_45 = arith.constant 1.000000e+00 : f32
    %134 = arith.select %133, %cst_44, %cst_45 : f32
    %135 = arith.mulf %125, %134 : f32
    %136 = arith.mulf %124, %134 : f32
    %137 = arith.subf %26, %23 : f32
    %138 = arith.subf %58, %54 : f32
    %139 = arith.mulf %137, %137 : f32
    %140 = arith.mulf %138, %138 : f32
    %141 = arith.addf %139, %140 : f32
    %cst_46 = arith.constant 9.99999971E-10 : f32
    %142 = arith.addf %141, %cst_46 : f32
    %cst_47 = arith.constant 1.000000e+00 : f32
    %143 = arith.divf %cst_47, %142 : f32
    %144 = arith.mulf %137, %143 : f32
    %145 = arith.mulf %138, %143 : f32
    %cst_48 = arith.constant 0.000000e+00 : f32
    %146 = arith.cmpf olt, %138, %cst_48 : f32
    %cst_49 = arith.constant -1.000000e+00 : f32
    %cst_50 = arith.constant 1.000000e+00 : f32
    %147 = arith.select %146, %cst_49, %cst_50 : f32
    %148 = arith.mulf %138, %147 : f32
    %149 = arith.mulf %137, %147 : f32
    %150 = arith.subf %5, %26 : f32
    %151 = arith.subf %30, %58 : f32
    %152 = arith.mulf %150, %150 : f32
    %153 = arith.mulf %151, %151 : f32
    %154 = arith.addf %152, %153 : f32
    %cst_51 = arith.constant 9.99999971E-10 : f32
    %155 = arith.addf %154, %cst_51 : f32
    %cst_52 = arith.constant 1.000000e+00 : f32
    %156 = arith.divf %cst_52, %155 : f32
    %157 = arith.mulf %150, %156 : f32
    %158 = arith.mulf %151, %156 : f32
    %cst_53 = arith.constant 0.000000e+00 : f32
    %159 = arith.cmpf olt, %151, %cst_53 : f32
    %cst_54 = arith.constant -1.000000e+00 : f32
    %cst_55 = arith.constant 1.000000e+00 : f32
    %160 = arith.select %159, %cst_54, %cst_55 : f32
    %161 = arith.mulf %151, %160 : f32
    %162 = arith.mulf %150, %160 : f32
    %c4_i32_56 = arith.constant 4 : i32
    %163 = arith.muli %arg0, %c4_i32_56 : i32
    %c1_i32_57 = arith.constant 1 : i32
    %164 = arith.addi %163, %c1_i32_57 : i32
    %c16_i32_58 = arith.constant 16 : i32
    %165 = arith.muli %164, %c16_i32_58 : i32
    %c0_i32_59 = arith.constant 0 : i32
    %166 = arith.addi %165, %c0_i32_59 : i32
    %167 = arith.index_cast %166 : i32 to index
    %168 = memref.load %arg1[%167] : memref<384xf32, #tpu.memory_space<smem>>
    %c2_i32_60 = arith.constant 2 : i32
    %169 = arith.addi %165, %c2_i32_60 : i32
    %170 = arith.index_cast %169 : i32 to index
    %171 = memref.load %arg1[%170] : memref<384xf32, #tpu.memory_space<smem>>
    %c4_i32_61 = arith.constant 4 : i32
    %172 = arith.addi %165, %c4_i32_61 : i32
    %173 = arith.index_cast %172 : i32 to index
    %174 = memref.load %arg1[%173] : memref<384xf32, #tpu.memory_space<smem>>
    %c6_i32_62 = arith.constant 6 : i32
    %175 = arith.addi %165, %c6_i32_62 : i32
    %176 = arith.index_cast %175 : i32 to index
    %177 = memref.load %arg1[%176] : memref<384xf32, #tpu.memory_space<smem>>
    %c8_i32_63 = arith.constant 8 : i32
    %178 = arith.addi %165, %c8_i32_63 : i32
    %179 = arith.index_cast %178 : i32 to index
    %180 = memref.load %arg1[%179] : memref<384xf32, #tpu.memory_space<smem>>
    %c10_i32_64 = arith.constant 10 : i32
    %181 = arith.addi %165, %c10_i32_64 : i32
    %182 = arith.index_cast %181 : i32 to index
    %183 = memref.load %arg1[%182] : memref<384xf32, #tpu.memory_space<smem>>
    %c12_i32_65 = arith.constant 12 : i32
    %184 = arith.addi %165, %c12_i32_65 : i32
    %185 = arith.index_cast %184 : i32 to index
    %186 = memref.load %arg1[%185] : memref<384xf32, #tpu.memory_space<smem>>
    %c14_i32_66 = arith.constant 14 : i32
    %187 = arith.addi %165, %c14_i32_66 : i32
    %188 = arith.index_cast %187 : i32 to index
    %189 = memref.load %arg1[%188] : memref<384xf32, #tpu.memory_space<smem>>
    %c0_i32_67 = arith.constant 0 : i32
    %190 = arith.addi %165, %c0_i32_67 : i32
    %c1_i32_68 = arith.constant 1 : i32
    %191 = arith.addi %190, %c1_i32_68 : i32
    %192 = arith.index_cast %191 : i32 to index
    %193 = memref.load %arg1[%192] : memref<384xf32, #tpu.memory_space<smem>>
    %c2_i32_69 = arith.constant 2 : i32
    %194 = arith.addi %165, %c2_i32_69 : i32
    %c1_i32_70 = arith.constant 1 : i32
    %195 = arith.addi %194, %c1_i32_70 : i32
    %196 = arith.index_cast %195 : i32 to index
    %197 = memref.load %arg1[%196] : memref<384xf32, #tpu.memory_space<smem>>
    %c4_i32_71 = arith.constant 4 : i32
    %198 = arith.addi %165, %c4_i32_71 : i32
    %c1_i32_72 = arith.constant 1 : i32
    %199 = arith.addi %198, %c1_i32_72 : i32
    %200 = arith.index_cast %199 : i32 to index
    %201 = memref.load %arg1[%200] : memref<384xf32, #tpu.memory_space<smem>>
    %c6_i32_73 = arith.constant 6 : i32
    %202 = arith.addi %165, %c6_i32_73 : i32
    %c1_i32_74 = arith.constant 1 : i32
    %203 = arith.addi %202, %c1_i32_74 : i32
    %204 = arith.index_cast %203 : i32 to index
    %205 = memref.load %arg1[%204] : memref<384xf32, #tpu.memory_space<smem>>
    %c8_i32_75 = arith.constant 8 : i32
    %206 = arith.addi %165, %c8_i32_75 : i32
    %c1_i32_76 = arith.constant 1 : i32
    %207 = arith.addi %206, %c1_i32_76 : i32
    %208 = arith.index_cast %207 : i32 to index
    %209 = memref.load %arg1[%208] : memref<384xf32, #tpu.memory_space<smem>>
    %c10_i32_77 = arith.constant 10 : i32
    %210 = arith.addi %165, %c10_i32_77 : i32
    %c1_i32_78 = arith.constant 1 : i32
    %211 = arith.addi %210, %c1_i32_78 : i32
    %212 = arith.index_cast %211 : i32 to index
    %213 = memref.load %arg1[%212] : memref<384xf32, #tpu.memory_space<smem>>
    %c12_i32_79 = arith.constant 12 : i32
    %214 = arith.addi %165, %c12_i32_79 : i32
    %c1_i32_80 = arith.constant 1 : i32
    %215 = arith.addi %214, %c1_i32_80 : i32
    %216 = arith.index_cast %215 : i32 to index
    %217 = memref.load %arg1[%216] : memref<384xf32, #tpu.memory_space<smem>>
    %c14_i32_81 = arith.constant 14 : i32
    %218 = arith.addi %165, %c14_i32_81 : i32
    %c1_i32_82 = arith.constant 1 : i32
    %219 = arith.addi %218, %c1_i32_82 : i32
    %220 = arith.index_cast %219 : i32 to index
    %221 = memref.load %arg1[%220] : memref<384xf32, #tpu.memory_space<smem>>
    %222 = arith.subf %171, %168 : f32
    %223 = arith.subf %197, %193 : f32
    %224 = arith.mulf %222, %222 : f32
    %225 = arith.mulf %223, %223 : f32
    %226 = arith.addf %224, %225 : f32
    %cst_83 = arith.constant 9.99999971E-10 : f32
    %227 = arith.addf %226, %cst_83 : f32
    %cst_84 = arith.constant 1.000000e+00 : f32
    %228 = arith.divf %cst_84, %227 : f32
    %229 = arith.mulf %222, %228 : f32
    %230 = arith.mulf %223, %228 : f32
    %cst_85 = arith.constant 0.000000e+00 : f32
    %231 = arith.cmpf olt, %223, %cst_85 : f32
    %cst_86 = arith.constant -1.000000e+00 : f32
    %cst_87 = arith.constant 1.000000e+00 : f32
    %232 = arith.select %231, %cst_86, %cst_87 : f32
    %233 = arith.mulf %223, %232 : f32
    %234 = arith.mulf %222, %232 : f32
    %235 = arith.subf %174, %171 : f32
    %236 = arith.subf %201, %197 : f32
    %237 = arith.mulf %235, %235 : f32
    %238 = arith.mulf %236, %236 : f32
    %239 = arith.addf %237, %238 : f32
    %cst_88 = arith.constant 9.99999971E-10 : f32
    %240 = arith.addf %239, %cst_88 : f32
    %cst_89 = arith.constant 1.000000e+00 : f32
    %241 = arith.divf %cst_89, %240 : f32
    %242 = arith.mulf %235, %241 : f32
    %243 = arith.mulf %236, %241 : f32
    %cst_90 = arith.constant 0.000000e+00 : f32
    %244 = arith.cmpf olt, %236, %cst_90 : f32
    %cst_91 = arith.constant -1.000000e+00 : f32
    %cst_92 = arith.constant 1.000000e+00 : f32
    %245 = arith.select %244, %cst_91, %cst_92 : f32
    %246 = arith.mulf %236, %245 : f32
    %247 = arith.mulf %235, %245 : f32
    %248 = arith.subf %177, %174 : f32
    %249 = arith.subf %205, %201 : f32
    %250 = arith.mulf %248, %248 : f32
    %251 = arith.mulf %249, %249 : f32
    %252 = arith.addf %250, %251 : f32
    %cst_93 = arith.constant 9.99999971E-10 : f32
    %253 = arith.addf %252, %cst_93 : f32
    %cst_94 = arith.constant 1.000000e+00 : f32
    %254 = arith.divf %cst_94, %253 : f32
    %255 = arith.mulf %248, %254 : f32
    %256 = arith.mulf %249, %254 : f32
    %cst_95 = arith.constant 0.000000e+00 : f32
    %257 = arith.cmpf olt, %249, %cst_95 : f32
    %cst_96 = arith.constant -1.000000e+00 : f32
    %cst_97 = arith.constant 1.000000e+00 : f32
    %258 = arith.select %257, %cst_96, %cst_97 : f32
    %259 = arith.mulf %249, %258 : f32
    %260 = arith.mulf %248, %258 : f32
    %261 = arith.subf %180, %177 : f32
    %262 = arith.subf %209, %205 : f32
    %263 = arith.mulf %261, %261 : f32
    %264 = arith.mulf %262, %262 : f32
    %265 = arith.addf %263, %264 : f32
    %cst_98 = arith.constant 9.99999971E-10 : f32
    %266 = arith.addf %265, %cst_98 : f32
    %cst_99 = arith.constant 1.000000e+00 : f32
    %267 = arith.divf %cst_99, %266 : f32
    %268 = arith.mulf %261, %267 : f32
    %269 = arith.mulf %262, %267 : f32
    %cst_100 = arith.constant 0.000000e+00 : f32
    %270 = arith.cmpf olt, %262, %cst_100 : f32
    %cst_101 = arith.constant -1.000000e+00 : f32
    %cst_102 = arith.constant 1.000000e+00 : f32
    %271 = arith.select %270, %cst_101, %cst_102 : f32
    %272 = arith.mulf %262, %271 : f32
    %273 = arith.mulf %261, %271 : f32
    %274 = arith.subf %183, %180 : f32
    %275 = arith.subf %213, %209 : f32
    %276 = arith.mulf %274, %274 : f32
    %277 = arith.mulf %275, %275 : f32
    %278 = arith.addf %276, %277 : f32
    %cst_103 = arith.constant 9.99999971E-10 : f32
    %279 = arith.addf %278, %cst_103 : f32
    %cst_104 = arith.constant 1.000000e+00 : f32
    %280 = arith.divf %cst_104, %279 : f32
    %281 = arith.mulf %274, %280 : f32
    %282 = arith.mulf %275, %280 : f32
    %cst_105 = arith.constant 0.000000e+00 : f32
    %283 = arith.cmpf olt, %275, %cst_105 : f32
    %cst_106 = arith.constant -1.000000e+00 : f32
    %cst_107 = arith.constant 1.000000e+00 : f32
    %284 = arith.select %283, %cst_106, %cst_107 : f32
    %285 = arith.mulf %275, %284 : f32
    %286 = arith.mulf %274, %284 : f32
    %287 = arith.subf %186, %183 : f32
    %288 = arith.subf %217, %213 : f32
    %289 = arith.mulf %287, %287 : f32
    %290 = arith.mulf %288, %288 : f32
    %291 = arith.addf %289, %290 : f32
    %cst_108 = arith.constant 9.99999971E-10 : f32
    %292 = arith.addf %291, %cst_108 : f32
    %cst_109 = arith.constant 1.000000e+00 : f32
    %293 = arith.divf %cst_109, %292 : f32
    %294 = arith.mulf %287, %293 : f32
    %295 = arith.mulf %288, %293 : f32
    %cst_110 = arith.constant 0.000000e+00 : f32
    %296 = arith.cmpf olt, %288, %cst_110 : f32
    %cst_111 = arith.constant -1.000000e+00 : f32
    %cst_112 = arith.constant 1.000000e+00 : f32
    %297 = arith.select %296, %cst_111, %cst_112 : f32
    %298 = arith.mulf %288, %297 : f32
    %299 = arith.mulf %287, %297 : f32
    %300 = arith.subf %189, %186 : f32
    %301 = arith.subf %221, %217 : f32
    %302 = arith.mulf %300, %300 : f32
    %303 = arith.mulf %301, %301 : f32
    %304 = arith.addf %302, %303 : f32
    %cst_113 = arith.constant 9.99999971E-10 : f32
    %305 = arith.addf %304, %cst_113 : f32
    %cst_114 = arith.constant 1.000000e+00 : f32
    %306 = arith.divf %cst_114, %305 : f32
    %307 = arith.mulf %300, %306 : f32
    %308 = arith.mulf %301, %306 : f32
    %cst_115 = arith.constant 0.000000e+00 : f32
    %309 = arith.cmpf olt, %301, %cst_115 : f32
    %cst_116 = arith.constant -1.000000e+00 : f32
    %cst_117 = arith.constant 1.000000e+00 : f32
    %310 = arith.select %309, %cst_116, %cst_117 : f32
    %311 = arith.mulf %301, %310 : f32
    %312 = arith.mulf %300, %310 : f32
    %313 = arith.subf %168, %189 : f32
    %314 = arith.subf %193, %221 : f32
    %315 = arith.mulf %313, %313 : f32
    %316 = arith.mulf %314, %314 : f32
    %317 = arith.addf %315, %316 : f32
    %cst_118 = arith.constant 9.99999971E-10 : f32
    %318 = arith.addf %317, %cst_118 : f32
    %cst_119 = arith.constant 1.000000e+00 : f32
    %319 = arith.divf %cst_119, %318 : f32
    %320 = arith.mulf %313, %319 : f32
    %321 = arith.mulf %314, %319 : f32
    %cst_120 = arith.constant 0.000000e+00 : f32
    %322 = arith.cmpf olt, %314, %cst_120 : f32
    %cst_121 = arith.constant -1.000000e+00 : f32
    %cst_122 = arith.constant 1.000000e+00 : f32
    %323 = arith.select %322, %cst_121, %cst_122 : f32
    %324 = arith.mulf %314, %323 : f32
    %325 = arith.mulf %313, %323 : f32
    %c4_i32_123 = arith.constant 4 : i32
    %326 = arith.muli %arg0, %c4_i32_123 : i32
    %c2_i32_124 = arith.constant 2 : i32
    %327 = arith.addi %326, %c2_i32_124 : i32
    %c16_i32_125 = arith.constant 16 : i32
    %328 = arith.muli %327, %c16_i32_125 : i32
    %c0_i32_126 = arith.constant 0 : i32
    %329 = arith.addi %328, %c0_i32_126 : i32
    %330 = arith.index_cast %329 : i32 to index
    %331 = memref.load %arg1[%330] : memref<384xf32, #tpu.memory_space<smem>>
    %c2_i32_127 = arith.constant 2 : i32
    %332 = arith.addi %328, %c2_i32_127 : i32
    %333 = arith.index_cast %332 : i32 to index
    %334 = memref.load %arg1[%333] : memref<384xf32, #tpu.memory_space<smem>>
    %c4_i32_128 = arith.constant 4 : i32
    %335 = arith.addi %328, %c4_i32_128 : i32
    %336 = arith.index_cast %335 : i32 to index
    %337 = memref.load %arg1[%336] : memref<384xf32, #tpu.memory_space<smem>>
    %c6_i32_129 = arith.constant 6 : i32
    %338 = arith.addi %328, %c6_i32_129 : i32
    %339 = arith.index_cast %338 : i32 to index
    %340 = memref.load %arg1[%339] : memref<384xf32, #tpu.memory_space<smem>>
    %c8_i32_130 = arith.constant 8 : i32
    %341 = arith.addi %328, %c8_i32_130 : i32
    %342 = arith.index_cast %341 : i32 to index
    %343 = memref.load %arg1[%342] : memref<384xf32, #tpu.memory_space<smem>>
    %c10_i32_131 = arith.constant 10 : i32
    %344 = arith.addi %328, %c10_i32_131 : i32
    %345 = arith.index_cast %344 : i32 to index
    %346 = memref.load %arg1[%345] : memref<384xf32, #tpu.memory_space<smem>>
    %c12_i32_132 = arith.constant 12 : i32
    %347 = arith.addi %328, %c12_i32_132 : i32
    %348 = arith.index_cast %347 : i32 to index
    %349 = memref.load %arg1[%348] : memref<384xf32, #tpu.memory_space<smem>>
    %c14_i32_133 = arith.constant 14 : i32
    %350 = arith.addi %328, %c14_i32_133 : i32
    %351 = arith.index_cast %350 : i32 to index
    %352 = memref.load %arg1[%351] : memref<384xf32, #tpu.memory_space<smem>>
    %c0_i32_134 = arith.constant 0 : i32
    %353 = arith.addi %328, %c0_i32_134 : i32
    %c1_i32_135 = arith.constant 1 : i32
    %354 = arith.addi %353, %c1_i32_135 : i32
    %355 = arith.index_cast %354 : i32 to index
    %356 = memref.load %arg1[%355] : memref<384xf32, #tpu.memory_space<smem>>
    %c2_i32_136 = arith.constant 2 : i32
    %357 = arith.addi %328, %c2_i32_136 : i32
    %c1_i32_137 = arith.constant 1 : i32
    %358 = arith.addi %357, %c1_i32_137 : i32
    %359 = arith.index_cast %358 : i32 to index
    %360 = memref.load %arg1[%359] : memref<384xf32, #tpu.memory_space<smem>>
    %c4_i32_138 = arith.constant 4 : i32
    %361 = arith.addi %328, %c4_i32_138 : i32
    %c1_i32_139 = arith.constant 1 : i32
    %362 = arith.addi %361, %c1_i32_139 : i32
    %363 = arith.index_cast %362 : i32 to index
    %364 = memref.load %arg1[%363] : memref<384xf32, #tpu.memory_space<smem>>
    %c6_i32_140 = arith.constant 6 : i32
    %365 = arith.addi %328, %c6_i32_140 : i32
    %c1_i32_141 = arith.constant 1 : i32
    %366 = arith.addi %365, %c1_i32_141 : i32
    %367 = arith.index_cast %366 : i32 to index
    %368 = memref.load %arg1[%367] : memref<384xf32, #tpu.memory_space<smem>>
    %c8_i32_142 = arith.constant 8 : i32
    %369 = arith.addi %328, %c8_i32_142 : i32
    %c1_i32_143 = arith.constant 1 : i32
    %370 = arith.addi %369, %c1_i32_143 : i32
    %371 = arith.index_cast %370 : i32 to index
    %372 = memref.load %arg1[%371] : memref<384xf32, #tpu.memory_space<smem>>
    %c10_i32_144 = arith.constant 10 : i32
    %373 = arith.addi %328, %c10_i32_144 : i32
    %c1_i32_145 = arith.constant 1 : i32
    %374 = arith.addi %373, %c1_i32_145 : i32
    %375 = arith.index_cast %374 : i32 to index
    %376 = memref.load %arg1[%375] : memref<384xf32, #tpu.memory_space<smem>>
    %c12_i32_146 = arith.constant 12 : i32
    %377 = arith.addi %328, %c12_i32_146 : i32
    %c1_i32_147 = arith.constant 1 : i32
    %378 = arith.addi %377, %c1_i32_147 : i32
    %379 = arith.index_cast %378 : i32 to index
    %380 = memref.load %arg1[%379] : memref<384xf32, #tpu.memory_space<smem>>
    %c14_i32_148 = arith.constant 14 : i32
    %381 = arith.addi %328, %c14_i32_148 : i32
    %c1_i32_149 = arith.constant 1 : i32
    %382 = arith.addi %381, %c1_i32_149 : i32
    %383 = arith.index_cast %382 : i32 to index
    %384 = memref.load %arg1[%383] : memref<384xf32, #tpu.memory_space<smem>>
    %385 = arith.subf %334, %331 : f32
    %386 = arith.subf %360, %356 : f32
    %387 = arith.mulf %385, %385 : f32
    %388 = arith.mulf %386, %386 : f32
    %389 = arith.addf %387, %388 : f32
    %cst_150 = arith.constant 9.99999971E-10 : f32
    %390 = arith.addf %389, %cst_150 : f32
    %cst_151 = arith.constant 1.000000e+00 : f32
    %391 = arith.divf %cst_151, %390 : f32
    %392 = arith.mulf %385, %391 : f32
    %393 = arith.mulf %386, %391 : f32
    %cst_152 = arith.constant 0.000000e+00 : f32
    %394 = arith.cmpf olt, %386, %cst_152 : f32
    %cst_153 = arith.constant -1.000000e+00 : f32
    %cst_154 = arith.constant 1.000000e+00 : f32
    %395 = arith.select %394, %cst_153, %cst_154 : f32
    %396 = arith.mulf %386, %395 : f32
    %397 = arith.mulf %385, %395 : f32
    %398 = arith.subf %337, %334 : f32
    %399 = arith.subf %364, %360 : f32
    %400 = arith.mulf %398, %398 : f32
    %401 = arith.mulf %399, %399 : f32
    %402 = arith.addf %400, %401 : f32
    %cst_155 = arith.constant 9.99999971E-10 : f32
    %403 = arith.addf %402, %cst_155 : f32
    %cst_156 = arith.constant 1.000000e+00 : f32
    %404 = arith.divf %cst_156, %403 : f32
    %405 = arith.mulf %398, %404 : f32
    %406 = arith.mulf %399, %404 : f32
    %cst_157 = arith.constant 0.000000e+00 : f32
    %407 = arith.cmpf olt, %399, %cst_157 : f32
    %cst_158 = arith.constant -1.000000e+00 : f32
    %cst_159 = arith.constant 1.000000e+00 : f32
    %408 = arith.select %407, %cst_158, %cst_159 : f32
    %409 = arith.mulf %399, %408 : f32
    %410 = arith.mulf %398, %408 : f32
    %411 = arith.subf %340, %337 : f32
    %412 = arith.subf %368, %364 : f32
    %413 = arith.mulf %411, %411 : f32
    %414 = arith.mulf %412, %412 : f32
    %415 = arith.addf %413, %414 : f32
    %cst_160 = arith.constant 9.99999971E-10 : f32
    %416 = arith.addf %415, %cst_160 : f32
    %cst_161 = arith.constant 1.000000e+00 : f32
    %417 = arith.divf %cst_161, %416 : f32
    %418 = arith.mulf %411, %417 : f32
    %419 = arith.mulf %412, %417 : f32
    %cst_162 = arith.constant 0.000000e+00 : f32
    %420 = arith.cmpf olt, %412, %cst_162 : f32
    %cst_163 = arith.constant -1.000000e+00 : f32
    %cst_164 = arith.constant 1.000000e+00 : f32
    %421 = arith.select %420, %cst_163, %cst_164 : f32
    %422 = arith.mulf %412, %421 : f32
    %423 = arith.mulf %411, %421 : f32
    %424 = arith.subf %343, %340 : f32
    %425 = arith.subf %372, %368 : f32
    %426 = arith.mulf %424, %424 : f32
    %427 = arith.mulf %425, %425 : f32
    %428 = arith.addf %426, %427 : f32
    %cst_165 = arith.constant 9.99999971E-10 : f32
    %429 = arith.addf %428, %cst_165 : f32
    %cst_166 = arith.constant 1.000000e+00 : f32
    %430 = arith.divf %cst_166, %429 : f32
    %431 = arith.mulf %424, %430 : f32
    %432 = arith.mulf %425, %430 : f32
    %cst_167 = arith.constant 0.000000e+00 : f32
    %433 = arith.cmpf olt, %425, %cst_167 : f32
    %cst_168 = arith.constant -1.000000e+00 : f32
    %cst_169 = arith.constant 1.000000e+00 : f32
    %434 = arith.select %433, %cst_168, %cst_169 : f32
    %435 = arith.mulf %425, %434 : f32
    %436 = arith.mulf %424, %434 : f32
    %437 = arith.subf %346, %343 : f32
    %438 = arith.subf %376, %372 : f32
    %439 = arith.mulf %437, %437 : f32
    %440 = arith.mulf %438, %438 : f32
    %441 = arith.addf %439, %440 : f32
    %cst_170 = arith.constant 9.99999971E-10 : f32
    %442 = arith.addf %441, %cst_170 : f32
    %cst_171 = arith.constant 1.000000e+00 : f32
    %443 = arith.divf %cst_171, %442 : f32
    %444 = arith.mulf %437, %443 : f32
    %445 = arith.mulf %438, %443 : f32
    %cst_172 = arith.constant 0.000000e+00 : f32
    %446 = arith.cmpf olt, %438, %cst_172 : f32
    %cst_173 = arith.constant -1.000000e+00 : f32
    %cst_174 = arith.constant 1.000000e+00 : f32
    %447 = arith.select %446, %cst_173, %cst_174 : f32
    %448 = arith.mulf %438, %447 : f32
    %449 = arith.mulf %437, %447 : f32
    %450 = arith.subf %349, %346 : f32
    %451 = arith.subf %380, %376 : f32
    %452 = arith.mulf %450, %450 : f32
    %453 = arith.mulf %451, %451 : f32
    %454 = arith.addf %452, %453 : f32
    %cst_175 = arith.constant 9.99999971E-10 : f32
    %455 = arith.addf %454, %cst_175 : f32
    %cst_176 = arith.constant 1.000000e+00 : f32
    %456 = arith.divf %cst_176, %455 : f32
    %457 = arith.mulf %450, %456 : f32
    %458 = arith.mulf %451, %456 : f32
    %cst_177 = arith.constant 0.000000e+00 : f32
    %459 = arith.cmpf olt, %451, %cst_177 : f32
    %cst_178 = arith.constant -1.000000e+00 : f32
    %cst_179 = arith.constant 1.000000e+00 : f32
    %460 = arith.select %459, %cst_178, %cst_179 : f32
    %461 = arith.mulf %451, %460 : f32
    %462 = arith.mulf %450, %460 : f32
    %463 = arith.subf %352, %349 : f32
    %464 = arith.subf %384, %380 : f32
    %465 = arith.mulf %463, %463 : f32
    %466 = arith.mulf %464, %464 : f32
    %467 = arith.addf %465, %466 : f32
    %cst_180 = arith.constant 9.99999971E-10 : f32
    %468 = arith.addf %467, %cst_180 : f32
    %cst_181 = arith.constant 1.000000e+00 : f32
    %469 = arith.divf %cst_181, %468 : f32
    %470 = arith.mulf %463, %469 : f32
    %471 = arith.mulf %464, %469 : f32
    %cst_182 = arith.constant 0.000000e+00 : f32
    %472 = arith.cmpf olt, %464, %cst_182 : f32
    %cst_183 = arith.constant -1.000000e+00 : f32
    %cst_184 = arith.constant 1.000000e+00 : f32
    %473 = arith.select %472, %cst_183, %cst_184 : f32
    %474 = arith.mulf %464, %473 : f32
    %475 = arith.mulf %463, %473 : f32
    %476 = arith.subf %331, %352 : f32
    %477 = arith.subf %356, %384 : f32
    %478 = arith.mulf %476, %476 : f32
    %479 = arith.mulf %477, %477 : f32
    %480 = arith.addf %478, %479 : f32
    %cst_185 = arith.constant 9.99999971E-10 : f32
    %481 = arith.addf %480, %cst_185 : f32
    %cst_186 = arith.constant 1.000000e+00 : f32
    %482 = arith.divf %cst_186, %481 : f32
    %483 = arith.mulf %476, %482 : f32
    %484 = arith.mulf %477, %482 : f32
    %cst_187 = arith.constant 0.000000e+00 : f32
    %485 = arith.cmpf olt, %477, %cst_187 : f32
    %cst_188 = arith.constant -1.000000e+00 : f32
    %cst_189 = arith.constant 1.000000e+00 : f32
    %486 = arith.select %485, %cst_188, %cst_189 : f32
    %487 = arith.mulf %477, %486 : f32
    %488 = arith.mulf %476, %486 : f32
    %c4_i32_190 = arith.constant 4 : i32
    %489 = arith.muli %arg0, %c4_i32_190 : i32
    %c3_i32 = arith.constant 3 : i32
    %490 = arith.addi %489, %c3_i32 : i32
    %c16_i32_191 = arith.constant 16 : i32
    %491 = arith.muli %490, %c16_i32_191 : i32
    %c0_i32_192 = arith.constant 0 : i32
    %492 = arith.addi %491, %c0_i32_192 : i32
    %493 = arith.index_cast %492 : i32 to index
    %494 = memref.load %arg1[%493] : memref<384xf32, #tpu.memory_space<smem>>
    %c2_i32_193 = arith.constant 2 : i32
    %495 = arith.addi %491, %c2_i32_193 : i32
    %496 = arith.index_cast %495 : i32 to index
    %497 = memref.load %arg1[%496] : memref<384xf32, #tpu.memory_space<smem>>
    %c4_i32_194 = arith.constant 4 : i32
    %498 = arith.addi %491, %c4_i32_194 : i32
    %499 = arith.index_cast %498 : i32 to index
    %500 = memref.load %arg1[%499] : memref<384xf32, #tpu.memory_space<smem>>
    %c6_i32_195 = arith.constant 6 : i32
    %501 = arith.addi %491, %c6_i32_195 : i32
    %502 = arith.index_cast %501 : i32 to index
    %503 = memref.load %arg1[%502] : memref<384xf32, #tpu.memory_space<smem>>
    %c8_i32_196 = arith.constant 8 : i32
    %504 = arith.addi %491, %c8_i32_196 : i32
    %505 = arith.index_cast %504 : i32 to index
    %506 = memref.load %arg1[%505] : memref<384xf32, #tpu.memory_space<smem>>
    %c10_i32_197 = arith.constant 10 : i32
    %507 = arith.addi %491, %c10_i32_197 : i32
    %508 = arith.index_cast %507 : i32 to index
    %509 = memref.load %arg1[%508] : memref<384xf32, #tpu.memory_space<smem>>
    %c12_i32_198 = arith.constant 12 : i32
    %510 = arith.addi %491, %c12_i32_198 : i32
    %511 = arith.index_cast %510 : i32 to index
    %512 = memref.load %arg1[%511] : memref<384xf32, #tpu.memory_space<smem>>
    %c14_i32_199 = arith.constant 14 : i32
    %513 = arith.addi %491, %c14_i32_199 : i32
    %514 = arith.index_cast %513 : i32 to index
    %515 = memref.load %arg1[%514] : memref<384xf32, #tpu.memory_space<smem>>
    %c0_i32_200 = arith.constant 0 : i32
    %516 = arith.addi %491, %c0_i32_200 : i32
    %c1_i32_201 = arith.constant 1 : i32
    %517 = arith.addi %516, %c1_i32_201 : i32
    %518 = arith.index_cast %517 : i32 to index
    %519 = memref.load %arg1[%518] : memref<384xf32, #tpu.memory_space<smem>>
    %c2_i32_202 = arith.constant 2 : i32
    %520 = arith.addi %491, %c2_i32_202 : i32
    %c1_i32_203 = arith.constant 1 : i32
    %521 = arith.addi %520, %c1_i32_203 : i32
    %522 = arith.index_cast %521 : i32 to index
    %523 = memref.load %arg1[%522] : memref<384xf32, #tpu.memory_space<smem>>
    %c4_i32_204 = arith.constant 4 : i32
    %524 = arith.addi %491, %c4_i32_204 : i32
    %c1_i32_205 = arith.constant 1 : i32
    %525 = arith.addi %524, %c1_i32_205 : i32
    %526 = arith.index_cast %525 : i32 to index
    %527 = memref.load %arg1[%526] : memref<384xf32, #tpu.memory_space<smem>>
    %c6_i32_206 = arith.constant 6 : i32
    %528 = arith.addi %491, %c6_i32_206 : i32
    %c1_i32_207 = arith.constant 1 : i32
    %529 = arith.addi %528, %c1_i32_207 : i32
    %530 = arith.index_cast %529 : i32 to index
    %531 = memref.load %arg1[%530] : memref<384xf32, #tpu.memory_space<smem>>
    %c8_i32_208 = arith.constant 8 : i32
    %532 = arith.addi %491, %c8_i32_208 : i32
    %c1_i32_209 = arith.constant 1 : i32
    %533 = arith.addi %532, %c1_i32_209 : i32
    %534 = arith.index_cast %533 : i32 to index
    %535 = memref.load %arg1[%534] : memref<384xf32, #tpu.memory_space<smem>>
    %c10_i32_210 = arith.constant 10 : i32
    %536 = arith.addi %491, %c10_i32_210 : i32
    %c1_i32_211 = arith.constant 1 : i32
    %537 = arith.addi %536, %c1_i32_211 : i32
    %538 = arith.index_cast %537 : i32 to index
    %539 = memref.load %arg1[%538] : memref<384xf32, #tpu.memory_space<smem>>
    %c12_i32_212 = arith.constant 12 : i32
    %540 = arith.addi %491, %c12_i32_212 : i32
    %c1_i32_213 = arith.constant 1 : i32
    %541 = arith.addi %540, %c1_i32_213 : i32
    %542 = arith.index_cast %541 : i32 to index
    %543 = memref.load %arg1[%542] : memref<384xf32, #tpu.memory_space<smem>>
    %c14_i32_214 = arith.constant 14 : i32
    %544 = arith.addi %491, %c14_i32_214 : i32
    %c1_i32_215 = arith.constant 1 : i32
    %545 = arith.addi %544, %c1_i32_215 : i32
    %546 = arith.index_cast %545 : i32 to index
    %547 = memref.load %arg1[%546] : memref<384xf32, #tpu.memory_space<smem>>
    %548 = arith.subf %497, %494 : f32
    %549 = arith.subf %523, %519 : f32
    %550 = arith.mulf %548, %548 : f32
    %551 = arith.mulf %549, %549 : f32
    %552 = arith.addf %550, %551 : f32
    %cst_216 = arith.constant 9.99999971E-10 : f32
    %553 = arith.addf %552, %cst_216 : f32
    %cst_217 = arith.constant 1.000000e+00 : f32
    %554 = arith.divf %cst_217, %553 : f32
    %555 = arith.mulf %548, %554 : f32
    %556 = arith.mulf %549, %554 : f32
    %cst_218 = arith.constant 0.000000e+00 : f32
    %557 = arith.cmpf olt, %549, %cst_218 : f32
    %cst_219 = arith.constant -1.000000e+00 : f32
    %cst_220 = arith.constant 1.000000e+00 : f32
    %558 = arith.select %557, %cst_219, %cst_220 : f32
    %559 = arith.mulf %549, %558 : f32
    %560 = arith.mulf %548, %558 : f32
    %561 = arith.subf %500, %497 : f32
    %562 = arith.subf %527, %523 : f32
    %563 = arith.mulf %561, %561 : f32
    %564 = arith.mulf %562, %562 : f32
    %565 = arith.addf %563, %564 : f32
    %cst_221 = arith.constant 9.99999971E-10 : f32
    %566 = arith.addf %565, %cst_221 : f32
    %cst_222 = arith.constant 1.000000e+00 : f32
    %567 = arith.divf %cst_222, %566 : f32
    %568 = arith.mulf %561, %567 : f32
    %569 = arith.mulf %562, %567 : f32
    %cst_223 = arith.constant 0.000000e+00 : f32
    %570 = arith.cmpf olt, %562, %cst_223 : f32
    %cst_224 = arith.constant -1.000000e+00 : f32
    %cst_225 = arith.constant 1.000000e+00 : f32
    %571 = arith.select %570, %cst_224, %cst_225 : f32
    %572 = arith.mulf %562, %571 : f32
    %573 = arith.mulf %561, %571 : f32
    %574 = arith.subf %503, %500 : f32
    %575 = arith.subf %531, %527 : f32
    %576 = arith.mulf %574, %574 : f32
    %577 = arith.mulf %575, %575 : f32
    %578 = arith.addf %576, %577 : f32
    %cst_226 = arith.constant 9.99999971E-10 : f32
    %579 = arith.addf %578, %cst_226 : f32
    %cst_227 = arith.constant 1.000000e+00 : f32
    %580 = arith.divf %cst_227, %579 : f32
    %581 = arith.mulf %574, %580 : f32
    %582 = arith.mulf %575, %580 : f32
    %cst_228 = arith.constant 0.000000e+00 : f32
    %583 = arith.cmpf olt, %575, %cst_228 : f32
    %cst_229 = arith.constant -1.000000e+00 : f32
    %cst_230 = arith.constant 1.000000e+00 : f32
    %584 = arith.select %583, %cst_229, %cst_230 : f32
    %585 = arith.mulf %575, %584 : f32
    %586 = arith.mulf %574, %584 : f32
    %587 = arith.subf %506, %503 : f32
    %588 = arith.subf %535, %531 : f32
    %589 = arith.mulf %587, %587 : f32
    %590 = arith.mulf %588, %588 : f32
    %591 = arith.addf %589, %590 : f32
    %cst_231 = arith.constant 9.99999971E-10 : f32
    %592 = arith.addf %591, %cst_231 : f32
    %cst_232 = arith.constant 1.000000e+00 : f32
    %593 = arith.divf %cst_232, %592 : f32
    %594 = arith.mulf %587, %593 : f32
    %595 = arith.mulf %588, %593 : f32
    %cst_233 = arith.constant 0.000000e+00 : f32
    %596 = arith.cmpf olt, %588, %cst_233 : f32
    %cst_234 = arith.constant -1.000000e+00 : f32
    %cst_235 = arith.constant 1.000000e+00 : f32
    %597 = arith.select %596, %cst_234, %cst_235 : f32
    %598 = arith.mulf %588, %597 : f32
    %599 = arith.mulf %587, %597 : f32
    %600 = arith.subf %509, %506 : f32
    %601 = arith.subf %539, %535 : f32
    %602 = arith.mulf %600, %600 : f32
    %603 = arith.mulf %601, %601 : f32
    %604 = arith.addf %602, %603 : f32
    %cst_236 = arith.constant 9.99999971E-10 : f32
    %605 = arith.addf %604, %cst_236 : f32
    %cst_237 = arith.constant 1.000000e+00 : f32
    %606 = arith.divf %cst_237, %605 : f32
    %607 = arith.mulf %600, %606 : f32
    %608 = arith.mulf %601, %606 : f32
    %cst_238 = arith.constant 0.000000e+00 : f32
    %609 = arith.cmpf olt, %601, %cst_238 : f32
    %cst_239 = arith.constant -1.000000e+00 : f32
    %cst_240 = arith.constant 1.000000e+00 : f32
    %610 = arith.select %609, %cst_239, %cst_240 : f32
    %611 = arith.mulf %601, %610 : f32
    %612 = arith.mulf %600, %610 : f32
    %613 = arith.subf %512, %509 : f32
    %614 = arith.subf %543, %539 : f32
    %615 = arith.mulf %613, %613 : f32
    %616 = arith.mulf %614, %614 : f32
    %617 = arith.addf %615, %616 : f32
    %cst_241 = arith.constant 9.99999971E-10 : f32
    %618 = arith.addf %617, %cst_241 : f32
    %cst_242 = arith.constant 1.000000e+00 : f32
    %619 = arith.divf %cst_242, %618 : f32
    %620 = arith.mulf %613, %619 : f32
    %621 = arith.mulf %614, %619 : f32
    %cst_243 = arith.constant 0.000000e+00 : f32
    %622 = arith.cmpf olt, %614, %cst_243 : f32
    %cst_244 = arith.constant -1.000000e+00 : f32
    %cst_245 = arith.constant 1.000000e+00 : f32
    %623 = arith.select %622, %cst_244, %cst_245 : f32
    %624 = arith.mulf %614, %623 : f32
    %625 = arith.mulf %613, %623 : f32
    %626 = arith.subf %515, %512 : f32
    %627 = arith.subf %547, %543 : f32
    %628 = arith.mulf %626, %626 : f32
    %629 = arith.mulf %627, %627 : f32
    %630 = arith.addf %628, %629 : f32
    %cst_246 = arith.constant 9.99999971E-10 : f32
    %631 = arith.addf %630, %cst_246 : f32
    %cst_247 = arith.constant 1.000000e+00 : f32
    %632 = arith.divf %cst_247, %631 : f32
    %633 = arith.mulf %626, %632 : f32
    %634 = arith.mulf %627, %632 : f32
    %cst_248 = arith.constant 0.000000e+00 : f32
    %635 = arith.cmpf olt, %627, %cst_248 : f32
    %cst_249 = arith.constant -1.000000e+00 : f32
    %cst_250 = arith.constant 1.000000e+00 : f32
    %636 = arith.select %635, %cst_249, %cst_250 : f32
    %637 = arith.mulf %627, %636 : f32
    %638 = arith.mulf %626, %636 : f32
    %639 = arith.subf %494, %515 : f32
    %640 = arith.subf %519, %547 : f32
    %641 = arith.mulf %639, %639 : f32
    %642 = arith.mulf %640, %640 : f32
    %643 = arith.addf %641, %642 : f32
    %cst_251 = arith.constant 9.99999971E-10 : f32
    %644 = arith.addf %643, %cst_251 : f32
    %cst_252 = arith.constant 1.000000e+00 : f32
    %645 = arith.divf %cst_252, %644 : f32
    %646 = arith.mulf %639, %645 : f32
    %647 = arith.mulf %640, %645 : f32
    %cst_253 = arith.constant 0.000000e+00 : f32
    %648 = arith.cmpf olt, %640, %cst_253 : f32
    %cst_254 = arith.constant -1.000000e+00 : f32
    %cst_255 = arith.constant 1.000000e+00 : f32
    %649 = arith.select %648, %cst_254, %cst_255 : f32
    %650 = arith.mulf %640, %649 : f32
    %651 = arith.mulf %639, %649 : f32
    %c0 = arith.constant 0 : index
    %c0_256 = arith.constant 0 : index
    %c0_257 = arith.constant 0 : index
    %652 = vector.load %arg2[%c0, %c0_256, %c0_257] : memref<1x2x128xf32, #tpu.memory_space<vmem>>, vector<1x2x128xf32>
    %653 = vector.shape_cast %652 : vector<1x2x128xf32> to vector<2x128xf32>
    %654 = tpu.iota {dimensions = array<i32: 0>} : vector<2x128xi32>
    %655 = tpu.iota {dimensions = array<i32: 1>} : vector<2x128xi32>
    %c0_i32_258 = arith.constant 0 : i32
    %656 = vector.broadcast %c0_i32_258 : i32 to vector<2x128xi32>
    %657 = arith.addi %654, %656 : vector<2x128xi32>
    %c128_i32 = arith.constant 128 : i32
    %658 = vector.broadcast %c128_i32 : i32 to vector<2x128xi32>
    %659 = arith.muli %657, %658 : vector<2x128xi32>
    %660 = arith.addi %659, %655 : vector<2x128xi32>
    %661 = arith.sitofp %660 : vector<2x128xi32> to vector<2x128xf32>
    %cst_259 = arith.constant 6.250000e-02 : f32
    %662 = vector.broadcast %cst_259 : f32 to vector<2x128xf32>
    %663 = arith.mulf %661, %662 : vector<2x128xf32>
    %664 = math.floor %663 : vector<2x128xf32>
    %665 = arith.fptosi %664 : vector<2x128xf32> to vector<2x128xi32>
    %c16_i32_260 = arith.constant 16 : i32
    %666 = vector.broadcast %c16_i32_260 : i32 to vector<2x128xi32>
    %667 = arith.muli %665, %666 : vector<2x128xi32>
    %668 = arith.subi %660, %667 : vector<2x128xi32>
    %c0_i32_261 = arith.constant 0 : i32
    %669 = vector.broadcast %c0_i32_261 : i32 to vector<2x128xi32>
    %670 = arith.cmpi slt, %668, %669 : vector<2x128xi32>
    %c1_i32_262 = arith.constant 1 : i32
    %671 = vector.broadcast %c1_i32_262 : i32 to vector<2x128xi32>
    %672 = arith.subi %665, %671 : vector<2x128xi32>
    %c16_i32_263 = arith.constant 16 : i32
    %673 = vector.broadcast %c16_i32_263 : i32 to vector<2x128xi32>
    %674 = arith.cmpi sge, %668, %673 : vector<2x128xi32>
    %c1_i32_264 = arith.constant 1 : i32
    %675 = vector.broadcast %c1_i32_264 : i32 to vector<2x128xi32>
    %676 = arith.addi %665, %675 : vector<2x128xi32>
    %677 = arith.select %674, %676, %665 : vector<2x128xi1>, vector<2x128xi32>
    %678 = arith.select %670, %672, %677 : vector<2x128xi1>, vector<2x128xi32>
    %c0_i32_265 = arith.constant 0 : i32
    %679 = vector.broadcast %c0_i32_265 : i32 to vector<2x128xi32>
    %680 = arith.cmpi slt, %668, %679 : vector<2x128xi32>
    %c16_i32_266 = arith.constant 16 : i32
    %681 = vector.broadcast %c16_i32_266 : i32 to vector<2x128xi32>
    %682 = arith.addi %668, %681 : vector<2x128xi32>
    %c16_i32_267 = arith.constant 16 : i32
    %683 = vector.broadcast %c16_i32_267 : i32 to vector<2x128xi32>
    %684 = arith.cmpi sge, %668, %683 : vector<2x128xi32>
    %c16_i32_268 = arith.constant 16 : i32
    %685 = vector.broadcast %c16_i32_268 : i32 to vector<2x128xi32>
    %686 = arith.subi %668, %685 : vector<2x128xi32>
    %687 = arith.select %684, %686, %668 : vector<2x128xi1>, vector<2x128xi32>
    %688 = arith.select %680, %682, %687 : vector<2x128xi1>, vector<2x128xi32>
    %689 = arith.sitofp %688 : vector<2x128xi32> to vector<2x128xf32>
    %cst_269 = arith.constant 5.000000e-01 : f32
    %690 = vector.broadcast %cst_269 : f32 to vector<2x128xf32>
    %691 = arith.addf %689, %690 : vector<2x128xf32>
    %692 = arith.sitofp %678 : vector<2x128xi32> to vector<2x128xf32>
    %cst_270 = arith.constant 5.000000e-01 : f32
    %693 = vector.broadcast %cst_270 : f32 to vector<2x128xf32>
    %694 = arith.addf %692, %693 : vector<2x128xf32>
    %cst_271 = arith.constant 5.000000e-01 : f32
    %695 = vector.broadcast %cst_271 : f32 to vector<2x128xf32>
    %696 = arith.cmpf ogt, %653, %695 : vector<2x128xf32>
    %697 = arith.extui %696 : vector<2x128xi1> to vector<2x128xi32>
    %698 = arith.sitofp %697 : vector<2x128xi32> to vector<2x128xf32>
    %cst_272 = arith.constant 1.000000e+30 : f32
    %699 = vector.broadcast %cst_272 : f32 to vector<2x128xf32>
    %false = arith.constant false
    %700 = vector.broadcast %false : i1 to vector<2x128xi1>
    %701 = vector.broadcast %5 : f32 to vector<2x128xf32>
    %702 = arith.subf %691, %701 : vector<2x128xf32>
    %703 = vector.broadcast %30 : f32 to vector<2x128xf32>
    %704 = arith.subf %694, %703 : vector<2x128xf32>
    %705 = vector.broadcast %66 : f32 to vector<2x128xf32>
    %706 = arith.mulf %702, %705 : vector<2x128xf32>
    %707 = vector.broadcast %67 : f32 to vector<2x128xf32>
    %708 = arith.mulf %704, %707 : vector<2x128xf32>
    %709 = arith.addf %706, %708 : vector<2x128xf32>
    %cst_273 = arith.constant 0.000000e+00 : f32
    %cst_274 = arith.constant 1.000000e+00 : f32
    %710 = vector.broadcast %cst_273 : f32 to vector<2x128xf32>
    %711 = arith.maximumf %710, %709 : vector<2x128xf32>
    %712 = vector.broadcast %cst_274 : f32 to vector<2x128xf32>
    %713 = arith.minimumf %712, %711 : vector<2x128xf32>
    %714 = vector.broadcast %59 : f32 to vector<2x128xf32>
    %715 = arith.mulf %713, %714 : vector<2x128xf32>
    %716 = arith.subf %702, %715 : vector<2x128xf32>
    %717 = vector.broadcast %60 : f32 to vector<2x128xf32>
    %718 = arith.mulf %713, %717 : vector<2x128xf32>
    %719 = arith.subf %704, %718 : vector<2x128xf32>
    %720 = arith.mulf %716, %716 : vector<2x128xf32>
    %721 = arith.mulf %719, %719 : vector<2x128xf32>
    %722 = arith.addf %720, %721 : vector<2x128xf32>
    %723 = arith.minimumf %699, %722 : vector<2x128xf32>
    %724 = vector.broadcast %30 : f32 to vector<2x128xf32>
    %725 = arith.cmpf ogt, %724, %694 : vector<2x128xf32>
    %726 = vector.broadcast %34 : f32 to vector<2x128xf32>
    %727 = arith.cmpf ogt, %726, %694 : vector<2x128xf32>
    %728 = arith.xori %725, %727 : vector<2x128xi1>
    %729 = vector.broadcast %70 : f32 to vector<2x128xf32>
    %730 = arith.mulf %702, %729 : vector<2x128xf32>
    %731 = vector.broadcast %71 : f32 to vector<2x128xf32>
    %732 = arith.mulf %704, %731 : vector<2x128xf32>
    %733 = arith.subf %730, %732 : vector<2x128xf32>
    %cst_275 = arith.constant 0.000000e+00 : f32
    %734 = vector.broadcast %cst_275 : f32 to vector<2x128xf32>
    %735 = arith.cmpf olt, %733, %734 : vector<2x128xf32>
    %736 = arith.andi %728, %735 : vector<2x128xi1>
    %737 = arith.xori %700, %736 : vector<2x128xi1>
    %738 = vector.broadcast %8 : f32 to vector<2x128xf32>
    %739 = arith.subf %691, %738 : vector<2x128xf32>
    %740 = vector.broadcast %34 : f32 to vector<2x128xf32>
    %741 = arith.subf %694, %740 : vector<2x128xf32>
    %742 = vector.broadcast %79 : f32 to vector<2x128xf32>
    %743 = arith.mulf %739, %742 : vector<2x128xf32>
    %744 = vector.broadcast %80 : f32 to vector<2x128xf32>
    %745 = arith.mulf %741, %744 : vector<2x128xf32>
    %746 = arith.addf %743, %745 : vector<2x128xf32>
    %cst_276 = arith.constant 0.000000e+00 : f32
    %cst_277 = arith.constant 1.000000e+00 : f32
    %747 = vector.broadcast %cst_276 : f32 to vector<2x128xf32>
    %748 = arith.maximumf %747, %746 : vector<2x128xf32>
    %749 = vector.broadcast %cst_277 : f32 to vector<2x128xf32>
    %750 = arith.minimumf %749, %748 : vector<2x128xf32>
    %751 = vector.broadcast %72 : f32 to vector<2x128xf32>
    %752 = arith.mulf %750, %751 : vector<2x128xf32>
    %753 = arith.subf %739, %752 : vector<2x128xf32>
    %754 = vector.broadcast %73 : f32 to vector<2x128xf32>
    %755 = arith.mulf %750, %754 : vector<2x128xf32>
    %756 = arith.subf %741, %755 : vector<2x128xf32>
    %757 = arith.mulf %753, %753 : vector<2x128xf32>
    %758 = arith.mulf %756, %756 : vector<2x128xf32>
    %759 = arith.addf %757, %758 : vector<2x128xf32>
    %760 = arith.minimumf %723, %759 : vector<2x128xf32>
    %761 = vector.broadcast %34 : f32 to vector<2x128xf32>
    %762 = arith.cmpf ogt, %761, %694 : vector<2x128xf32>
    %763 = vector.broadcast %38 : f32 to vector<2x128xf32>
    %764 = arith.cmpf ogt, %763, %694 : vector<2x128xf32>
    %765 = arith.xori %762, %764 : vector<2x128xi1>
    %766 = vector.broadcast %83 : f32 to vector<2x128xf32>
    %767 = arith.mulf %739, %766 : vector<2x128xf32>
    %768 = vector.broadcast %84 : f32 to vector<2x128xf32>
    %769 = arith.mulf %741, %768 : vector<2x128xf32>
    %770 = arith.subf %767, %769 : vector<2x128xf32>
    %cst_278 = arith.constant 0.000000e+00 : f32
    %771 = vector.broadcast %cst_278 : f32 to vector<2x128xf32>
    %772 = arith.cmpf olt, %770, %771 : vector<2x128xf32>
    %773 = arith.andi %765, %772 : vector<2x128xi1>
    %774 = arith.xori %737, %773 : vector<2x128xi1>
    %775 = vector.broadcast %11 : f32 to vector<2x128xf32>
    %776 = arith.subf %691, %775 : vector<2x128xf32>
    %777 = vector.broadcast %38 : f32 to vector<2x128xf32>
    %778 = arith.subf %694, %777 : vector<2x128xf32>
    %779 = vector.broadcast %92 : f32 to vector<2x128xf32>
    %780 = arith.mulf %776, %779 : vector<2x128xf32>
    %781 = vector.broadcast %93 : f32 to vector<2x128xf32>
    %782 = arith.mulf %778, %781 : vector<2x128xf32>
    %783 = arith.addf %780, %782 : vector<2x128xf32>
    %cst_279 = arith.constant 0.000000e+00 : f32
    %cst_280 = arith.constant 1.000000e+00 : f32
    %784 = vector.broadcast %cst_279 : f32 to vector<2x128xf32>
    %785 = arith.maximumf %784, %783 : vector<2x128xf32>
    %786 = vector.broadcast %cst_280 : f32 to vector<2x128xf32>
    %787 = arith.minimumf %786, %785 : vector<2x128xf32>
    %788 = vector.broadcast %85 : f32 to vector<2x128xf32>
    %789 = arith.mulf %787, %788 : vector<2x128xf32>
    %790 = arith.subf %776, %789 : vector<2x128xf32>
    %791 = vector.broadcast %86 : f32 to vector<2x128xf32>
    %792 = arith.mulf %787, %791 : vector<2x128xf32>
    %793 = arith.subf %778, %792 : vector<2x128xf32>
    %794 = arith.mulf %790, %790 : vector<2x128xf32>
    %795 = arith.mulf %793, %793 : vector<2x128xf32>
    %796 = arith.addf %794, %795 : vector<2x128xf32>
    %797 = arith.minimumf %760, %796 : vector<2x128xf32>
    %798 = vector.broadcast %38 : f32 to vector<2x128xf32>
    %799 = arith.cmpf ogt, %798, %694 : vector<2x128xf32>
    %800 = vector.broadcast %42 : f32 to vector<2x128xf32>
    %801 = arith.cmpf ogt, %800, %694 : vector<2x128xf32>
    %802 = arith.xori %799, %801 : vector<2x128xi1>
    %803 = vector.broadcast %96 : f32 to vector<2x128xf32>
    %804 = arith.mulf %776, %803 : vector<2x128xf32>
    %805 = vector.broadcast %97 : f32 to vector<2x128xf32>
    %806 = arith.mulf %778, %805 : vector<2x128xf32>
    %807 = arith.subf %804, %806 : vector<2x128xf32>
    %cst_281 = arith.constant 0.000000e+00 : f32
    %808 = vector.broadcast %cst_281 : f32 to vector<2x128xf32>
    %809 = arith.cmpf olt, %807, %808 : vector<2x128xf32>
    %810 = arith.andi %802, %809 : vector<2x128xi1>
    %811 = arith.xori %774, %810 : vector<2x128xi1>
    %812 = vector.broadcast %14 : f32 to vector<2x128xf32>
    %813 = arith.subf %691, %812 : vector<2x128xf32>
    %814 = vector.broadcast %42 : f32 to vector<2x128xf32>
    %815 = arith.subf %694, %814 : vector<2x128xf32>
    %816 = vector.broadcast %105 : f32 to vector<2x128xf32>
    %817 = arith.mulf %813, %816 : vector<2x128xf32>
    %818 = vector.broadcast %106 : f32 to vector<2x128xf32>
    %819 = arith.mulf %815, %818 : vector<2x128xf32>
    %820 = arith.addf %817, %819 : vector<2x128xf32>
    %cst_282 = arith.constant 0.000000e+00 : f32
    %cst_283 = arith.constant 1.000000e+00 : f32
    %821 = vector.broadcast %cst_282 : f32 to vector<2x128xf32>
    %822 = arith.maximumf %821, %820 : vector<2x128xf32>
    %823 = vector.broadcast %cst_283 : f32 to vector<2x128xf32>
    %824 = arith.minimumf %823, %822 : vector<2x128xf32>
    %825 = vector.broadcast %98 : f32 to vector<2x128xf32>
    %826 = arith.mulf %824, %825 : vector<2x128xf32>
    %827 = arith.subf %813, %826 : vector<2x128xf32>
    %828 = vector.broadcast %99 : f32 to vector<2x128xf32>
    %829 = arith.mulf %824, %828 : vector<2x128xf32>
    %830 = arith.subf %815, %829 : vector<2x128xf32>
    %831 = arith.mulf %827, %827 : vector<2x128xf32>
    %832 = arith.mulf %830, %830 : vector<2x128xf32>
    %833 = arith.addf %831, %832 : vector<2x128xf32>
    %834 = arith.minimumf %797, %833 : vector<2x128xf32>
    %835 = vector.broadcast %42 : f32 to vector<2x128xf32>
    %836 = arith.cmpf ogt, %835, %694 : vector<2x128xf32>
    %837 = vector.broadcast %46 : f32 to vector<2x128xf32>
    %838 = arith.cmpf ogt, %837, %694 : vector<2x128xf32>
    %839 = arith.xori %836, %838 : vector<2x128xi1>
    %840 = vector.broadcast %109 : f32 to vector<2x128xf32>
    %841 = arith.mulf %813, %840 : vector<2x128xf32>
    %842 = vector.broadcast %110 : f32 to vector<2x128xf32>
    %843 = arith.mulf %815, %842 : vector<2x128xf32>
    %844 = arith.subf %841, %843 : vector<2x128xf32>
    %cst_284 = arith.constant 0.000000e+00 : f32
    %845 = vector.broadcast %cst_284 : f32 to vector<2x128xf32>
    %846 = arith.cmpf olt, %844, %845 : vector<2x128xf32>
    %847 = arith.andi %839, %846 : vector<2x128xi1>
    %848 = arith.xori %811, %847 : vector<2x128xi1>
    %849 = vector.broadcast %17 : f32 to vector<2x128xf32>
    %850 = arith.subf %691, %849 : vector<2x128xf32>
    %851 = vector.broadcast %46 : f32 to vector<2x128xf32>
    %852 = arith.subf %694, %851 : vector<2x128xf32>
    %853 = vector.broadcast %118 : f32 to vector<2x128xf32>
    %854 = arith.mulf %850, %853 : vector<2x128xf32>
    %855 = vector.broadcast %119 : f32 to vector<2x128xf32>
    %856 = arith.mulf %852, %855 : vector<2x128xf32>
    %857 = arith.addf %854, %856 : vector<2x128xf32>
    %cst_285 = arith.constant 0.000000e+00 : f32
    %cst_286 = arith.constant 1.000000e+00 : f32
    %858 = vector.broadcast %cst_285 : f32 to vector<2x128xf32>
    %859 = arith.maximumf %858, %857 : vector<2x128xf32>
    %860 = vector.broadcast %cst_286 : f32 to vector<2x128xf32>
    %861 = arith.minimumf %860, %859 : vector<2x128xf32>
    %862 = vector.broadcast %111 : f32 to vector<2x128xf32>
    %863 = arith.mulf %861, %862 : vector<2x128xf32>
    %864 = arith.subf %850, %863 : vector<2x128xf32>
    %865 = vector.broadcast %112 : f32 to vector<2x128xf32>
    %866 = arith.mulf %861, %865 : vector<2x128xf32>
    %867 = arith.subf %852, %866 : vector<2x128xf32>
    %868 = arith.mulf %864, %864 : vector<2x128xf32>
    %869 = arith.mulf %867, %867 : vector<2x128xf32>
    %870 = arith.addf %868, %869 : vector<2x128xf32>
    %871 = arith.minimumf %834, %870 : vector<2x128xf32>
    %872 = vector.broadcast %46 : f32 to vector<2x128xf32>
    %873 = arith.cmpf ogt, %872, %694 : vector<2x128xf32>
    %874 = vector.broadcast %50 : f32 to vector<2x128xf32>
    %875 = arith.cmpf ogt, %874, %694 : vector<2x128xf32>
    %876 = arith.xori %873, %875 : vector<2x128xi1>
    %877 = vector.broadcast %122 : f32 to vector<2x128xf32>
    %878 = arith.mulf %850, %877 : vector<2x128xf32>
    %879 = vector.broadcast %123 : f32 to vector<2x128xf32>
    %880 = arith.mulf %852, %879 : vector<2x128xf32>
    %881 = arith.subf %878, %880 : vector<2x128xf32>
    %cst_287 = arith.constant 0.000000e+00 : f32
    %882 = vector.broadcast %cst_287 : f32 to vector<2x128xf32>
    %883 = arith.cmpf olt, %881, %882 : vector<2x128xf32>
    %884 = arith.andi %876, %883 : vector<2x128xi1>
    %885 = arith.xori %848, %884 : vector<2x128xi1>
    %886 = vector.broadcast %20 : f32 to vector<2x128xf32>
    %887 = arith.subf %691, %886 : vector<2x128xf32>
    %888 = vector.broadcast %50 : f32 to vector<2x128xf32>
    %889 = arith.subf %694, %888 : vector<2x128xf32>
    %890 = vector.broadcast %131 : f32 to vector<2x128xf32>
    %891 = arith.mulf %887, %890 : vector<2x128xf32>
    %892 = vector.broadcast %132 : f32 to vector<2x128xf32>
    %893 = arith.mulf %889, %892 : vector<2x128xf32>
    %894 = arith.addf %891, %893 : vector<2x128xf32>
    %cst_288 = arith.constant 0.000000e+00 : f32
    %cst_289 = arith.constant 1.000000e+00 : f32
    %895 = vector.broadcast %cst_288 : f32 to vector<2x128xf32>
    %896 = arith.maximumf %895, %894 : vector<2x128xf32>
    %897 = vector.broadcast %cst_289 : f32 to vector<2x128xf32>
    %898 = arith.minimumf %897, %896 : vector<2x128xf32>
    %899 = vector.broadcast %124 : f32 to vector<2x128xf32>
    %900 = arith.mulf %898, %899 : vector<2x128xf32>
    %901 = arith.subf %887, %900 : vector<2x128xf32>
    %902 = vector.broadcast %125 : f32 to vector<2x128xf32>
    %903 = arith.mulf %898, %902 : vector<2x128xf32>
    %904 = arith.subf %889, %903 : vector<2x128xf32>
    %905 = arith.mulf %901, %901 : vector<2x128xf32>
    %906 = arith.mulf %904, %904 : vector<2x128xf32>
    %907 = arith.addf %905, %906 : vector<2x128xf32>
    %908 = arith.minimumf %871, %907 : vector<2x128xf32>
    %909 = vector.broadcast %50 : f32 to vector<2x128xf32>
    %910 = arith.cmpf ogt, %909, %694 : vector<2x128xf32>
    %911 = vector.broadcast %54 : f32 to vector<2x128xf32>
    %912 = arith.cmpf ogt, %911, %694 : vector<2x128xf32>
    %913 = arith.xori %910, %912 : vector<2x128xi1>
    %914 = vector.broadcast %135 : f32 to vector<2x128xf32>
    %915 = arith.mulf %887, %914 : vector<2x128xf32>
    %916 = vector.broadcast %136 : f32 to vector<2x128xf32>
    %917 = arith.mulf %889, %916 : vector<2x128xf32>
    %918 = arith.subf %915, %917 : vector<2x128xf32>
    %cst_290 = arith.constant 0.000000e+00 : f32
    %919 = vector.broadcast %cst_290 : f32 to vector<2x128xf32>
    %920 = arith.cmpf olt, %918, %919 : vector<2x128xf32>
    %921 = arith.andi %913, %920 : vector<2x128xi1>
    %922 = arith.xori %885, %921 : vector<2x128xi1>
    %923 = vector.broadcast %23 : f32 to vector<2x128xf32>
    %924 = arith.subf %691, %923 : vector<2x128xf32>
    %925 = vector.broadcast %54 : f32 to vector<2x128xf32>
    %926 = arith.subf %694, %925 : vector<2x128xf32>
    %927 = vector.broadcast %144 : f32 to vector<2x128xf32>
    %928 = arith.mulf %924, %927 : vector<2x128xf32>
    %929 = vector.broadcast %145 : f32 to vector<2x128xf32>
    %930 = arith.mulf %926, %929 : vector<2x128xf32>
    %931 = arith.addf %928, %930 : vector<2x128xf32>
    %cst_291 = arith.constant 0.000000e+00 : f32
    %cst_292 = arith.constant 1.000000e+00 : f32
    %932 = vector.broadcast %cst_291 : f32 to vector<2x128xf32>
    %933 = arith.maximumf %932, %931 : vector<2x128xf32>
    %934 = vector.broadcast %cst_292 : f32 to vector<2x128xf32>
    %935 = arith.minimumf %934, %933 : vector<2x128xf32>
    %936 = vector.broadcast %137 : f32 to vector<2x128xf32>
    %937 = arith.mulf %935, %936 : vector<2x128xf32>
    %938 = arith.subf %924, %937 : vector<2x128xf32>
    %939 = vector.broadcast %138 : f32 to vector<2x128xf32>
    %940 = arith.mulf %935, %939 : vector<2x128xf32>
    %941 = arith.subf %926, %940 : vector<2x128xf32>
    %942 = arith.mulf %938, %938 : vector<2x128xf32>
    %943 = arith.mulf %941, %941 : vector<2x128xf32>
    %944 = arith.addf %942, %943 : vector<2x128xf32>
    %945 = arith.minimumf %908, %944 : vector<2x128xf32>
    %946 = vector.broadcast %54 : f32 to vector<2x128xf32>
    %947 = arith.cmpf ogt, %946, %694 : vector<2x128xf32>
    %948 = vector.broadcast %58 : f32 to vector<2x128xf32>
    %949 = arith.cmpf ogt, %948, %694 : vector<2x128xf32>
    %950 = arith.xori %947, %949 : vector<2x128xi1>
    %951 = vector.broadcast %148 : f32 to vector<2x128xf32>
    %952 = arith.mulf %924, %951 : vector<2x128xf32>
    %953 = vector.broadcast %149 : f32 to vector<2x128xf32>
    %954 = arith.mulf %926, %953 : vector<2x128xf32>
    %955 = arith.subf %952, %954 : vector<2x128xf32>
    %cst_293 = arith.constant 0.000000e+00 : f32
    %956 = vector.broadcast %cst_293 : f32 to vector<2x128xf32>
    %957 = arith.cmpf olt, %955, %956 : vector<2x128xf32>
    %958 = arith.andi %950, %957 : vector<2x128xi1>
    %959 = arith.xori %922, %958 : vector<2x128xi1>
    %960 = vector.broadcast %26 : f32 to vector<2x128xf32>
    %961 = arith.subf %691, %960 : vector<2x128xf32>
    %962 = vector.broadcast %58 : f32 to vector<2x128xf32>
    %963 = arith.subf %694, %962 : vector<2x128xf32>
    %964 = vector.broadcast %157 : f32 to vector<2x128xf32>
    %965 = arith.mulf %961, %964 : vector<2x128xf32>
    %966 = vector.broadcast %158 : f32 to vector<2x128xf32>
    %967 = arith.mulf %963, %966 : vector<2x128xf32>
    %968 = arith.addf %965, %967 : vector<2x128xf32>
    %cst_294 = arith.constant 0.000000e+00 : f32
    %cst_295 = arith.constant 1.000000e+00 : f32
    %969 = vector.broadcast %cst_294 : f32 to vector<2x128xf32>
    %970 = arith.maximumf %969, %968 : vector<2x128xf32>
    %971 = vector.broadcast %cst_295 : f32 to vector<2x128xf32>
    %972 = arith.minimumf %971, %970 : vector<2x128xf32>
    %973 = vector.broadcast %150 : f32 to vector<2x128xf32>
    %974 = arith.mulf %972, %973 : vector<2x128xf32>
    %975 = arith.subf %961, %974 : vector<2x128xf32>
    %976 = vector.broadcast %151 : f32 to vector<2x128xf32>
    %977 = arith.mulf %972, %976 : vector<2x128xf32>
    %978 = arith.subf %963, %977 : vector<2x128xf32>
    %979 = arith.mulf %975, %975 : vector<2x128xf32>
    %980 = arith.mulf %978, %978 : vector<2x128xf32>
    %981 = arith.addf %979, %980 : vector<2x128xf32>
    %982 = arith.minimumf %945, %981 : vector<2x128xf32>
    %983 = vector.broadcast %58 : f32 to vector<2x128xf32>
    %984 = arith.cmpf ogt, %983, %694 : vector<2x128xf32>
    %985 = vector.broadcast %30 : f32 to vector<2x128xf32>
    %986 = arith.cmpf ogt, %985, %694 : vector<2x128xf32>
    %987 = arith.xori %984, %986 : vector<2x128xi1>
    %988 = vector.broadcast %161 : f32 to vector<2x128xf32>
    %989 = arith.mulf %961, %988 : vector<2x128xf32>
    %990 = vector.broadcast %162 : f32 to vector<2x128xf32>
    %991 = arith.mulf %963, %990 : vector<2x128xf32>
    %992 = arith.subf %989, %991 : vector<2x128xf32>
    %cst_296 = arith.constant 0.000000e+00 : f32
    %993 = vector.broadcast %cst_296 : f32 to vector<2x128xf32>
    %994 = arith.cmpf olt, %992, %993 : vector<2x128xf32>
    %995 = arith.andi %987, %994 : vector<2x128xi1>
    %996 = arith.xori %959, %995 : vector<2x128xi1>
    %997 = math.sqrt %982 : vector<2x128xf32>
    %cst_297 = arith.constant 0.000000e+00 : f32
    %998 = vector.broadcast %cst_297 : f32 to vector<2x128xf32>
    %999 = arith.subf %998, %997 : vector<2x128xf32>
    %1000 = arith.select %996, %997, %999 : vector<2x128xi1>, vector<2x128xf32>
    %cst_298 = arith.constant 0.000000e+00 : f32
    %1001 = vector.broadcast %cst_298 : f32 to vector<2x128xf32>
    %1002 = arith.subf %1001, %1000 : vector<2x128xf32>
    %cst_299 = arith.constant 1.000000e+00 : f32
    %1003 = vector.broadcast %cst_299 : f32 to vector<2x128xf32>
    %1004 = arith.mulf %1002, %1003 : vector<2x128xf32>
    %1005 = math.exp %1004 : vector<2x128xf32>
    %cst_300 = arith.constant 1.000000e+00 : f32
    %1006 = vector.broadcast %cst_300 : f32 to vector<2x128xf32>
    %1007 = arith.addf %1006, %1005 : vector<2x128xf32>
    %1008 = tpu.reciprocal %1007 {approx = true} : vector<2x128xf32> -> vector<2x128xf32>
    %cst_301 = arith.constant 1.000000e+00 : f32
    %cst_302 = arith.constant 0.000000e+00 : f32
    %1009 = vector.broadcast %cst_301 : f32 to vector<2x128xf32>
    %1010 = vector.broadcast %cst_302 : f32 to vector<2x128xf32>
    %1011 = arith.select %996, %1009, %1010 : vector<2x128xi1>, vector<2x128xf32>
    %1012 = arith.mulf %1008, %653 : vector<2x128xf32>
    %1013 = vector.shape_cast %1012 : vector<2x128xf32> to vector<1x2x128xf32>
    %cst_303 = arith.constant dense<0.000000e+00> : vector<1xf32>
    %1014 = vector.multi_reduction <add>, %1013, %cst_303 [1, 2] : vector<1x2x128xf32> to vector<1xf32>
    %1015 = vector.shape_cast %1014 : vector<1xf32> to vector<1x1x1xf32>
    %1016 = vector.extract %1015[0, 0, 0] : f32 from vector<1x1x1xf32>
    %cst_304 = arith.constant 0.000000e+00 : f32
    %1017 = arith.addf %cst_304, %1016 : f32
    %1018 = vector.shape_cast %1008 : vector<2x128xf32> to vector<1x2x128xf32>
    %cst_305 = arith.constant dense<0.000000e+00> : vector<1xf32>
    %1019 = vector.multi_reduction <add>, %1018, %cst_305 [1, 2] : vector<1x2x128xf32> to vector<1xf32>
    %1020 = vector.shape_cast %1019 : vector<1xf32> to vector<1x1x1xf32>
    %1021 = vector.extract %1020[0, 0, 0] : f32 from vector<1x1x1xf32>
    %cst_306 = arith.constant 0.000000e+00 : f32
    %1022 = arith.addf %cst_306, %1021 : f32
    %1023 = arith.mulf %1011, %698 : vector<2x128xf32>
    %1024 = vector.shape_cast %1023 : vector<2x128xf32> to vector<1x2x128xf32>
    %cst_307 = arith.constant dense<0.000000e+00> : vector<1xf32>
    %1025 = vector.multi_reduction <add>, %1024, %cst_307 [1, 2] : vector<1x2x128xf32> to vector<1xf32>
    %1026 = vector.shape_cast %1025 : vector<1xf32> to vector<1x1x1xf32>
    %1027 = vector.extract %1026[0, 0, 0] : f32 from vector<1x1x1xf32>
    %cst_308 = arith.constant 0.000000e+00 : f32
    %1028 = arith.addf %cst_308, %1027 : f32
    %1029 = vector.shape_cast %1011 : vector<2x128xf32> to vector<1x2x128xf32>
    %cst_309 = arith.constant dense<0.000000e+00> : vector<1xf32>
    %1030 = vector.multi_reduction <add>, %1029, %cst_309 [1, 2] : vector<1x2x128xf32> to vector<1xf32>
    %1031 = vector.shape_cast %1030 : vector<1xf32> to vector<1x1x1xf32>
    %1032 = vector.extract %1031[0, 0, 0] : f32 from vector<1x1x1xf32>
    %cst_310 = arith.constant 0.000000e+00 : f32
    %1033 = arith.addf %cst_310, %1032 : f32
    %cst_311 = arith.constant 1.000000e+30 : f32
    %1034 = vector.broadcast %cst_311 : f32 to vector<2x128xf32>
    %false_312 = arith.constant false
    %1035 = vector.broadcast %false_312 : i1 to vector<2x128xi1>
    %1036 = vector.broadcast %168 : f32 to vector<2x128xf32>
    %1037 = arith.subf %691, %1036 : vector<2x128xf32>
    %1038 = vector.broadcast %193 : f32 to vector<2x128xf32>
    %1039 = arith.subf %694, %1038 : vector<2x128xf32>
    %1040 = vector.broadcast %229 : f32 to vector<2x128xf32>
    %1041 = arith.mulf %1037, %1040 : vector<2x128xf32>
    %1042 = vector.broadcast %230 : f32 to vector<2x128xf32>
    %1043 = arith.mulf %1039, %1042 : vector<2x128xf32>
    %1044 = arith.addf %1041, %1043 : vector<2x128xf32>
    %cst_313 = arith.constant 0.000000e+00 : f32
    %cst_314 = arith.constant 1.000000e+00 : f32
    %1045 = vector.broadcast %cst_313 : f32 to vector<2x128xf32>
    %1046 = arith.maximumf %1045, %1044 : vector<2x128xf32>
    %1047 = vector.broadcast %cst_314 : f32 to vector<2x128xf32>
    %1048 = arith.minimumf %1047, %1046 : vector<2x128xf32>
    %1049 = vector.broadcast %222 : f32 to vector<2x128xf32>
    %1050 = arith.mulf %1048, %1049 : vector<2x128xf32>
    %1051 = arith.subf %1037, %1050 : vector<2x128xf32>
    %1052 = vector.broadcast %223 : f32 to vector<2x128xf32>
    %1053 = arith.mulf %1048, %1052 : vector<2x128xf32>
    %1054 = arith.subf %1039, %1053 : vector<2x128xf32>
    %1055 = arith.mulf %1051, %1051 : vector<2x128xf32>
    %1056 = arith.mulf %1054, %1054 : vector<2x128xf32>
    %1057 = arith.addf %1055, %1056 : vector<2x128xf32>
    %1058 = arith.minimumf %1034, %1057 : vector<2x128xf32>
    %1059 = vector.broadcast %193 : f32 to vector<2x128xf32>
    %1060 = arith.cmpf ogt, %1059, %694 : vector<2x128xf32>
    %1061 = vector.broadcast %197 : f32 to vector<2x128xf32>
    %1062 = arith.cmpf ogt, %1061, %694 : vector<2x128xf32>
    %1063 = arith.xori %1060, %1062 : vector<2x128xi1>
    %1064 = vector.broadcast %233 : f32 to vector<2x128xf32>
    %1065 = arith.mulf %1037, %1064 : vector<2x128xf32>
    %1066 = vector.broadcast %234 : f32 to vector<2x128xf32>
    %1067 = arith.mulf %1039, %1066 : vector<2x128xf32>
    %1068 = arith.subf %1065, %1067 : vector<2x128xf32>
    %cst_315 = arith.constant 0.000000e+00 : f32
    %1069 = vector.broadcast %cst_315 : f32 to vector<2x128xf32>
    %1070 = arith.cmpf olt, %1068, %1069 : vector<2x128xf32>
    %1071 = arith.andi %1063, %1070 : vector<2x128xi1>
    %1072 = arith.xori %1035, %1071 : vector<2x128xi1>
    %1073 = vector.broadcast %171 : f32 to vector<2x128xf32>
    %1074 = arith.subf %691, %1073 : vector<2x128xf32>
    %1075 = vector.broadcast %197 : f32 to vector<2x128xf32>
    %1076 = arith.subf %694, %1075 : vector<2x128xf32>
    %1077 = vector.broadcast %242 : f32 to vector<2x128xf32>
    %1078 = arith.mulf %1074, %1077 : vector<2x128xf32>
    %1079 = vector.broadcast %243 : f32 to vector<2x128xf32>
    %1080 = arith.mulf %1076, %1079 : vector<2x128xf32>
    %1081 = arith.addf %1078, %1080 : vector<2x128xf32>
    %cst_316 = arith.constant 0.000000e+00 : f32
    %cst_317 = arith.constant 1.000000e+00 : f32
    %1082 = vector.broadcast %cst_316 : f32 to vector<2x128xf32>
    %1083 = arith.maximumf %1082, %1081 : vector<2x128xf32>
    %1084 = vector.broadcast %cst_317 : f32 to vector<2x128xf32>
    %1085 = arith.minimumf %1084, %1083 : vector<2x128xf32>
    %1086 = vector.broadcast %235 : f32 to vector<2x128xf32>
    %1087 = arith.mulf %1085, %1086 : vector<2x128xf32>
    %1088 = arith.subf %1074, %1087 : vector<2x128xf32>
    %1089 = vector.broadcast %236 : f32 to vector<2x128xf32>
    %1090 = arith.mulf %1085, %1089 : vector<2x128xf32>
    %1091 = arith.subf %1076, %1090 : vector<2x128xf32>
    %1092 = arith.mulf %1088, %1088 : vector<2x128xf32>
    %1093 = arith.mulf %1091, %1091 : vector<2x128xf32>
    %1094 = arith.addf %1092, %1093 : vector<2x128xf32>
    %1095 = arith.minimumf %1058, %1094 : vector<2x128xf32>
    %1096 = vector.broadcast %197 : f32 to vector<2x128xf32>
    %1097 = arith.cmpf ogt, %1096, %694 : vector<2x128xf32>
    %1098 = vector.broadcast %201 : f32 to vector<2x128xf32>
    %1099 = arith.cmpf ogt, %1098, %694 : vector<2x128xf32>
    %1100 = arith.xori %1097, %1099 : vector<2x128xi1>
    %1101 = vector.broadcast %246 : f32 to vector<2x128xf32>
    %1102 = arith.mulf %1074, %1101 : vector<2x128xf32>
    %1103 = vector.broadcast %247 : f32 to vector<2x128xf32>
    %1104 = arith.mulf %1076, %1103 : vector<2x128xf32>
    %1105 = arith.subf %1102, %1104 : vector<2x128xf32>
    %cst_318 = arith.constant 0.000000e+00 : f32
    %1106 = vector.broadcast %cst_318 : f32 to vector<2x128xf32>
    %1107 = arith.cmpf olt, %1105, %1106 : vector<2x128xf32>
    %1108 = arith.andi %1100, %1107 : vector<2x128xi1>
    %1109 = arith.xori %1072, %1108 : vector<2x128xi1>
    %1110 = vector.broadcast %174 : f32 to vector<2x128xf32>
    %1111 = arith.subf %691, %1110 : vector<2x128xf32>
    %1112 = vector.broadcast %201 : f32 to vector<2x128xf32>
    %1113 = arith.subf %694, %1112 : vector<2x128xf32>
    %1114 = vector.broadcast %255 : f32 to vector<2x128xf32>
    %1115 = arith.mulf %1111, %1114 : vector<2x128xf32>
    %1116 = vector.broadcast %256 : f32 to vector<2x128xf32>
    %1117 = arith.mulf %1113, %1116 : vector<2x128xf32>
    %1118 = arith.addf %1115, %1117 : vector<2x128xf32>
    %cst_319 = arith.constant 0.000000e+00 : f32
    %cst_320 = arith.constant 1.000000e+00 : f32
    %1119 = vector.broadcast %cst_319 : f32 to vector<2x128xf32>
    %1120 = arith.maximumf %1119, %1118 : vector<2x128xf32>
    %1121 = vector.broadcast %cst_320 : f32 to vector<2x128xf32>
    %1122 = arith.minimumf %1121, %1120 : vector<2x128xf32>
    %1123 = vector.broadcast %248 : f32 to vector<2x128xf32>
    %1124 = arith.mulf %1122, %1123 : vector<2x128xf32>
    %1125 = arith.subf %1111, %1124 : vector<2x128xf32>
    %1126 = vector.broadcast %249 : f32 to vector<2x128xf32>
    %1127 = arith.mulf %1122, %1126 : vector<2x128xf32>
    %1128 = arith.subf %1113, %1127 : vector<2x128xf32>
    %1129 = arith.mulf %1125, %1125 : vector<2x128xf32>
    %1130 = arith.mulf %1128, %1128 : vector<2x128xf32>
    %1131 = arith.addf %1129, %1130 : vector<2x128xf32>
    %1132 = arith.minimumf %1095, %1131 : vector<2x128xf32>
    %1133 = vector.broadcast %201 : f32 to vector<2x128xf32>
    %1134 = arith.cmpf ogt, %1133, %694 : vector<2x128xf32>
    %1135 = vector.broadcast %205 : f32 to vector<2x128xf32>
    %1136 = arith.cmpf ogt, %1135, %694 : vector<2x128xf32>
    %1137 = arith.xori %1134, %1136 : vector<2x128xi1>
    %1138 = vector.broadcast %259 : f32 to vector<2x128xf32>
    %1139 = arith.mulf %1111, %1138 : vector<2x128xf32>
    %1140 = vector.broadcast %260 : f32 to vector<2x128xf32>
    %1141 = arith.mulf %1113, %1140 : vector<2x128xf32>
    %1142 = arith.subf %1139, %1141 : vector<2x128xf32>
    %cst_321 = arith.constant 0.000000e+00 : f32
    %1143 = vector.broadcast %cst_321 : f32 to vector<2x128xf32>
    %1144 = arith.cmpf olt, %1142, %1143 : vector<2x128xf32>
    %1145 = arith.andi %1137, %1144 : vector<2x128xi1>
    %1146 = arith.xori %1109, %1145 : vector<2x128xi1>
    %1147 = vector.broadcast %177 : f32 to vector<2x128xf32>
    %1148 = arith.subf %691, %1147 : vector<2x128xf32>
    %1149 = vector.broadcast %205 : f32 to vector<2x128xf32>
    %1150 = arith.subf %694, %1149 : vector<2x128xf32>
    %1151 = vector.broadcast %268 : f32 to vector<2x128xf32>
    %1152 = arith.mulf %1148, %1151 : vector<2x128xf32>
    %1153 = vector.broadcast %269 : f32 to vector<2x128xf32>
    %1154 = arith.mulf %1150, %1153 : vector<2x128xf32>
    %1155 = arith.addf %1152, %1154 : vector<2x128xf32>
    %cst_322 = arith.constant 0.000000e+00 : f32
    %cst_323 = arith.constant 1.000000e+00 : f32
    %1156 = vector.broadcast %cst_322 : f32 to vector<2x128xf32>
    %1157 = arith.maximumf %1156, %1155 : vector<2x128xf32>
    %1158 = vector.broadcast %cst_323 : f32 to vector<2x128xf32>
    %1159 = arith.minimumf %1158, %1157 : vector<2x128xf32>
    %1160 = vector.broadcast %261 : f32 to vector<2x128xf32>
    %1161 = arith.mulf %1159, %1160 : vector<2x128xf32>
    %1162 = arith.subf %1148, %1161 : vector<2x128xf32>
    %1163 = vector.broadcast %262 : f32 to vector<2x128xf32>
    %1164 = arith.mulf %1159, %1163 : vector<2x128xf32>
    %1165 = arith.subf %1150, %1164 : vector<2x128xf32>
    %1166 = arith.mulf %1162, %1162 : vector<2x128xf32>
    %1167 = arith.mulf %1165, %1165 : vector<2x128xf32>
    %1168 = arith.addf %1166, %1167 : vector<2x128xf32>
    %1169 = arith.minimumf %1132, %1168 : vector<2x128xf32>
    %1170 = vector.broadcast %205 : f32 to vector<2x128xf32>
    %1171 = arith.cmpf ogt, %1170, %694 : vector<2x128xf32>
    %1172 = vector.broadcast %209 : f32 to vector<2x128xf32>
    %1173 = arith.cmpf ogt, %1172, %694 : vector<2x128xf32>
    %1174 = arith.xori %1171, %1173 : vector<2x128xi1>
    %1175 = vector.broadcast %272 : f32 to vector<2x128xf32>
    %1176 = arith.mulf %1148, %1175 : vector<2x128xf32>
    %1177 = vector.broadcast %273 : f32 to vector<2x128xf32>
    %1178 = arith.mulf %1150, %1177 : vector<2x128xf32>
    %1179 = arith.subf %1176, %1178 : vector<2x128xf32>
    %cst_324 = arith.constant 0.000000e+00 : f32
    %1180 = vector.broadcast %cst_324 : f32 to vector<2x128xf32>
    %1181 = arith.cmpf olt, %1179, %1180 : vector<2x128xf32>
    %1182 = arith.andi %1174, %1181 : vector<2x128xi1>
    %1183 = arith.xori %1146, %1182 : vector<2x128xi1>
    %1184 = vector.broadcast %180 : f32 to vector<2x128xf32>
    %1185 = arith.subf %691, %1184 : vector<2x128xf32>
    %1186 = vector.broadcast %209 : f32 to vector<2x128xf32>
    %1187 = arith.subf %694, %1186 : vector<2x128xf32>
    %1188 = vector.broadcast %281 : f32 to vector<2x128xf32>
    %1189 = arith.mulf %1185, %1188 : vector<2x128xf32>
    %1190 = vector.broadcast %282 : f32 to vector<2x128xf32>
    %1191 = arith.mulf %1187, %1190 : vector<2x128xf32>
    %1192 = arith.addf %1189, %1191 : vector<2x128xf32>
    %cst_325 = arith.constant 0.000000e+00 : f32
    %cst_326 = arith.constant 1.000000e+00 : f32
    %1193 = vector.broadcast %cst_325 : f32 to vector<2x128xf32>
    %1194 = arith.maximumf %1193, %1192 : vector<2x128xf32>
    %1195 = vector.broadcast %cst_326 : f32 to vector<2x128xf32>
    %1196 = arith.minimumf %1195, %1194 : vector<2x128xf32>
    %1197 = vector.broadcast %274 : f32 to vector<2x128xf32>
    %1198 = arith.mulf %1196, %1197 : vector<2x128xf32>
    %1199 = arith.subf %1185, %1198 : vector<2x128xf32>
    %1200 = vector.broadcast %275 : f32 to vector<2x128xf32>
    %1201 = arith.mulf %1196, %1200 : vector<2x128xf32>
    %1202 = arith.subf %1187, %1201 : vector<2x128xf32>
    %1203 = arith.mulf %1199, %1199 : vector<2x128xf32>
    %1204 = arith.mulf %1202, %1202 : vector<2x128xf32>
    %1205 = arith.addf %1203, %1204 : vector<2x128xf32>
    %1206 = arith.minimumf %1169, %1205 : vector<2x128xf32>
    %1207 = vector.broadcast %209 : f32 to vector<2x128xf32>
    %1208 = arith.cmpf ogt, %1207, %694 : vector<2x128xf32>
    %1209 = vector.broadcast %213 : f32 to vector<2x128xf32>
    %1210 = arith.cmpf ogt, %1209, %694 : vector<2x128xf32>
    %1211 = arith.xori %1208, %1210 : vector<2x128xi1>
    %1212 = vector.broadcast %285 : f32 to vector<2x128xf32>
    %1213 = arith.mulf %1185, %1212 : vector<2x128xf32>
    %1214 = vector.broadcast %286 : f32 to vector<2x128xf32>
    %1215 = arith.mulf %1187, %1214 : vector<2x128xf32>
    %1216 = arith.subf %1213, %1215 : vector<2x128xf32>
    %cst_327 = arith.constant 0.000000e+00 : f32
    %1217 = vector.broadcast %cst_327 : f32 to vector<2x128xf32>
    %1218 = arith.cmpf olt, %1216, %1217 : vector<2x128xf32>
    %1219 = arith.andi %1211, %1218 : vector<2x128xi1>
    %1220 = arith.xori %1183, %1219 : vector<2x128xi1>
    %1221 = vector.broadcast %183 : f32 to vector<2x128xf32>
    %1222 = arith.subf %691, %1221 : vector<2x128xf32>
    %1223 = vector.broadcast %213 : f32 to vector<2x128xf32>
    %1224 = arith.subf %694, %1223 : vector<2x128xf32>
    %1225 = vector.broadcast %294 : f32 to vector<2x128xf32>
    %1226 = arith.mulf %1222, %1225 : vector<2x128xf32>
    %1227 = vector.broadcast %295 : f32 to vector<2x128xf32>
    %1228 = arith.mulf %1224, %1227 : vector<2x128xf32>
    %1229 = arith.addf %1226, %1228 : vector<2x128xf32>
    %cst_328 = arith.constant 0.000000e+00 : f32
    %cst_329 = arith.constant 1.000000e+00 : f32
    %1230 = vector.broadcast %cst_328 : f32 to vector<2x128xf32>
    %1231 = arith.maximumf %1230, %1229 : vector<2x128xf32>
    %1232 = vector.broadcast %cst_329 : f32 to vector<2x128xf32>
    %1233 = arith.minimumf %1232, %1231 : vector<2x128xf32>
    %1234 = vector.broadcast %287 : f32 to vector<2x128xf32>
    %1235 = arith.mulf %1233, %1234 : vector<2x128xf32>
    %1236 = arith.subf %1222, %1235 : vector<2x128xf32>
    %1237 = vector.broadcast %288 : f32 to vector<2x128xf32>
    %1238 = arith.mulf %1233, %1237 : vector<2x128xf32>
    %1239 = arith.subf %1224, %1238 : vector<2x128xf32>
    %1240 = arith.mulf %1236, %1236 : vector<2x128xf32>
    %1241 = arith.mulf %1239, %1239 : vector<2x128xf32>
    %1242 = arith.addf %1240, %1241 : vector<2x128xf32>
    %1243 = arith.minimumf %1206, %1242 : vector<2x128xf32>
    %1244 = vector.broadcast %213 : f32 to vector<2x128xf32>
    %1245 = arith.cmpf ogt, %1244, %694 : vector<2x128xf32>
    %1246 = vector.broadcast %217 : f32 to vector<2x128xf32>
    %1247 = arith.cmpf ogt, %1246, %694 : vector<2x128xf32>
    %1248 = arith.xori %1245, %1247 : vector<2x128xi1>
    %1249 = vector.broadcast %298 : f32 to vector<2x128xf32>
    %1250 = arith.mulf %1222, %1249 : vector<2x128xf32>
    %1251 = vector.broadcast %299 : f32 to vector<2x128xf32>
    %1252 = arith.mulf %1224, %1251 : vector<2x128xf32>
    %1253 = arith.subf %1250, %1252 : vector<2x128xf32>
    %cst_330 = arith.constant 0.000000e+00 : f32
    %1254 = vector.broadcast %cst_330 : f32 to vector<2x128xf32>
    %1255 = arith.cmpf olt, %1253, %1254 : vector<2x128xf32>
    %1256 = arith.andi %1248, %1255 : vector<2x128xi1>
    %1257 = arith.xori %1220, %1256 : vector<2x128xi1>
    %1258 = vector.broadcast %186 : f32 to vector<2x128xf32>
    %1259 = arith.subf %691, %1258 : vector<2x128xf32>
    %1260 = vector.broadcast %217 : f32 to vector<2x128xf32>
    %1261 = arith.subf %694, %1260 : vector<2x128xf32>
    %1262 = vector.broadcast %307 : f32 to vector<2x128xf32>
    %1263 = arith.mulf %1259, %1262 : vector<2x128xf32>
    %1264 = vector.broadcast %308 : f32 to vector<2x128xf32>
    %1265 = arith.mulf %1261, %1264 : vector<2x128xf32>
    %1266 = arith.addf %1263, %1265 : vector<2x128xf32>
    %cst_331 = arith.constant 0.000000e+00 : f32
    %cst_332 = arith.constant 1.000000e+00 : f32
    %1267 = vector.broadcast %cst_331 : f32 to vector<2x128xf32>
    %1268 = arith.maximumf %1267, %1266 : vector<2x128xf32>
    %1269 = vector.broadcast %cst_332 : f32 to vector<2x128xf32>
    %1270 = arith.minimumf %1269, %1268 : vector<2x128xf32>
    %1271 = vector.broadcast %300 : f32 to vector<2x128xf32>
    %1272 = arith.mulf %1270, %1271 : vector<2x128xf32>
    %1273 = arith.subf %1259, %1272 : vector<2x128xf32>
    %1274 = vector.broadcast %301 : f32 to vector<2x128xf32>
    %1275 = arith.mulf %1270, %1274 : vector<2x128xf32>
    %1276 = arith.subf %1261, %1275 : vector<2x128xf32>
    %1277 = arith.mulf %1273, %1273 : vector<2x128xf32>
    %1278 = arith.mulf %1276, %1276 : vector<2x128xf32>
    %1279 = arith.addf %1277, %1278 : vector<2x128xf32>
    %1280 = arith.minimumf %1243, %1279 : vector<2x128xf32>
    %1281 = vector.broadcast %217 : f32 to vector<2x128xf32>
    %1282 = arith.cmpf ogt, %1281, %694 : vector<2x128xf32>
    %1283 = vector.broadcast %221 : f32 to vector<2x128xf32>
    %1284 = arith.cmpf ogt, %1283, %694 : vector<2x128xf32>
    %1285 = arith.xori %1282, %1284 : vector<2x128xi1>
    %1286 = vector.broadcast %311 : f32 to vector<2x128xf32>
    %1287 = arith.mulf %1259, %1286 : vector<2x128xf32>
    %1288 = vector.broadcast %312 : f32 to vector<2x128xf32>
    %1289 = arith.mulf %1261, %1288 : vector<2x128xf32>
    %1290 = arith.subf %1287, %1289 : vector<2x128xf32>
    %cst_333 = arith.constant 0.000000e+00 : f32
    %1291 = vector.broadcast %cst_333 : f32 to vector<2x128xf32>
    %1292 = arith.cmpf olt, %1290, %1291 : vector<2x128xf32>
    %1293 = arith.andi %1285, %1292 : vector<2x128xi1>
    %1294 = arith.xori %1257, %1293 : vector<2x128xi1>
    %1295 = vector.broadcast %189 : f32 to vector<2x128xf32>
    %1296 = arith.subf %691, %1295 : vector<2x128xf32>
    %1297 = vector.broadcast %221 : f32 to vector<2x128xf32>
    %1298 = arith.subf %694, %1297 : vector<2x128xf32>
    %1299 = vector.broadcast %320 : f32 to vector<2x128xf32>
    %1300 = arith.mulf %1296, %1299 : vector<2x128xf32>
    %1301 = vector.broadcast %321 : f32 to vector<2x128xf32>
    %1302 = arith.mulf %1298, %1301 : vector<2x128xf32>
    %1303 = arith.addf %1300, %1302 : vector<2x128xf32>
    %cst_334 = arith.constant 0.000000e+00 : f32
    %cst_335 = arith.constant 1.000000e+00 : f32
    %1304 = vector.broadcast %cst_334 : f32 to vector<2x128xf32>
    %1305 = arith.maximumf %1304, %1303 : vector<2x128xf32>
    %1306 = vector.broadcast %cst_335 : f32 to vector<2x128xf32>
    %1307 = arith.minimumf %1306, %1305 : vector<2x128xf32>
    %1308 = vector.broadcast %313 : f32 to vector<2x128xf32>
    %1309 = arith.mulf %1307, %1308 : vector<2x128xf32>
    %1310 = arith.subf %1296, %1309 : vector<2x128xf32>
    %1311 = vector.broadcast %314 : f32 to vector<2x128xf32>
    %1312 = arith.mulf %1307, %1311 : vector<2x128xf32>
    %1313 = arith.subf %1298, %1312 : vector<2x128xf32>
    %1314 = arith.mulf %1310, %1310 : vector<2x128xf32>
    %1315 = arith.mulf %1313, %1313 : vector<2x128xf32>
    %1316 = arith.addf %1314, %1315 : vector<2x128xf32>
    %1317 = arith.minimumf %1280, %1316 : vector<2x128xf32>
    %1318 = vector.broadcast %221 : f32 to vector<2x128xf32>
    %1319 = arith.cmpf ogt, %1318, %694 : vector<2x128xf32>
    %1320 = vector.broadcast %193 : f32 to vector<2x128xf32>
    %1321 = arith.cmpf ogt, %1320, %694 : vector<2x128xf32>
    %1322 = arith.xori %1319, %1321 : vector<2x128xi1>
    %1323 = vector.broadcast %324 : f32 to vector<2x128xf32>
    %1324 = arith.mulf %1296, %1323 : vector<2x128xf32>
    %1325 = vector.broadcast %325 : f32 to vector<2x128xf32>
    %1326 = arith.mulf %1298, %1325 : vector<2x128xf32>
    %1327 = arith.subf %1324, %1326 : vector<2x128xf32>
    %cst_336 = arith.constant 0.000000e+00 : f32
    %1328 = vector.broadcast %cst_336 : f32 to vector<2x128xf32>
    %1329 = arith.cmpf olt, %1327, %1328 : vector<2x128xf32>
    %1330 = arith.andi %1322, %1329 : vector<2x128xi1>
    %1331 = arith.xori %1294, %1330 : vector<2x128xi1>
    %1332 = math.sqrt %1317 : vector<2x128xf32>
    %cst_337 = arith.constant 0.000000e+00 : f32
    %1333 = vector.broadcast %cst_337 : f32 to vector<2x128xf32>
    %1334 = arith.subf %1333, %1332 : vector<2x128xf32>
    %1335 = arith.select %1331, %1332, %1334 : vector<2x128xi1>, vector<2x128xf32>
    %cst_338 = arith.constant 0.000000e+00 : f32
    %1336 = vector.broadcast %cst_338 : f32 to vector<2x128xf32>
    %1337 = arith.subf %1336, %1335 : vector<2x128xf32>
    %cst_339 = arith.constant 1.000000e+00 : f32
    %1338 = vector.broadcast %cst_339 : f32 to vector<2x128xf32>
    %1339 = arith.mulf %1337, %1338 : vector<2x128xf32>
    %1340 = math.exp %1339 : vector<2x128xf32>
    %cst_340 = arith.constant 1.000000e+00 : f32
    %1341 = vector.broadcast %cst_340 : f32 to vector<2x128xf32>
    %1342 = arith.addf %1341, %1340 : vector<2x128xf32>
    %1343 = tpu.reciprocal %1342 {approx = true} : vector<2x128xf32> -> vector<2x128xf32>
    %cst_341 = arith.constant 1.000000e+00 : f32
    %cst_342 = arith.constant 0.000000e+00 : f32
    %1344 = vector.broadcast %cst_341 : f32 to vector<2x128xf32>
    %1345 = vector.broadcast %cst_342 : f32 to vector<2x128xf32>
    %1346 = arith.select %1331, %1344, %1345 : vector<2x128xi1>, vector<2x128xf32>
    %1347 = arith.mulf %1343, %653 : vector<2x128xf32>
    %1348 = vector.shape_cast %1347 : vector<2x128xf32> to vector<1x2x128xf32>
    %cst_343 = arith.constant dense<0.000000e+00> : vector<1xf32>
    %1349 = vector.multi_reduction <add>, %1348, %cst_343 [1, 2] : vector<1x2x128xf32> to vector<1xf32>
    %1350 = vector.shape_cast %1349 : vector<1xf32> to vector<1x1x1xf32>
    %1351 = vector.extract %1350[0, 0, 0] : f32 from vector<1x1x1xf32>
    %cst_344 = arith.constant 0.000000e+00 : f32
    %1352 = arith.addf %cst_344, %1351 : f32
    %1353 = vector.shape_cast %1343 : vector<2x128xf32> to vector<1x2x128xf32>
    %cst_345 = arith.constant dense<0.000000e+00> : vector<1xf32>
    %1354 = vector.multi_reduction <add>, %1353, %cst_345 [1, 2] : vector<1x2x128xf32> to vector<1xf32>
    %1355 = vector.shape_cast %1354 : vector<1xf32> to vector<1x1x1xf32>
    %1356 = vector.extract %1355[0, 0, 0] : f32 from vector<1x1x1xf32>
    %cst_346 = arith.constant 0.000000e+00 : f32
    %1357 = arith.addf %cst_346, %1356 : f32
    %1358 = arith.mulf %1346, %698 : vector<2x128xf32>
    %1359 = vector.shape_cast %1358 : vector<2x128xf32> to vector<1x2x128xf32>
    %cst_347 = arith.constant dense<0.000000e+00> : vector<1xf32>
    %1360 = vector.multi_reduction <add>, %1359, %cst_347 [1, 2] : vector<1x2x128xf32> to vector<1xf32>
    %1361 = vector.shape_cast %1360 : vector<1xf32> to vector<1x1x1xf32>
    %1362 = vector.extract %1361[0, 0, 0] : f32 from vector<1x1x1xf32>
    %cst_348 = arith.constant 0.000000e+00 : f32
    %1363 = arith.addf %cst_348, %1362 : f32
    %1364 = vector.shape_cast %1346 : vector<2x128xf32> to vector<1x2x128xf32>
    %cst_349 = arith.constant dense<0.000000e+00> : vector<1xf32>
    %1365 = vector.multi_reduction <add>, %1364, %cst_349 [1, 2] : vector<1x2x128xf32> to vector<1xf32>
    %1366 = vector.shape_cast %1365 : vector<1xf32> to vector<1x1x1xf32>
    %1367 = vector.extract %1366[0, 0, 0] : f32 from vector<1x1x1xf32>
    %cst_350 = arith.constant 0.000000e+00 : f32
    %1368 = arith.addf %cst_350, %1367 : f32
    %cst_351 = arith.constant 1.000000e+30 : f32
    %1369 = vector.broadcast %cst_351 : f32 to vector<2x128xf32>
    %false_352 = arith.constant false
    %1370 = vector.broadcast %false_352 : i1 to vector<2x128xi1>
    %1371 = vector.broadcast %331 : f32 to vector<2x128xf32>
    %1372 = arith.subf %691, %1371 : vector<2x128xf32>
    %1373 = vector.broadcast %356 : f32 to vector<2x128xf32>
    %1374 = arith.subf %694, %1373 : vector<2x128xf32>
    %1375 = vector.broadcast %392 : f32 to vector<2x128xf32>
    %1376 = arith.mulf %1372, %1375 : vector<2x128xf32>
    %1377 = vector.broadcast %393 : f32 to vector<2x128xf32>
    %1378 = arith.mulf %1374, %1377 : vector<2x128xf32>
    %1379 = arith.addf %1376, %1378 : vector<2x128xf32>
    %cst_353 = arith.constant 0.000000e+00 : f32
    %cst_354 = arith.constant 1.000000e+00 : f32
    %1380 = vector.broadcast %cst_353 : f32 to vector<2x128xf32>
    %1381 = arith.maximumf %1380, %1379 : vector<2x128xf32>
    %1382 = vector.broadcast %cst_354 : f32 to vector<2x128xf32>
    %1383 = arith.minimumf %1382, %1381 : vector<2x128xf32>
    %1384 = vector.broadcast %385 : f32 to vector<2x128xf32>
    %1385 = arith.mulf %1383, %1384 : vector<2x128xf32>
    %1386 = arith.subf %1372, %1385 : vector<2x128xf32>
    %1387 = vector.broadcast %386 : f32 to vector<2x128xf32>
    %1388 = arith.mulf %1383, %1387 : vector<2x128xf32>
    %1389 = arith.subf %1374, %1388 : vector<2x128xf32>
    %1390 = arith.mulf %1386, %1386 : vector<2x128xf32>
    %1391 = arith.mulf %1389, %1389 : vector<2x128xf32>
    %1392 = arith.addf %1390, %1391 : vector<2x128xf32>
    %1393 = arith.minimumf %1369, %1392 : vector<2x128xf32>
    %1394 = vector.broadcast %356 : f32 to vector<2x128xf32>
    %1395 = arith.cmpf ogt, %1394, %694 : vector<2x128xf32>
    %1396 = vector.broadcast %360 : f32 to vector<2x128xf32>
    %1397 = arith.cmpf ogt, %1396, %694 : vector<2x128xf32>
    %1398 = arith.xori %1395, %1397 : vector<2x128xi1>
    %1399 = vector.broadcast %396 : f32 to vector<2x128xf32>
    %1400 = arith.mulf %1372, %1399 : vector<2x128xf32>
    %1401 = vector.broadcast %397 : f32 to vector<2x128xf32>
    %1402 = arith.mulf %1374, %1401 : vector<2x128xf32>
    %1403 = arith.subf %1400, %1402 : vector<2x128xf32>
    %cst_355 = arith.constant 0.000000e+00 : f32
    %1404 = vector.broadcast %cst_355 : f32 to vector<2x128xf32>
    %1405 = arith.cmpf olt, %1403, %1404 : vector<2x128xf32>
    %1406 = arith.andi %1398, %1405 : vector<2x128xi1>
    %1407 = arith.xori %1370, %1406 : vector<2x128xi1>
    %1408 = vector.broadcast %334 : f32 to vector<2x128xf32>
    %1409 = arith.subf %691, %1408 : vector<2x128xf32>
    %1410 = vector.broadcast %360 : f32 to vector<2x128xf32>
    %1411 = arith.subf %694, %1410 : vector<2x128xf32>
    %1412 = vector.broadcast %405 : f32 to vector<2x128xf32>
    %1413 = arith.mulf %1409, %1412 : vector<2x128xf32>
    %1414 = vector.broadcast %406 : f32 to vector<2x128xf32>
    %1415 = arith.mulf %1411, %1414 : vector<2x128xf32>
    %1416 = arith.addf %1413, %1415 : vector<2x128xf32>
    %cst_356 = arith.constant 0.000000e+00 : f32
    %cst_357 = arith.constant 1.000000e+00 : f32
    %1417 = vector.broadcast %cst_356 : f32 to vector<2x128xf32>
    %1418 = arith.maximumf %1417, %1416 : vector<2x128xf32>
    %1419 = vector.broadcast %cst_357 : f32 to vector<2x128xf32>
    %1420 = arith.minimumf %1419, %1418 : vector<2x128xf32>
    %1421 = vector.broadcast %398 : f32 to vector<2x128xf32>
    %1422 = arith.mulf %1420, %1421 : vector<2x128xf32>
    %1423 = arith.subf %1409, %1422 : vector<2x128xf32>
    %1424 = vector.broadcast %399 : f32 to vector<2x128xf32>
    %1425 = arith.mulf %1420, %1424 : vector<2x128xf32>
    %1426 = arith.subf %1411, %1425 : vector<2x128xf32>
    %1427 = arith.mulf %1423, %1423 : vector<2x128xf32>
    %1428 = arith.mulf %1426, %1426 : vector<2x128xf32>
    %1429 = arith.addf %1427, %1428 : vector<2x128xf32>
    %1430 = arith.minimumf %1393, %1429 : vector<2x128xf32>
    %1431 = vector.broadcast %360 : f32 to vector<2x128xf32>
    %1432 = arith.cmpf ogt, %1431, %694 : vector<2x128xf32>
    %1433 = vector.broadcast %364 : f32 to vector<2x128xf32>
    %1434 = arith.cmpf ogt, %1433, %694 : vector<2x128xf32>
    %1435 = arith.xori %1432, %1434 : vector<2x128xi1>
    %1436 = vector.broadcast %409 : f32 to vector<2x128xf32>
    %1437 = arith.mulf %1409, %1436 : vector<2x128xf32>
    %1438 = vector.broadcast %410 : f32 to vector<2x128xf32>
    %1439 = arith.mulf %1411, %1438 : vector<2x128xf32>
    %1440 = arith.subf %1437, %1439 : vector<2x128xf32>
    %cst_358 = arith.constant 0.000000e+00 : f32
    %1441 = vector.broadcast %cst_358 : f32 to vector<2x128xf32>
    %1442 = arith.cmpf olt, %1440, %1441 : vector<2x128xf32>
    %1443 = arith.andi %1435, %1442 : vector<2x128xi1>
    %1444 = arith.xori %1407, %1443 : vector<2x128xi1>
    %1445 = vector.broadcast %337 : f32 to vector<2x128xf32>
    %1446 = arith.subf %691, %1445 : vector<2x128xf32>
    %1447 = vector.broadcast %364 : f32 to vector<2x128xf32>
    %1448 = arith.subf %694, %1447 : vector<2x128xf32>
    %1449 = vector.broadcast %418 : f32 to vector<2x128xf32>
    %1450 = arith.mulf %1446, %1449 : vector<2x128xf32>
    %1451 = vector.broadcast %419 : f32 to vector<2x128xf32>
    %1452 = arith.mulf %1448, %1451 : vector<2x128xf32>
    %1453 = arith.addf %1450, %1452 : vector<2x128xf32>
    %cst_359 = arith.constant 0.000000e+00 : f32
    %cst_360 = arith.constant 1.000000e+00 : f32
    %1454 = vector.broadcast %cst_359 : f32 to vector<2x128xf32>
    %1455 = arith.maximumf %1454, %1453 : vector<2x128xf32>
    %1456 = vector.broadcast %cst_360 : f32 to vector<2x128xf32>
    %1457 = arith.minimumf %1456, %1455 : vector<2x128xf32>
    %1458 = vector.broadcast %411 : f32 to vector<2x128xf32>
    %1459 = arith.mulf %1457, %1458 : vector<2x128xf32>
    %1460 = arith.subf %1446, %1459 : vector<2x128xf32>
    %1461 = vector.broadcast %412 : f32 to vector<2x128xf32>
    %1462 = arith.mulf %1457, %1461 : vector<2x128xf32>
    %1463 = arith.subf %1448, %1462 : vector<2x128xf32>
    %1464 = arith.mulf %1460, %1460 : vector<2x128xf32>
    %1465 = arith.mulf %1463, %1463 : vector<2x128xf32>
    %1466 = arith.addf %1464, %1465 : vector<2x128xf32>
    %1467 = arith.minimumf %1430, %1466 : vector<2x128xf32>
    %1468 = vector.broadcast %364 : f32 to vector<2x128xf32>
    %1469 = arith.cmpf ogt, %1468, %694 : vector<2x128xf32>
    %1470 = vector.broadcast %368 : f32 to vector<2x128xf32>
    %1471 = arith.cmpf ogt, %1470, %694 : vector<2x128xf32>
    %1472 = arith.xori %1469, %1471 : vector<2x128xi1>
    %1473 = vector.broadcast %422 : f32 to vector<2x128xf32>
    %1474 = arith.mulf %1446, %1473 : vector<2x128xf32>
    %1475 = vector.broadcast %423 : f32 to vector<2x128xf32>
    %1476 = arith.mulf %1448, %1475 : vector<2x128xf32>
    %1477 = arith.subf %1474, %1476 : vector<2x128xf32>
    %cst_361 = arith.constant 0.000000e+00 : f32
    %1478 = vector.broadcast %cst_361 : f32 to vector<2x128xf32>
    %1479 = arith.cmpf olt, %1477, %1478 : vector<2x128xf32>
    %1480 = arith.andi %1472, %1479 : vector<2x128xi1>
    %1481 = arith.xori %1444, %1480 : vector<2x128xi1>
    %1482 = vector.broadcast %340 : f32 to vector<2x128xf32>
    %1483 = arith.subf %691, %1482 : vector<2x128xf32>
    %1484 = vector.broadcast %368 : f32 to vector<2x128xf32>
    %1485 = arith.subf %694, %1484 : vector<2x128xf32>
    %1486 = vector.broadcast %431 : f32 to vector<2x128xf32>
    %1487 = arith.mulf %1483, %1486 : vector<2x128xf32>
    %1488 = vector.broadcast %432 : f32 to vector<2x128xf32>
    %1489 = arith.mulf %1485, %1488 : vector<2x128xf32>
    %1490 = arith.addf %1487, %1489 : vector<2x128xf32>
    %cst_362 = arith.constant 0.000000e+00 : f32
    %cst_363 = arith.constant 1.000000e+00 : f32
    %1491 = vector.broadcast %cst_362 : f32 to vector<2x128xf32>
    %1492 = arith.maximumf %1491, %1490 : vector<2x128xf32>
    %1493 = vector.broadcast %cst_363 : f32 to vector<2x128xf32>
    %1494 = arith.minimumf %1493, %1492 : vector<2x128xf32>
    %1495 = vector.broadcast %424 : f32 to vector<2x128xf32>
    %1496 = arith.mulf %1494, %1495 : vector<2x128xf32>
    %1497 = arith.subf %1483, %1496 : vector<2x128xf32>
    %1498 = vector.broadcast %425 : f32 to vector<2x128xf32>
    %1499 = arith.mulf %1494, %1498 : vector<2x128xf32>
    %1500 = arith.subf %1485, %1499 : vector<2x128xf32>
    %1501 = arith.mulf %1497, %1497 : vector<2x128xf32>
    %1502 = arith.mulf %1500, %1500 : vector<2x128xf32>
    %1503 = arith.addf %1501, %1502 : vector<2x128xf32>
    %1504 = arith.minimumf %1467, %1503 : vector<2x128xf32>
    %1505 = vector.broadcast %368 : f32 to vector<2x128xf32>
    %1506 = arith.cmpf ogt, %1505, %694 : vector<2x128xf32>
    %1507 = vector.broadcast %372 : f32 to vector<2x128xf32>
    %1508 = arith.cmpf ogt, %1507, %694 : vector<2x128xf32>
    %1509 = arith.xori %1506, %1508 : vector<2x128xi1>
    %1510 = vector.broadcast %435 : f32 to vector<2x128xf32>
    %1511 = arith.mulf %1483, %1510 : vector<2x128xf32>
    %1512 = vector.broadcast %436 : f32 to vector<2x128xf32>
    %1513 = arith.mulf %1485, %1512 : vector<2x128xf32>
    %1514 = arith.subf %1511, %1513 : vector<2x128xf32>
    %cst_364 = arith.constant 0.000000e+00 : f32
    %1515 = vector.broadcast %cst_364 : f32 to vector<2x128xf32>
    %1516 = arith.cmpf olt, %1514, %1515 : vector<2x128xf32>
    %1517 = arith.andi %1509, %1516 : vector<2x128xi1>
    %1518 = arith.xori %1481, %1517 : vector<2x128xi1>
    %1519 = vector.broadcast %343 : f32 to vector<2x128xf32>
    %1520 = arith.subf %691, %1519 : vector<2x128xf32>
    %1521 = vector.broadcast %372 : f32 to vector<2x128xf32>
    %1522 = arith.subf %694, %1521 : vector<2x128xf32>
    %1523 = vector.broadcast %444 : f32 to vector<2x128xf32>
    %1524 = arith.mulf %1520, %1523 : vector<2x128xf32>
    %1525 = vector.broadcast %445 : f32 to vector<2x128xf32>
    %1526 = arith.mulf %1522, %1525 : vector<2x128xf32>
    %1527 = arith.addf %1524, %1526 : vector<2x128xf32>
    %cst_365 = arith.constant 0.000000e+00 : f32
    %cst_366 = arith.constant 1.000000e+00 : f32
    %1528 = vector.broadcast %cst_365 : f32 to vector<2x128xf32>
    %1529 = arith.maximumf %1528, %1527 : vector<2x128xf32>
    %1530 = vector.broadcast %cst_366 : f32 to vector<2x128xf32>
    %1531 = arith.minimumf %1530, %1529 : vector<2x128xf32>
    %1532 = vector.broadcast %437 : f32 to vector<2x128xf32>
    %1533 = arith.mulf %1531, %1532 : vector<2x128xf32>
    %1534 = arith.subf %1520, %1533 : vector<2x128xf32>
    %1535 = vector.broadcast %438 : f32 to vector<2x128xf32>
    %1536 = arith.mulf %1531, %1535 : vector<2x128xf32>
    %1537 = arith.subf %1522, %1536 : vector<2x128xf32>
    %1538 = arith.mulf %1534, %1534 : vector<2x128xf32>
    %1539 = arith.mulf %1537, %1537 : vector<2x128xf32>
    %1540 = arith.addf %1538, %1539 : vector<2x128xf32>
    %1541 = arith.minimumf %1504, %1540 : vector<2x128xf32>
    %1542 = vector.broadcast %372 : f32 to vector<2x128xf32>
    %1543 = arith.cmpf ogt, %1542, %694 : vector<2x128xf32>
    %1544 = vector.broadcast %376 : f32 to vector<2x128xf32>
    %1545 = arith.cmpf ogt, %1544, %694 : vector<2x128xf32>
    %1546 = arith.xori %1543, %1545 : vector<2x128xi1>
    %1547 = vector.broadcast %448 : f32 to vector<2x128xf32>
    %1548 = arith.mulf %1520, %1547 : vector<2x128xf32>
    %1549 = vector.broadcast %449 : f32 to vector<2x128xf32>
    %1550 = arith.mulf %1522, %1549 : vector<2x128xf32>
    %1551 = arith.subf %1548, %1550 : vector<2x128xf32>
    %cst_367 = arith.constant 0.000000e+00 : f32
    %1552 = vector.broadcast %cst_367 : f32 to vector<2x128xf32>
    %1553 = arith.cmpf olt, %1551, %1552 : vector<2x128xf32>
    %1554 = arith.andi %1546, %1553 : vector<2x128xi1>
    %1555 = arith.xori %1518, %1554 : vector<2x128xi1>
    %1556 = vector.broadcast %346 : f32 to vector<2x128xf32>
    %1557 = arith.subf %691, %1556 : vector<2x128xf32>
    %1558 = vector.broadcast %376 : f32 to vector<2x128xf32>
    %1559 = arith.subf %694, %1558 : vector<2x128xf32>
    %1560 = vector.broadcast %457 : f32 to vector<2x128xf32>
    %1561 = arith.mulf %1557, %1560 : vector<2x128xf32>
    %1562 = vector.broadcast %458 : f32 to vector<2x128xf32>
    %1563 = arith.mulf %1559, %1562 : vector<2x128xf32>
    %1564 = arith.addf %1561, %1563 : vector<2x128xf32>
    %cst_368 = arith.constant 0.000000e+00 : f32
    %cst_369 = arith.constant 1.000000e+00 : f32
    %1565 = vector.broadcast %cst_368 : f32 to vector<2x128xf32>
    %1566 = arith.maximumf %1565, %1564 : vector<2x128xf32>
    %1567 = vector.broadcast %cst_369 : f32 to vector<2x128xf32>
    %1568 = arith.minimumf %1567, %1566 : vector<2x128xf32>
    %1569 = vector.broadcast %450 : f32 to vector<2x128xf32>
    %1570 = arith.mulf %1568, %1569 : vector<2x128xf32>
    %1571 = arith.subf %1557, %1570 : vector<2x128xf32>
    %1572 = vector.broadcast %451 : f32 to vector<2x128xf32>
    %1573 = arith.mulf %1568, %1572 : vector<2x128xf32>
    %1574 = arith.subf %1559, %1573 : vector<2x128xf32>
    %1575 = arith.mulf %1571, %1571 : vector<2x128xf32>
    %1576 = arith.mulf %1574, %1574 : vector<2x128xf32>
    %1577 = arith.addf %1575, %1576 : vector<2x128xf32>
    %1578 = arith.minimumf %1541, %1577 : vector<2x128xf32>
    %1579 = vector.broadcast %376 : f32 to vector<2x128xf32>
    %1580 = arith.cmpf ogt, %1579, %694 : vector<2x128xf32>
    %1581 = vector.broadcast %380 : f32 to vector<2x128xf32>
    %1582 = arith.cmpf ogt, %1581, %694 : vector<2x128xf32>
    %1583 = arith.xori %1580, %1582 : vector<2x128xi1>
    %1584 = vector.broadcast %461 : f32 to vector<2x128xf32>
    %1585 = arith.mulf %1557, %1584 : vector<2x128xf32>
    %1586 = vector.broadcast %462 : f32 to vector<2x128xf32>
    %1587 = arith.mulf %1559, %1586 : vector<2x128xf32>
    %1588 = arith.subf %1585, %1587 : vector<2x128xf32>
    %cst_370 = arith.constant 0.000000e+00 : f32
    %1589 = vector.broadcast %cst_370 : f32 to vector<2x128xf32>
    %1590 = arith.cmpf olt, %1588, %1589 : vector<2x128xf32>
    %1591 = arith.andi %1583, %1590 : vector<2x128xi1>
    %1592 = arith.xori %1555, %1591 : vector<2x128xi1>
    %1593 = vector.broadcast %349 : f32 to vector<2x128xf32>
    %1594 = arith.subf %691, %1593 : vector<2x128xf32>
    %1595 = vector.broadcast %380 : f32 to vector<2x128xf32>
    %1596 = arith.subf %694, %1595 : vector<2x128xf32>
    %1597 = vector.broadcast %470 : f32 to vector<2x128xf32>
    %1598 = arith.mulf %1594, %1597 : vector<2x128xf32>
    %1599 = vector.broadcast %471 : f32 to vector<2x128xf32>
    %1600 = arith.mulf %1596, %1599 : vector<2x128xf32>
    %1601 = arith.addf %1598, %1600 : vector<2x128xf32>
    %cst_371 = arith.constant 0.000000e+00 : f32
    %cst_372 = arith.constant 1.000000e+00 : f32
    %1602 = vector.broadcast %cst_371 : f32 to vector<2x128xf32>
    %1603 = arith.maximumf %1602, %1601 : vector<2x128xf32>
    %1604 = vector.broadcast %cst_372 : f32 to vector<2x128xf32>
    %1605 = arith.minimumf %1604, %1603 : vector<2x128xf32>
    %1606 = vector.broadcast %463 : f32 to vector<2x128xf32>
    %1607 = arith.mulf %1605, %1606 : vector<2x128xf32>
    %1608 = arith.subf %1594, %1607 : vector<2x128xf32>
    %1609 = vector.broadcast %464 : f32 to vector<2x128xf32>
    %1610 = arith.mulf %1605, %1609 : vector<2x128xf32>
    %1611 = arith.subf %1596, %1610 : vector<2x128xf32>
    %1612 = arith.mulf %1608, %1608 : vector<2x128xf32>
    %1613 = arith.mulf %1611, %1611 : vector<2x128xf32>
    %1614 = arith.addf %1612, %1613 : vector<2x128xf32>
    %1615 = arith.minimumf %1578, %1614 : vector<2x128xf32>
    %1616 = vector.broadcast %380 : f32 to vector<2x128xf32>
    %1617 = arith.cmpf ogt, %1616, %694 : vector<2x128xf32>
    %1618 = vector.broadcast %384 : f32 to vector<2x128xf32>
    %1619 = arith.cmpf ogt, %1618, %694 : vector<2x128xf32>
    %1620 = arith.xori %1617, %1619 : vector<2x128xi1>
    %1621 = vector.broadcast %474 : f32 to vector<2x128xf32>
    %1622 = arith.mulf %1594, %1621 : vector<2x128xf32>
    %1623 = vector.broadcast %475 : f32 to vector<2x128xf32>
    %1624 = arith.mulf %1596, %1623 : vector<2x128xf32>
    %1625 = arith.subf %1622, %1624 : vector<2x128xf32>
    %cst_373 = arith.constant 0.000000e+00 : f32
    %1626 = vector.broadcast %cst_373 : f32 to vector<2x128xf32>
    %1627 = arith.cmpf olt, %1625, %1626 : vector<2x128xf32>
    %1628 = arith.andi %1620, %1627 : vector<2x128xi1>
    %1629 = arith.xori %1592, %1628 : vector<2x128xi1>
    %1630 = vector.broadcast %352 : f32 to vector<2x128xf32>
    %1631 = arith.subf %691, %1630 : vector<2x128xf32>
    %1632 = vector.broadcast %384 : f32 to vector<2x128xf32>
    %1633 = arith.subf %694, %1632 : vector<2x128xf32>
    %1634 = vector.broadcast %483 : f32 to vector<2x128xf32>
    %1635 = arith.mulf %1631, %1634 : vector<2x128xf32>
    %1636 = vector.broadcast %484 : f32 to vector<2x128xf32>
    %1637 = arith.mulf %1633, %1636 : vector<2x128xf32>
    %1638 = arith.addf %1635, %1637 : vector<2x128xf32>
    %cst_374 = arith.constant 0.000000e+00 : f32
    %cst_375 = arith.constant 1.000000e+00 : f32
    %1639 = vector.broadcast %cst_374 : f32 to vector<2x128xf32>
    %1640 = arith.maximumf %1639, %1638 : vector<2x128xf32>
    %1641 = vector.broadcast %cst_375 : f32 to vector<2x128xf32>
    %1642 = arith.minimumf %1641, %1640 : vector<2x128xf32>
    %1643 = vector.broadcast %476 : f32 to vector<2x128xf32>
    %1644 = arith.mulf %1642, %1643 : vector<2x128xf32>
    %1645 = arith.subf %1631, %1644 : vector<2x128xf32>
    %1646 = vector.broadcast %477 : f32 to vector<2x128xf32>
    %1647 = arith.mulf %1642, %1646 : vector<2x128xf32>
    %1648 = arith.subf %1633, %1647 : vector<2x128xf32>
    %1649 = arith.mulf %1645, %1645 : vector<2x128xf32>
    %1650 = arith.mulf %1648, %1648 : vector<2x128xf32>
    %1651 = arith.addf %1649, %1650 : vector<2x128xf32>
    %1652 = arith.minimumf %1615, %1651 : vector<2x128xf32>
    %1653 = vector.broadcast %384 : f32 to vector<2x128xf32>
    %1654 = arith.cmpf ogt, %1653, %694 : vector<2x128xf32>
    %1655 = vector.broadcast %356 : f32 to vector<2x128xf32>
    %1656 = arith.cmpf ogt, %1655, %694 : vector<2x128xf32>
    %1657 = arith.xori %1654, %1656 : vector<2x128xi1>
    %1658 = vector.broadcast %487 : f32 to vector<2x128xf32>
    %1659 = arith.mulf %1631, %1658 : vector<2x128xf32>
    %1660 = vector.broadcast %488 : f32 to vector<2x128xf32>
    %1661 = arith.mulf %1633, %1660 : vector<2x128xf32>
    %1662 = arith.subf %1659, %1661 : vector<2x128xf32>
    %cst_376 = arith.constant 0.000000e+00 : f32
    %1663 = vector.broadcast %cst_376 : f32 to vector<2x128xf32>
    %1664 = arith.cmpf olt, %1662, %1663 : vector<2x128xf32>
    %1665 = arith.andi %1657, %1664 : vector<2x128xi1>
    %1666 = arith.xori %1629, %1665 : vector<2x128xi1>
    %1667 = math.sqrt %1652 : vector<2x128xf32>
    %cst_377 = arith.constant 0.000000e+00 : f32
    %1668 = vector.broadcast %cst_377 : f32 to vector<2x128xf32>
    %1669 = arith.subf %1668, %1667 : vector<2x128xf32>
    %1670 = arith.select %1666, %1667, %1669 : vector<2x128xi1>, vector<2x128xf32>
    %cst_378 = arith.constant 0.000000e+00 : f32
    %1671 = vector.broadcast %cst_378 : f32 to vector<2x128xf32>
    %1672 = arith.subf %1671, %1670 : vector<2x128xf32>
    %cst_379 = arith.constant 1.000000e+00 : f32
    %1673 = vector.broadcast %cst_379 : f32 to vector<2x128xf32>
    %1674 = arith.mulf %1672, %1673 : vector<2x128xf32>
    %1675 = math.exp %1674 : vector<2x128xf32>
    %cst_380 = arith.constant 1.000000e+00 : f32
    %1676 = vector.broadcast %cst_380 : f32 to vector<2x128xf32>
    %1677 = arith.addf %1676, %1675 : vector<2x128xf32>
    %1678 = tpu.reciprocal %1677 {approx = true} : vector<2x128xf32> -> vector<2x128xf32>
    %cst_381 = arith.constant 1.000000e+00 : f32
    %cst_382 = arith.constant 0.000000e+00 : f32
    %1679 = vector.broadcast %cst_381 : f32 to vector<2x128xf32>
    %1680 = vector.broadcast %cst_382 : f32 to vector<2x128xf32>
    %1681 = arith.select %1666, %1679, %1680 : vector<2x128xi1>, vector<2x128xf32>
    %1682 = arith.mulf %1678, %653 : vector<2x128xf32>
    %1683 = vector.shape_cast %1682 : vector<2x128xf32> to vector<1x2x128xf32>
    %cst_383 = arith.constant dense<0.000000e+00> : vector<1xf32>
    %1684 = vector.multi_reduction <add>, %1683, %cst_383 [1, 2] : vector<1x2x128xf32> to vector<1xf32>
    %1685 = vector.shape_cast %1684 : vector<1xf32> to vector<1x1x1xf32>
    %1686 = vector.extract %1685[0, 0, 0] : f32 from vector<1x1x1xf32>
    %cst_384 = arith.constant 0.000000e+00 : f32
    %1687 = arith.addf %cst_384, %1686 : f32
    %1688 = vector.shape_cast %1678 : vector<2x128xf32> to vector<1x2x128xf32>
    %cst_385 = arith.constant dense<0.000000e+00> : vector<1xf32>
    %1689 = vector.multi_reduction <add>, %1688, %cst_385 [1, 2] : vector<1x2x128xf32> to vector<1xf32>
    %1690 = vector.shape_cast %1689 : vector<1xf32> to vector<1x1x1xf32>
    %1691 = vector.extract %1690[0, 0, 0] : f32 from vector<1x1x1xf32>
    %cst_386 = arith.constant 0.000000e+00 : f32
    %1692 = arith.addf %cst_386, %1691 : f32
    %1693 = arith.mulf %1681, %698 : vector<2x128xf32>
    %1694 = vector.shape_cast %1693 : vector<2x128xf32> to vector<1x2x128xf32>
    %cst_387 = arith.constant dense<0.000000e+00> : vector<1xf32>
    %1695 = vector.multi_reduction <add>, %1694, %cst_387 [1, 2] : vector<1x2x128xf32> to vector<1xf32>
    %1696 = vector.shape_cast %1695 : vector<1xf32> to vector<1x1x1xf32>
    %1697 = vector.extract %1696[0, 0, 0] : f32 from vector<1x1x1xf32>
    %cst_388 = arith.constant 0.000000e+00 : f32
    %1698 = arith.addf %cst_388, %1697 : f32
    %1699 = vector.shape_cast %1681 : vector<2x128xf32> to vector<1x2x128xf32>
    %cst_389 = arith.constant dense<0.000000e+00> : vector<1xf32>
    %1700 = vector.multi_reduction <add>, %1699, %cst_389 [1, 2] : vector<1x2x128xf32> to vector<1xf32>
    %1701 = vector.shape_cast %1700 : vector<1xf32> to vector<1x1x1xf32>
    %1702 = vector.extract %1701[0, 0, 0] : f32 from vector<1x1x1xf32>
    %cst_390 = arith.constant 0.000000e+00 : f32
    %1703 = arith.addf %cst_390, %1702 : f32
    %cst_391 = arith.constant 1.000000e+30 : f32
    %1704 = vector.broadcast %cst_391 : f32 to vector<2x128xf32>
    %false_392 = arith.constant false
    %1705 = vector.broadcast %false_392 : i1 to vector<2x128xi1>
    %1706 = vector.broadcast %494 : f32 to vector<2x128xf32>
    %1707 = arith.subf %691, %1706 : vector<2x128xf32>
    %1708 = vector.broadcast %519 : f32 to vector<2x128xf32>
    %1709 = arith.subf %694, %1708 : vector<2x128xf32>
    %1710 = vector.broadcast %555 : f32 to vector<2x128xf32>
    %1711 = arith.mulf %1707, %1710 : vector<2x128xf32>
    %1712 = vector.broadcast %556 : f32 to vector<2x128xf32>
    %1713 = arith.mulf %1709, %1712 : vector<2x128xf32>
    %1714 = arith.addf %1711, %1713 : vector<2x128xf32>
    %cst_393 = arith.constant 0.000000e+00 : f32
    %cst_394 = arith.constant 1.000000e+00 : f32
    %1715 = vector.broadcast %cst_393 : f32 to vector<2x128xf32>
    %1716 = arith.maximumf %1715, %1714 : vector<2x128xf32>
    %1717 = vector.broadcast %cst_394 : f32 to vector<2x128xf32>
    %1718 = arith.minimumf %1717, %1716 : vector<2x128xf32>
    %1719 = vector.broadcast %548 : f32 to vector<2x128xf32>
    %1720 = arith.mulf %1718, %1719 : vector<2x128xf32>
    %1721 = arith.subf %1707, %1720 : vector<2x128xf32>
    %1722 = vector.broadcast %549 : f32 to vector<2x128xf32>
    %1723 = arith.mulf %1718, %1722 : vector<2x128xf32>
    %1724 = arith.subf %1709, %1723 : vector<2x128xf32>
    %1725 = arith.mulf %1721, %1721 : vector<2x128xf32>
    %1726 = arith.mulf %1724, %1724 : vector<2x128xf32>
    %1727 = arith.addf %1725, %1726 : vector<2x128xf32>
    %1728 = arith.minimumf %1704, %1727 : vector<2x128xf32>
    %1729 = vector.broadcast %519 : f32 to vector<2x128xf32>
    %1730 = arith.cmpf ogt, %1729, %694 : vector<2x128xf32>
    %1731 = vector.broadcast %523 : f32 to vector<2x128xf32>
    %1732 = arith.cmpf ogt, %1731, %694 : vector<2x128xf32>
    %1733 = arith.xori %1730, %1732 : vector<2x128xi1>
    %1734 = vector.broadcast %559 : f32 to vector<2x128xf32>
    %1735 = arith.mulf %1707, %1734 : vector<2x128xf32>
    %1736 = vector.broadcast %560 : f32 to vector<2x128xf32>
    %1737 = arith.mulf %1709, %1736 : vector<2x128xf32>
    %1738 = arith.subf %1735, %1737 : vector<2x128xf32>
    %cst_395 = arith.constant 0.000000e+00 : f32
    %1739 = vector.broadcast %cst_395 : f32 to vector<2x128xf32>
    %1740 = arith.cmpf olt, %1738, %1739 : vector<2x128xf32>
    %1741 = arith.andi %1733, %1740 : vector<2x128xi1>
    %1742 = arith.xori %1705, %1741 : vector<2x128xi1>
    %1743 = vector.broadcast %497 : f32 to vector<2x128xf32>
    %1744 = arith.subf %691, %1743 : vector<2x128xf32>
    %1745 = vector.broadcast %523 : f32 to vector<2x128xf32>
    %1746 = arith.subf %694, %1745 : vector<2x128xf32>
    %1747 = vector.broadcast %568 : f32 to vector<2x128xf32>
    %1748 = arith.mulf %1744, %1747 : vector<2x128xf32>
    %1749 = vector.broadcast %569 : f32 to vector<2x128xf32>
    %1750 = arith.mulf %1746, %1749 : vector<2x128xf32>
    %1751 = arith.addf %1748, %1750 : vector<2x128xf32>
    %cst_396 = arith.constant 0.000000e+00 : f32
    %cst_397 = arith.constant 1.000000e+00 : f32
    %1752 = vector.broadcast %cst_396 : f32 to vector<2x128xf32>
    %1753 = arith.maximumf %1752, %1751 : vector<2x128xf32>
    %1754 = vector.broadcast %cst_397 : f32 to vector<2x128xf32>
    %1755 = arith.minimumf %1754, %1753 : vector<2x128xf32>
    %1756 = vector.broadcast %561 : f32 to vector<2x128xf32>
    %1757 = arith.mulf %1755, %1756 : vector<2x128xf32>
    %1758 = arith.subf %1744, %1757 : vector<2x128xf32>
    %1759 = vector.broadcast %562 : f32 to vector<2x128xf32>
    %1760 = arith.mulf %1755, %1759 : vector<2x128xf32>
    %1761 = arith.subf %1746, %1760 : vector<2x128xf32>
    %1762 = arith.mulf %1758, %1758 : vector<2x128xf32>
    %1763 = arith.mulf %1761, %1761 : vector<2x128xf32>
    %1764 = arith.addf %1762, %1763 : vector<2x128xf32>
    %1765 = arith.minimumf %1728, %1764 : vector<2x128xf32>
    %1766 = vector.broadcast %523 : f32 to vector<2x128xf32>
    %1767 = arith.cmpf ogt, %1766, %694 : vector<2x128xf32>
    %1768 = vector.broadcast %527 : f32 to vector<2x128xf32>
    %1769 = arith.cmpf ogt, %1768, %694 : vector<2x128xf32>
    %1770 = arith.xori %1767, %1769 : vector<2x128xi1>
    %1771 = vector.broadcast %572 : f32 to vector<2x128xf32>
    %1772 = arith.mulf %1744, %1771 : vector<2x128xf32>
    %1773 = vector.broadcast %573 : f32 to vector<2x128xf32>
    %1774 = arith.mulf %1746, %1773 : vector<2x128xf32>
    %1775 = arith.subf %1772, %1774 : vector<2x128xf32>
    %cst_398 = arith.constant 0.000000e+00 : f32
    %1776 = vector.broadcast %cst_398 : f32 to vector<2x128xf32>
    %1777 = arith.cmpf olt, %1775, %1776 : vector<2x128xf32>
    %1778 = arith.andi %1770, %1777 : vector<2x128xi1>
    %1779 = arith.xori %1742, %1778 : vector<2x128xi1>
    %1780 = vector.broadcast %500 : f32 to vector<2x128xf32>
    %1781 = arith.subf %691, %1780 : vector<2x128xf32>
    %1782 = vector.broadcast %527 : f32 to vector<2x128xf32>
    %1783 = arith.subf %694, %1782 : vector<2x128xf32>
    %1784 = vector.broadcast %581 : f32 to vector<2x128xf32>
    %1785 = arith.mulf %1781, %1784 : vector<2x128xf32>
    %1786 = vector.broadcast %582 : f32 to vector<2x128xf32>
    %1787 = arith.mulf %1783, %1786 : vector<2x128xf32>
    %1788 = arith.addf %1785, %1787 : vector<2x128xf32>
    %cst_399 = arith.constant 0.000000e+00 : f32
    %cst_400 = arith.constant 1.000000e+00 : f32
    %1789 = vector.broadcast %cst_399 : f32 to vector<2x128xf32>
    %1790 = arith.maximumf %1789, %1788 : vector<2x128xf32>
    %1791 = vector.broadcast %cst_400 : f32 to vector<2x128xf32>
    %1792 = arith.minimumf %1791, %1790 : vector<2x128xf32>
    %1793 = vector.broadcast %574 : f32 to vector<2x128xf32>
    %1794 = arith.mulf %1792, %1793 : vector<2x128xf32>
    %1795 = arith.subf %1781, %1794 : vector<2x128xf32>
    %1796 = vector.broadcast %575 : f32 to vector<2x128xf32>
    %1797 = arith.mulf %1792, %1796 : vector<2x128xf32>
    %1798 = arith.subf %1783, %1797 : vector<2x128xf32>
    %1799 = arith.mulf %1795, %1795 : vector<2x128xf32>
    %1800 = arith.mulf %1798, %1798 : vector<2x128xf32>
    %1801 = arith.addf %1799, %1800 : vector<2x128xf32>
    %1802 = arith.minimumf %1765, %1801 : vector<2x128xf32>
    %1803 = vector.broadcast %527 : f32 to vector<2x128xf32>
    %1804 = arith.cmpf ogt, %1803, %694 : vector<2x128xf32>
    %1805 = vector.broadcast %531 : f32 to vector<2x128xf32>
    %1806 = arith.cmpf ogt, %1805, %694 : vector<2x128xf32>
    %1807 = arith.xori %1804, %1806 : vector<2x128xi1>
    %1808 = vector.broadcast %585 : f32 to vector<2x128xf32>
    %1809 = arith.mulf %1781, %1808 : vector<2x128xf32>
    %1810 = vector.broadcast %586 : f32 to vector<2x128xf32>
    %1811 = arith.mulf %1783, %1810 : vector<2x128xf32>
    %1812 = arith.subf %1809, %1811 : vector<2x128xf32>
    %cst_401 = arith.constant 0.000000e+00 : f32
    %1813 = vector.broadcast %cst_401 : f32 to vector<2x128xf32>
    %1814 = arith.cmpf olt, %1812, %1813 : vector<2x128xf32>
    %1815 = arith.andi %1807, %1814 : vector<2x128xi1>
    %1816 = arith.xori %1779, %1815 : vector<2x128xi1>
    %1817 = vector.broadcast %503 : f32 to vector<2x128xf32>
    %1818 = arith.subf %691, %1817 : vector<2x128xf32>
    %1819 = vector.broadcast %531 : f32 to vector<2x128xf32>
    %1820 = arith.subf %694, %1819 : vector<2x128xf32>
    %1821 = vector.broadcast %594 : f32 to vector<2x128xf32>
    %1822 = arith.mulf %1818, %1821 : vector<2x128xf32>
    %1823 = vector.broadcast %595 : f32 to vector<2x128xf32>
    %1824 = arith.mulf %1820, %1823 : vector<2x128xf32>
    %1825 = arith.addf %1822, %1824 : vector<2x128xf32>
    %cst_402 = arith.constant 0.000000e+00 : f32
    %cst_403 = arith.constant 1.000000e+00 : f32
    %1826 = vector.broadcast %cst_402 : f32 to vector<2x128xf32>
    %1827 = arith.maximumf %1826, %1825 : vector<2x128xf32>
    %1828 = vector.broadcast %cst_403 : f32 to vector<2x128xf32>
    %1829 = arith.minimumf %1828, %1827 : vector<2x128xf32>
    %1830 = vector.broadcast %587 : f32 to vector<2x128xf32>
    %1831 = arith.mulf %1829, %1830 : vector<2x128xf32>
    %1832 = arith.subf %1818, %1831 : vector<2x128xf32>
    %1833 = vector.broadcast %588 : f32 to vector<2x128xf32>
    %1834 = arith.mulf %1829, %1833 : vector<2x128xf32>
    %1835 = arith.subf %1820, %1834 : vector<2x128xf32>
    %1836 = arith.mulf %1832, %1832 : vector<2x128xf32>
    %1837 = arith.mulf %1835, %1835 : vector<2x128xf32>
    %1838 = arith.addf %1836, %1837 : vector<2x128xf32>
    %1839 = arith.minimumf %1802, %1838 : vector<2x128xf32>
    %1840 = vector.broadcast %531 : f32 to vector<2x128xf32>
    %1841 = arith.cmpf ogt, %1840, %694 : vector<2x128xf32>
    %1842 = vector.broadcast %535 : f32 to vector<2x128xf32>
    %1843 = arith.cmpf ogt, %1842, %694 : vector<2x128xf32>
    %1844 = arith.xori %1841, %1843 : vector<2x128xi1>
    %1845 = vector.broadcast %598 : f32 to vector<2x128xf32>
    %1846 = arith.mulf %1818, %1845 : vector<2x128xf32>
    %1847 = vector.broadcast %599 : f32 to vector<2x128xf32>
    %1848 = arith.mulf %1820, %1847 : vector<2x128xf32>
    %1849 = arith.subf %1846, %1848 : vector<2x128xf32>
    %cst_404 = arith.constant 0.000000e+00 : f32
    %1850 = vector.broadcast %cst_404 : f32 to vector<2x128xf32>
    %1851 = arith.cmpf olt, %1849, %1850 : vector<2x128xf32>
    %1852 = arith.andi %1844, %1851 : vector<2x128xi1>
    %1853 = arith.xori %1816, %1852 : vector<2x128xi1>
    %1854 = vector.broadcast %506 : f32 to vector<2x128xf32>
    %1855 = arith.subf %691, %1854 : vector<2x128xf32>
    %1856 = vector.broadcast %535 : f32 to vector<2x128xf32>
    %1857 = arith.subf %694, %1856 : vector<2x128xf32>
    %1858 = vector.broadcast %607 : f32 to vector<2x128xf32>
    %1859 = arith.mulf %1855, %1858 : vector<2x128xf32>
    %1860 = vector.broadcast %608 : f32 to vector<2x128xf32>
    %1861 = arith.mulf %1857, %1860 : vector<2x128xf32>
    %1862 = arith.addf %1859, %1861 : vector<2x128xf32>
    %cst_405 = arith.constant 0.000000e+00 : f32
    %cst_406 = arith.constant 1.000000e+00 : f32
    %1863 = vector.broadcast %cst_405 : f32 to vector<2x128xf32>
    %1864 = arith.maximumf %1863, %1862 : vector<2x128xf32>
    %1865 = vector.broadcast %cst_406 : f32 to vector<2x128xf32>
    %1866 = arith.minimumf %1865, %1864 : vector<2x128xf32>
    %1867 = vector.broadcast %600 : f32 to vector<2x128xf32>
    %1868 = arith.mulf %1866, %1867 : vector<2x128xf32>
    %1869 = arith.subf %1855, %1868 : vector<2x128xf32>
    %1870 = vector.broadcast %601 : f32 to vector<2x128xf32>
    %1871 = arith.mulf %1866, %1870 : vector<2x128xf32>
    %1872 = arith.subf %1857, %1871 : vector<2x128xf32>
    %1873 = arith.mulf %1869, %1869 : vector<2x128xf32>
    %1874 = arith.mulf %1872, %1872 : vector<2x128xf32>
    %1875 = arith.addf %1873, %1874 : vector<2x128xf32>
    %1876 = arith.minimumf %1839, %1875 : vector<2x128xf32>
    %1877 = vector.broadcast %535 : f32 to vector<2x128xf32>
    %1878 = arith.cmpf ogt, %1877, %694 : vector<2x128xf32>
    %1879 = vector.broadcast %539 : f32 to vector<2x128xf32>
    %1880 = arith.cmpf ogt, %1879, %694 : vector<2x128xf32>
    %1881 = arith.xori %1878, %1880 : vector<2x128xi1>
    %1882 = vector.broadcast %611 : f32 to vector<2x128xf32>
    %1883 = arith.mulf %1855, %1882 : vector<2x128xf32>
    %1884 = vector.broadcast %612 : f32 to vector<2x128xf32>
    %1885 = arith.mulf %1857, %1884 : vector<2x128xf32>
    %1886 = arith.subf %1883, %1885 : vector<2x128xf32>
    %cst_407 = arith.constant 0.000000e+00 : f32
    %1887 = vector.broadcast %cst_407 : f32 to vector<2x128xf32>
    %1888 = arith.cmpf olt, %1886, %1887 : vector<2x128xf32>
    %1889 = arith.andi %1881, %1888 : vector<2x128xi1>
    %1890 = arith.xori %1853, %1889 : vector<2x128xi1>
    %1891 = vector.broadcast %509 : f32 to vector<2x128xf32>
    %1892 = arith.subf %691, %1891 : vector<2x128xf32>
    %1893 = vector.broadcast %539 : f32 to vector<2x128xf32>
    %1894 = arith.subf %694, %1893 : vector<2x128xf32>
    %1895 = vector.broadcast %620 : f32 to vector<2x128xf32>
    %1896 = arith.mulf %1892, %1895 : vector<2x128xf32>
    %1897 = vector.broadcast %621 : f32 to vector<2x128xf32>
    %1898 = arith.mulf %1894, %1897 : vector<2x128xf32>
    %1899 = arith.addf %1896, %1898 : vector<2x128xf32>
    %cst_408 = arith.constant 0.000000e+00 : f32
    %cst_409 = arith.constant 1.000000e+00 : f32
    %1900 = vector.broadcast %cst_408 : f32 to vector<2x128xf32>
    %1901 = arith.maximumf %1900, %1899 : vector<2x128xf32>
    %1902 = vector.broadcast %cst_409 : f32 to vector<2x128xf32>
    %1903 = arith.minimumf %1902, %1901 : vector<2x128xf32>
    %1904 = vector.broadcast %613 : f32 to vector<2x128xf32>
    %1905 = arith.mulf %1903, %1904 : vector<2x128xf32>
    %1906 = arith.subf %1892, %1905 : vector<2x128xf32>
    %1907 = vector.broadcast %614 : f32 to vector<2x128xf32>
    %1908 = arith.mulf %1903, %1907 : vector<2x128xf32>
    %1909 = arith.subf %1894, %1908 : vector<2x128xf32>
    %1910 = arith.mulf %1906, %1906 : vector<2x128xf32>
    %1911 = arith.mulf %1909, %1909 : vector<2x128xf32>
    %1912 = arith.addf %1910, %1911 : vector<2x128xf32>
    %1913 = arith.minimumf %1876, %1912 : vector<2x128xf32>
    %1914 = vector.broadcast %539 : f32 to vector<2x128xf32>
    %1915 = arith.cmpf ogt, %1914, %694 : vector<2x128xf32>
    %1916 = vector.broadcast %543 : f32 to vector<2x128xf32>
    %1917 = arith.cmpf ogt, %1916, %694 : vector<2x128xf32>
    %1918 = arith.xori %1915, %1917 : vector<2x128xi1>
    %1919 = vector.broadcast %624 : f32 to vector<2x128xf32>
    %1920 = arith.mulf %1892, %1919 : vector<2x128xf32>
    %1921 = vector.broadcast %625 : f32 to vector<2x128xf32>
    %1922 = arith.mulf %1894, %1921 : vector<2x128xf32>
    %1923 = arith.subf %1920, %1922 : vector<2x128xf32>
    %cst_410 = arith.constant 0.000000e+00 : f32
    %1924 = vector.broadcast %cst_410 : f32 to vector<2x128xf32>
    %1925 = arith.cmpf olt, %1923, %1924 : vector<2x128xf32>
    %1926 = arith.andi %1918, %1925 : vector<2x128xi1>
    %1927 = arith.xori %1890, %1926 : vector<2x128xi1>
    %1928 = vector.broadcast %512 : f32 to vector<2x128xf32>
    %1929 = arith.subf %691, %1928 : vector<2x128xf32>
    %1930 = vector.broadcast %543 : f32 to vector<2x128xf32>
    %1931 = arith.subf %694, %1930 : vector<2x128xf32>
    %1932 = vector.broadcast %633 : f32 to vector<2x128xf32>
    %1933 = arith.mulf %1929, %1932 : vector<2x128xf32>
    %1934 = vector.broadcast %634 : f32 to vector<2x128xf32>
    %1935 = arith.mulf %1931, %1934 : vector<2x128xf32>
    %1936 = arith.addf %1933, %1935 : vector<2x128xf32>
    %cst_411 = arith.constant 0.000000e+00 : f32
    %cst_412 = arith.constant 1.000000e+00 : f32
    %1937 = vector.broadcast %cst_411 : f32 to vector<2x128xf32>
    %1938 = arith.maximumf %1937, %1936 : vector<2x128xf32>
    %1939 = vector.broadcast %cst_412 : f32 to vector<2x128xf32>
    %1940 = arith.minimumf %1939, %1938 : vector<2x128xf32>
    %1941 = vector.broadcast %626 : f32 to vector<2x128xf32>
    %1942 = arith.mulf %1940, %1941 : vector<2x128xf32>
    %1943 = arith.subf %1929, %1942 : vector<2x128xf32>
    %1944 = vector.broadcast %627 : f32 to vector<2x128xf32>
    %1945 = arith.mulf %1940, %1944 : vector<2x128xf32>
    %1946 = arith.subf %1931, %1945 : vector<2x128xf32>
    %1947 = arith.mulf %1943, %1943 : vector<2x128xf32>
    %1948 = arith.mulf %1946, %1946 : vector<2x128xf32>
    %1949 = arith.addf %1947, %1948 : vector<2x128xf32>
    %1950 = arith.minimumf %1913, %1949 : vector<2x128xf32>
    %1951 = vector.broadcast %543 : f32 to vector<2x128xf32>
    %1952 = arith.cmpf ogt, %1951, %694 : vector<2x128xf32>
    %1953 = vector.broadcast %547 : f32 to vector<2x128xf32>
    %1954 = arith.cmpf ogt, %1953, %694 : vector<2x128xf32>
    %1955 = arith.xori %1952, %1954 : vector<2x128xi1>
    %1956 = vector.broadcast %637 : f32 to vector<2x128xf32>
    %1957 = arith.mulf %1929, %1956 : vector<2x128xf32>
    %1958 = vector.broadcast %638 : f32 to vector<2x128xf32>
    %1959 = arith.mulf %1931, %1958 : vector<2x128xf32>
    %1960 = arith.subf %1957, %1959 : vector<2x128xf32>
    %cst_413 = arith.constant 0.000000e+00 : f32
    %1961 = vector.broadcast %cst_413 : f32 to vector<2x128xf32>
    %1962 = arith.cmpf olt, %1960, %1961 : vector<2x128xf32>
    %1963 = arith.andi %1955, %1962 : vector<2x128xi1>
    %1964 = arith.xori %1927, %1963 : vector<2x128xi1>
    %1965 = vector.broadcast %515 : f32 to vector<2x128xf32>
    %1966 = arith.subf %691, %1965 : vector<2x128xf32>
    %1967 = vector.broadcast %547 : f32 to vector<2x128xf32>
    %1968 = arith.subf %694, %1967 : vector<2x128xf32>
    %1969 = vector.broadcast %646 : f32 to vector<2x128xf32>
    %1970 = arith.mulf %1966, %1969 : vector<2x128xf32>
    %1971 = vector.broadcast %647 : f32 to vector<2x128xf32>
    %1972 = arith.mulf %1968, %1971 : vector<2x128xf32>
    %1973 = arith.addf %1970, %1972 : vector<2x128xf32>
    %cst_414 = arith.constant 0.000000e+00 : f32
    %cst_415 = arith.constant 1.000000e+00 : f32
    %1974 = vector.broadcast %cst_414 : f32 to vector<2x128xf32>
    %1975 = arith.maximumf %1974, %1973 : vector<2x128xf32>
    %1976 = vector.broadcast %cst_415 : f32 to vector<2x128xf32>
    %1977 = arith.minimumf %1976, %1975 : vector<2x128xf32>
    %1978 = vector.broadcast %639 : f32 to vector<2x128xf32>
    %1979 = arith.mulf %1977, %1978 : vector<2x128xf32>
    %1980 = arith.subf %1966, %1979 : vector<2x128xf32>
    %1981 = vector.broadcast %640 : f32 to vector<2x128xf32>
    %1982 = arith.mulf %1977, %1981 : vector<2x128xf32>
    %1983 = arith.subf %1968, %1982 : vector<2x128xf32>
    %1984 = arith.mulf %1980, %1980 : vector<2x128xf32>
    %1985 = arith.mulf %1983, %1983 : vector<2x128xf32>
    %1986 = arith.addf %1984, %1985 : vector<2x128xf32>
    %1987 = arith.minimumf %1950, %1986 : vector<2x128xf32>
    %1988 = vector.broadcast %547 : f32 to vector<2x128xf32>
    %1989 = arith.cmpf ogt, %1988, %694 : vector<2x128xf32>
    %1990 = vector.broadcast %519 : f32 to vector<2x128xf32>
    %1991 = arith.cmpf ogt, %1990, %694 : vector<2x128xf32>
    %1992 = arith.xori %1989, %1991 : vector<2x128xi1>
    %1993 = vector.broadcast %650 : f32 to vector<2x128xf32>
    %1994 = arith.mulf %1966, %1993 : vector<2x128xf32>
    %1995 = vector.broadcast %651 : f32 to vector<2x128xf32>
    %1996 = arith.mulf %1968, %1995 : vector<2x128xf32>
    %1997 = arith.subf %1994, %1996 : vector<2x128xf32>
    %cst_416 = arith.constant 0.000000e+00 : f32
    %1998 = vector.broadcast %cst_416 : f32 to vector<2x128xf32>
    %1999 = arith.cmpf olt, %1997, %1998 : vector<2x128xf32>
    %2000 = arith.andi %1992, %1999 : vector<2x128xi1>
    %2001 = arith.xori %1964, %2000 : vector<2x128xi1>
    %2002 = math.sqrt %1987 : vector<2x128xf32>
    %cst_417 = arith.constant 0.000000e+00 : f32
    %2003 = vector.broadcast %cst_417 : f32 to vector<2x128xf32>
    %2004 = arith.subf %2003, %2002 : vector<2x128xf32>
    %2005 = arith.select %2001, %2002, %2004 : vector<2x128xi1>, vector<2x128xf32>
    %cst_418 = arith.constant 0.000000e+00 : f32
    %2006 = vector.broadcast %cst_418 : f32 to vector<2x128xf32>
    %2007 = arith.subf %2006, %2005 : vector<2x128xf32>
    %cst_419 = arith.constant 1.000000e+00 : f32
    %2008 = vector.broadcast %cst_419 : f32 to vector<2x128xf32>
    %2009 = arith.mulf %2007, %2008 : vector<2x128xf32>
    %2010 = math.exp %2009 : vector<2x128xf32>
    %cst_420 = arith.constant 1.000000e+00 : f32
    %2011 = vector.broadcast %cst_420 : f32 to vector<2x128xf32>
    %2012 = arith.addf %2011, %2010 : vector<2x128xf32>
    %2013 = tpu.reciprocal %2012 {approx = true} : vector<2x128xf32> -> vector<2x128xf32>
    %cst_421 = arith.constant 1.000000e+00 : f32
    %cst_422 = arith.constant 0.000000e+00 : f32
    %2014 = vector.broadcast %cst_421 : f32 to vector<2x128xf32>
    %2015 = vector.broadcast %cst_422 : f32 to vector<2x128xf32>
    %2016 = arith.select %2001, %2014, %2015 : vector<2x128xi1>, vector<2x128xf32>
    %2017 = arith.mulf %2013, %653 : vector<2x128xf32>
    %2018 = vector.shape_cast %2017 : vector<2x128xf32> to vector<1x2x128xf32>
    %cst_423 = arith.constant dense<0.000000e+00> : vector<1xf32>
    %2019 = vector.multi_reduction <add>, %2018, %cst_423 [1, 2] : vector<1x2x128xf32> to vector<1xf32>
    %2020 = vector.shape_cast %2019 : vector<1xf32> to vector<1x1x1xf32>
    %2021 = vector.extract %2020[0, 0, 0] : f32 from vector<1x1x1xf32>
    %cst_424 = arith.constant 0.000000e+00 : f32
    %2022 = arith.addf %cst_424, %2021 : f32
    %2023 = vector.shape_cast %2013 : vector<2x128xf32> to vector<1x2x128xf32>
    %cst_425 = arith.constant dense<0.000000e+00> : vector<1xf32>
    %2024 = vector.multi_reduction <add>, %2023, %cst_425 [1, 2] : vector<1x2x128xf32> to vector<1xf32>
    %2025 = vector.shape_cast %2024 : vector<1xf32> to vector<1x1x1xf32>
    %2026 = vector.extract %2025[0, 0, 0] : f32 from vector<1x1x1xf32>
    %cst_426 = arith.constant 0.000000e+00 : f32
    %2027 = arith.addf %cst_426, %2026 : f32
    %2028 = arith.mulf %2016, %698 : vector<2x128xf32>
    %2029 = vector.shape_cast %2028 : vector<2x128xf32> to vector<1x2x128xf32>
    %cst_427 = arith.constant dense<0.000000e+00> : vector<1xf32>
    %2030 = vector.multi_reduction <add>, %2029, %cst_427 [1, 2] : vector<1x2x128xf32> to vector<1xf32>
    %2031 = vector.shape_cast %2030 : vector<1xf32> to vector<1x1x1xf32>
    %2032 = vector.extract %2031[0, 0, 0] : f32 from vector<1x1x1xf32>
    %cst_428 = arith.constant 0.000000e+00 : f32
    %2033 = arith.addf %cst_428, %2032 : f32
    %2034 = vector.shape_cast %2016 : vector<2x128xf32> to vector<1x2x128xf32>
    %cst_429 = arith.constant dense<0.000000e+00> : vector<1xf32>
    %2035 = vector.multi_reduction <add>, %2034, %cst_429 [1, 2] : vector<1x2x128xf32> to vector<1xf32>
    %2036 = vector.shape_cast %2035 : vector<1xf32> to vector<1x1x1xf32>
    %2037 = vector.extract %2036[0, 0, 0] : f32 from vector<1x1x1xf32>
    %cst_430 = arith.constant 0.000000e+00 : f32
    %2038 = arith.addf %cst_430, %2037 : f32
    %2039 = tpu.iota {dimensions = array<i32: 1>} : vector<4x128xi32>
    %2040 = tpu.iota {dimensions = array<i32: 0>} : vector<4x128xi32>
    %cst_431 = arith.constant 0.000000e+00 : f32
    %2041 = vector.broadcast %cst_431 : f32 to vector<4x128xf32>
    %c0_i32_432 = arith.constant 0 : i32
    %2042 = vector.broadcast %c0_i32_432 : i32 to vector<4x128xi32>
    %2043 = arith.cmpi eq, %2040, %2042 : vector<4x128xi32>
    %c0_i32_433 = arith.constant 0 : i32
    %2044 = vector.broadcast %c0_i32_433 : i32 to vector<4x128xi32>
    %2045 = arith.cmpi eq, %2039, %2044 : vector<4x128xi32>
    %2046 = arith.andi %2043, %2045 : vector<4x128xi1>
    %cst_434 = arith.constant 0.000000e+00 : f32
    %2047 = vector.broadcast %1017 : f32 to vector<4x128xf32>
    %2048 = vector.broadcast %cst_434 : f32 to vector<4x128xf32>
    %2049 = arith.select %2046, %2047, %2048 : vector<4x128xi1>, vector<4x128xf32>
    %2050 = arith.addf %2041, %2049 : vector<4x128xf32>
    %c1_i32_435 = arith.constant 1 : i32
    %2051 = vector.broadcast %c1_i32_435 : i32 to vector<4x128xi32>
    %2052 = arith.cmpi eq, %2039, %2051 : vector<4x128xi32>
    %2053 = arith.andi %2043, %2052 : vector<4x128xi1>
    %cst_436 = arith.constant 0.000000e+00 : f32
    %2054 = vector.broadcast %1022 : f32 to vector<4x128xf32>
    %2055 = vector.broadcast %cst_436 : f32 to vector<4x128xf32>
    %2056 = arith.select %2053, %2054, %2055 : vector<4x128xi1>, vector<4x128xf32>
    %2057 = arith.addf %2050, %2056 : vector<4x128xf32>
    %c2_i32_437 = arith.constant 2 : i32
    %2058 = vector.broadcast %c2_i32_437 : i32 to vector<4x128xi32>
    %2059 = arith.cmpi eq, %2039, %2058 : vector<4x128xi32>
    %2060 = arith.andi %2043, %2059 : vector<4x128xi1>
    %cst_438 = arith.constant 0.000000e+00 : f32
    %2061 = vector.broadcast %1028 : f32 to vector<4x128xf32>
    %2062 = vector.broadcast %cst_438 : f32 to vector<4x128xf32>
    %2063 = arith.select %2060, %2061, %2062 : vector<4x128xi1>, vector<4x128xf32>
    %2064 = arith.addf %2057, %2063 : vector<4x128xf32>
    %c3_i32_439 = arith.constant 3 : i32
    %2065 = vector.broadcast %c3_i32_439 : i32 to vector<4x128xi32>
    %2066 = arith.cmpi eq, %2039, %2065 : vector<4x128xi32>
    %2067 = arith.andi %2043, %2066 : vector<4x128xi1>
    %cst_440 = arith.constant 0.000000e+00 : f32
    %2068 = vector.broadcast %1033 : f32 to vector<4x128xf32>
    %2069 = vector.broadcast %cst_440 : f32 to vector<4x128xf32>
    %2070 = arith.select %2067, %2068, %2069 : vector<4x128xi1>, vector<4x128xf32>
    %2071 = arith.addf %2064, %2070 : vector<4x128xf32>
    %c1_i32_441 = arith.constant 1 : i32
    %2072 = vector.broadcast %c1_i32_441 : i32 to vector<4x128xi32>
    %2073 = arith.cmpi eq, %2040, %2072 : vector<4x128xi32>
    %c0_i32_442 = arith.constant 0 : i32
    %2074 = vector.broadcast %c0_i32_442 : i32 to vector<4x128xi32>
    %2075 = arith.cmpi eq, %2039, %2074 : vector<4x128xi32>
    %2076 = arith.andi %2073, %2075 : vector<4x128xi1>
    %cst_443 = arith.constant 0.000000e+00 : f32
    %2077 = vector.broadcast %1352 : f32 to vector<4x128xf32>
    %2078 = vector.broadcast %cst_443 : f32 to vector<4x128xf32>
    %2079 = arith.select %2076, %2077, %2078 : vector<4x128xi1>, vector<4x128xf32>
    %2080 = arith.addf %2071, %2079 : vector<4x128xf32>
    %c1_i32_444 = arith.constant 1 : i32
    %2081 = vector.broadcast %c1_i32_444 : i32 to vector<4x128xi32>
    %2082 = arith.cmpi eq, %2039, %2081 : vector<4x128xi32>
    %2083 = arith.andi %2073, %2082 : vector<4x128xi1>
    %cst_445 = arith.constant 0.000000e+00 : f32
    %2084 = vector.broadcast %1357 : f32 to vector<4x128xf32>
    %2085 = vector.broadcast %cst_445 : f32 to vector<4x128xf32>
    %2086 = arith.select %2083, %2084, %2085 : vector<4x128xi1>, vector<4x128xf32>
    %2087 = arith.addf %2080, %2086 : vector<4x128xf32>
    %c2_i32_446 = arith.constant 2 : i32
    %2088 = vector.broadcast %c2_i32_446 : i32 to vector<4x128xi32>
    %2089 = arith.cmpi eq, %2039, %2088 : vector<4x128xi32>
    %2090 = arith.andi %2073, %2089 : vector<4x128xi1>
    %cst_447 = arith.constant 0.000000e+00 : f32
    %2091 = vector.broadcast %1363 : f32 to vector<4x128xf32>
    %2092 = vector.broadcast %cst_447 : f32 to vector<4x128xf32>
    %2093 = arith.select %2090, %2091, %2092 : vector<4x128xi1>, vector<4x128xf32>
    %2094 = arith.addf %2087, %2093 : vector<4x128xf32>
    %c3_i32_448 = arith.constant 3 : i32
    %2095 = vector.broadcast %c3_i32_448 : i32 to vector<4x128xi32>
    %2096 = arith.cmpi eq, %2039, %2095 : vector<4x128xi32>
    %2097 = arith.andi %2073, %2096 : vector<4x128xi1>
    %cst_449 = arith.constant 0.000000e+00 : f32
    %2098 = vector.broadcast %1368 : f32 to vector<4x128xf32>
    %2099 = vector.broadcast %cst_449 : f32 to vector<4x128xf32>
    %2100 = arith.select %2097, %2098, %2099 : vector<4x128xi1>, vector<4x128xf32>
    %2101 = arith.addf %2094, %2100 : vector<4x128xf32>
    %c2_i32_450 = arith.constant 2 : i32
    %2102 = vector.broadcast %c2_i32_450 : i32 to vector<4x128xi32>
    %2103 = arith.cmpi eq, %2040, %2102 : vector<4x128xi32>
    %c0_i32_451 = arith.constant 0 : i32
    %2104 = vector.broadcast %c0_i32_451 : i32 to vector<4x128xi32>
    %2105 = arith.cmpi eq, %2039, %2104 : vector<4x128xi32>
    %2106 = arith.andi %2103, %2105 : vector<4x128xi1>
    %cst_452 = arith.constant 0.000000e+00 : f32
    %2107 = vector.broadcast %1687 : f32 to vector<4x128xf32>
    %2108 = vector.broadcast %cst_452 : f32 to vector<4x128xf32>
    %2109 = arith.select %2106, %2107, %2108 : vector<4x128xi1>, vector<4x128xf32>
    %2110 = arith.addf %2101, %2109 : vector<4x128xf32>
    %c1_i32_453 = arith.constant 1 : i32
    %2111 = vector.broadcast %c1_i32_453 : i32 to vector<4x128xi32>
    %2112 = arith.cmpi eq, %2039, %2111 : vector<4x128xi32>
    %2113 = arith.andi %2103, %2112 : vector<4x128xi1>
    %cst_454 = arith.constant 0.000000e+00 : f32
    %2114 = vector.broadcast %1692 : f32 to vector<4x128xf32>
    %2115 = vector.broadcast %cst_454 : f32 to vector<4x128xf32>
    %2116 = arith.select %2113, %2114, %2115 : vector<4x128xi1>, vector<4x128xf32>
    %2117 = arith.addf %2110, %2116 : vector<4x128xf32>
    %c2_i32_455 = arith.constant 2 : i32
    %2118 = vector.broadcast %c2_i32_455 : i32 to vector<4x128xi32>
    %2119 = arith.cmpi eq, %2039, %2118 : vector<4x128xi32>
    %2120 = arith.andi %2103, %2119 : vector<4x128xi1>
    %cst_456 = arith.constant 0.000000e+00 : f32
    %2121 = vector.broadcast %1698 : f32 to vector<4x128xf32>
    %2122 = vector.broadcast %cst_456 : f32 to vector<4x128xf32>
    %2123 = arith.select %2120, %2121, %2122 : vector<4x128xi1>, vector<4x128xf32>
    %2124 = arith.addf %2117, %2123 : vector<4x128xf32>
    %c3_i32_457 = arith.constant 3 : i32
    %2125 = vector.broadcast %c3_i32_457 : i32 to vector<4x128xi32>
    %2126 = arith.cmpi eq, %2039, %2125 : vector<4x128xi32>
    %2127 = arith.andi %2103, %2126 : vector<4x128xi1>
    %cst_458 = arith.constant 0.000000e+00 : f32
    %2128 = vector.broadcast %1703 : f32 to vector<4x128xf32>
    %2129 = vector.broadcast %cst_458 : f32 to vector<4x128xf32>
    %2130 = arith.select %2127, %2128, %2129 : vector<4x128xi1>, vector<4x128xf32>
    %2131 = arith.addf %2124, %2130 : vector<4x128xf32>
    %c3_i32_459 = arith.constant 3 : i32
    %2132 = vector.broadcast %c3_i32_459 : i32 to vector<4x128xi32>
    %2133 = arith.cmpi eq, %2040, %2132 : vector<4x128xi32>
    %c0_i32_460 = arith.constant 0 : i32
    %2134 = vector.broadcast %c0_i32_460 : i32 to vector<4x128xi32>
    %2135 = arith.cmpi eq, %2039, %2134 : vector<4x128xi32>
    %2136 = arith.andi %2133, %2135 : vector<4x128xi1>
    %cst_461 = arith.constant 0.000000e+00 : f32
    %2137 = vector.broadcast %2022 : f32 to vector<4x128xf32>
    %2138 = vector.broadcast %cst_461 : f32 to vector<4x128xf32>
    %2139 = arith.select %2136, %2137, %2138 : vector<4x128xi1>, vector<4x128xf32>
    %2140 = arith.addf %2131, %2139 : vector<4x128xf32>
    %c1_i32_462 = arith.constant 1 : i32
    %2141 = vector.broadcast %c1_i32_462 : i32 to vector<4x128xi32>
    %2142 = arith.cmpi eq, %2039, %2141 : vector<4x128xi32>
    %2143 = arith.andi %2133, %2142 : vector<4x128xi1>
    %cst_463 = arith.constant 0.000000e+00 : f32
    %2144 = vector.broadcast %2027 : f32 to vector<4x128xf32>
    %2145 = vector.broadcast %cst_463 : f32 to vector<4x128xf32>
    %2146 = arith.select %2143, %2144, %2145 : vector<4x128xi1>, vector<4x128xf32>
    %2147 = arith.addf %2140, %2146 : vector<4x128xf32>
    %c2_i32_464 = arith.constant 2 : i32
    %2148 = vector.broadcast %c2_i32_464 : i32 to vector<4x128xi32>
    %2149 = arith.cmpi eq, %2039, %2148 : vector<4x128xi32>
    %2150 = arith.andi %2133, %2149 : vector<4x128xi1>
    %cst_465 = arith.constant 0.000000e+00 : f32
    %2151 = vector.broadcast %2033 : f32 to vector<4x128xf32>
    %2152 = vector.broadcast %cst_465 : f32 to vector<4x128xf32>
    %2153 = arith.select %2150, %2151, %2152 : vector<4x128xi1>, vector<4x128xf32>
    %2154 = arith.addf %2147, %2153 : vector<4x128xf32>
    %c3_i32_466 = arith.constant 3 : i32
    %2155 = vector.broadcast %c3_i32_466 : i32 to vector<4x128xi32>
    %2156 = arith.cmpi eq, %2039, %2155 : vector<4x128xi32>
    %2157 = arith.andi %2133, %2156 : vector<4x128xi1>
    %cst_467 = arith.constant 0.000000e+00 : f32
    %2158 = vector.broadcast %2038 : f32 to vector<4x128xf32>
    %2159 = vector.broadcast %cst_467 : f32 to vector<4x128xf32>
    %2160 = arith.select %2157, %2158, %2159 : vector<4x128xi1>, vector<4x128xf32>
    %2161 = arith.addf %2154, %2160 : vector<4x128xf32>
    %c0_468 = arith.constant 0 : index
    %c0_469 = arith.constant 0 : index
    %c0_470 = arith.constant 0 : index
    %2162 = vector.load %arg3[%c0_468, %c0_469, %c0_470] : memref<1x4x128xf32, #tpu.memory_space<vmem>>, vector<1x4x128xf32>
    %2163 = vector.shape_cast %2162 : vector<1x4x128xf32> to vector<4x128xf32>
    %2164 = vector.shape_cast %2161 : vector<4x128xf32> to vector<1x4x128xf32>
    tpu.vector_store %arg3[%c0_468, %c0_469, %c0_470], %2164 {strides = array<i32>} : memref<1x4x128xf32, #tpu.memory_space<vmem>>, vector<1x4x128xf32>,
    return
  }
  func.func @transform_0(%arg0: i32) -> i32 {
    %c0_i32 = arith.constant 0 : i32
    %c0_i32_0 = arith.constant 0 : i32
    return %c0_i32 : i32
  }
  func.func @transform_1(%arg0: i32) -> (i32, i32, i32) {
    %c0_i32 = arith.constant 0 : i32
    %c0_i32_0 = arith.constant 0 : i32
    %c0_i32_1 = arith.constant 0 : i32
    return %arg0, %c0_i32, %c0_i32_0 : i32, i32, i32
  }
  func.func @transform_2(%arg0: i32) -> (i32, i32, i32) {
    %c0_i32 = arith.constant 0 : i32
    %c0_i32_0 = arith.constant 0 : i32
    %c0_i32_1 = arith.constant 0 : i32
    return %arg0, %c0_i32, %c0_i32_0 : i32, i32, i32
  }
}

</mosaic_0001>

<bundles_post_ra>
// kernel: iter_video_loss.1
= control target key start
LH: loop header
LB: loop body
LE: loop exit
PB: predicated region body
PF: predicated region fallthrough
CT: control target
= control target key end

     0   :  { %s5291_s0 = inlined_call_operand.vmem [shape: f32[384], index: 0, kind: input, shape index: {}]   ;;  %s5292_s1 = inlined_call_operand.vmem [shape: f32[6,2,128], index: 1, kind: input, shape index: {}]   ;;  %s5293_s2 = inlined_call_operand.vmem [shape: f32[6,4,128], index: 2, kind: output, shape index: {}]  }
   0x1   :  { %5593 = sst [smem:[#allocation138_spill]] %s5291_s0 }
   0x2   :  { %5594 = sst [smem:[#allocation139_spill]] %s5292_s1 }
   0x3   :  { %5595 = sst [smem:[#allocation140_spill]] %s5293_s2 }
   0x4   :  { %7 = vsyncpa [#allocation3], 0  ;;  %s2444_s9 = smov 0  }
   0x5 LB: > { %5596 = sst [smem:[#allocation5_spill]] %s2425_s9  ;;  %s2450_s10 = sadd.s32 4294967295, %s2425_s9   ;;  %s2425_s9 = sphi %s2444_s9, %s13_s9  }
   0x6   : > { %5597 = sst [smem:[#allocation6_spill]] %s2450_s10  ;;  %p2168_p0 = scmp.ge.s32.totalorder %s2425_s9, 1 }
   0x7   : > { %p91_p1 = scmp.lt.s32.totalorder %s2425_s9, 7  ;;  %s5598_s0 = sld [smem:[#allocation138_spill]] }
   0x8   : > { %p2300_p3 = scmp.eq.s32.totalorder %s2450_s10, 0 }
   0x9   : > { %p2457_p2 = pnand %p2168_p0, %p91_p1 }
   0xb   : > { %p2296_p4 = pneg %p2457_p2 }
   0xd   : > { %s104_s13 = sshll.u32 %s5598_s0, 4  ;;  %p2297_p5 = pnand %p2300_p3, %p2296_p4  ;;  %s105_s13 = int_to_ptr.vmem [resolvable:$true] %s104_s13 }
   0xe   : > { %s2400_s15 = scalar_lea.vmem %s105_s13, 48  ;;  %s2407_s16 = scalar_lea.vmem %s105_s13, 64 }
   0xf   : > { %p2401_p6 = scmp.ne.s32.totalorder %s105_s13, %s2400_s15  ;;  %p2402_p7 = pneg %p2297_p5 }
  0x10   : > { %p2408_p10 = scmp.lt.s32.totalorder %s105_s13, %s105_s13  ;;  %p2409_p11 = scmp.lt.s32.totalorder %s2407_s16, %s2400_s15 }
  0x11   : > { %p2403_p8 = pnand %p2402_p7, %p2401_p6 }
  0x12   : > { %p2410_p12 = por %p2409_p11, %p2408_p10 }
  0x13   : > { %p2404_p9 = pneg %p2403_p8 }
  0x15   : > { %p2411_p13 = pnand %p2410_p12, %p2404_p9 }
  0x17   : > { %2414 = shalt.err (!%p2411_p13)
}
  0x18   : > { %s2427_s17 = smov [#allocation2]   ;;  %124 = sbr.rel (%p2457_p2) target bundleno = 803 (0x323), region = 28 }
  0x19   : > { %2299 = dma.vmem_to_smem (!%p2297_p5), %s105_s13, 48, %s2427_s17, [#allocation3]  }
  0x1f   : > { %2420 = dma.done.wait (%p2300_p3), [#allocation3], 48  }
  0x20   : > { %2422 = vsyncadd (%p2300_p3), [#allocation3], 4294967248 }
  0x21   : > { %130 = sfence }
  0x22   : > { %s2473_s18 = sshll.u32 %s2450_s10, 6  ;;  %v766_v13 = vlaneseq }
  0x23   : > { %s2476_s19 = sld [smem:[#allocation2 + %s2473_s18]]  ;;  %s155_s20 = sadd.s32 2, %s2473_s18 }
  0x24   : > { %s2479_s21 = sld [smem:[#allocation2 + %s155_s20]]  ;;  %s169_s22 = sadd.s32 1, %s2473_s18  ;;  %v2666_v14 = vshrl.u32 %v766_v13, 7  ;;  %v2673_v16 = vand.u32 127, %v766_v13 }
  0x25   : > { %s2482_s23 = sld [smem:[#allocation2 + %s169_s22]]  ;;  %s171_s24 = sadd.s32 3, %s2473_s18 }
  0x26   : > { %s2485_s25 = sld [smem:[#allocation2 + %s171_s24]]  ;;  %s157_s26 = sadd.s32 4, %s2473_s18  ;;  %5643 = vst [vmem:[#allocation50_spill] sm:$0xff] %v2666_v14  ;;  %5645 = vst [vmem:[#allocation52_spill] sm:$0xff] %v2673_v16  ;;  %v770_v17 = vmul.u32 128, %v2666_v14 }
  0x27   : > { %s2488_s27 = sld [smem:[#allocation2 + %s157_s26]]  ;;  %s173_s28 = sadd.s32 5, %s2473_s18 }
  0x28   : > { %s2491_s29 = sld [smem:[#allocation2 + %s173_s28]]  ;;  %s159_s30 = sadd.s32 6, %s2473_s18  ;;  %v771_v19 = vadd.s32 %v770_v17, %v2673_v16 }
  0x29   : > { %5600 = sst [smem:[#allocation7_spill]] %s2476_s19  ;;  %s175_s4 = sadd.s32 7, %s2473_s18  ;;  %v795_v13 = vstv %s2476_s19 }
  0x2a   : > { %5601 = sst [smem:[#allocation8_spill]] %s2479_s21  ;;  %s161_s7 = sadd.s32 8, %s2473_s18  ;;  %v772_v21 = vcvt.s32.f32 %v771_v19 }
  0x2b   : > { %5602 = sst [smem:[#allocation9_spill]] %s2482_s23  ;;  %s177_s8 = sadd.s32 9, %s2473_s18 }
  0x2c   : > { %5603 = sst [smem:[#allocation10_spill]] %s2485_s25  ;;  %v773_v22 = vmul.f32 0.0625, %v772_v21 }
  0x2d   : > { %5604 = sst [smem:[#allocation11_spill]] %s2488_s27 }
  0x2e   : > { %5605 = sst [smem:[#allocation12_spill]] %s2491_s29  ;;  %v774_v24 = vfloor.f32 %v773_v22 }
  0x2f   : > { %s2494_s3 = sld [smem:[#allocation2 + %s159_s30]]  ;;  %s2499_s5 = ssub.f32 %s2479_s21, %s2476_s19 }
  0x30   : > { %s2501_s6 = sld [smem:[#allocation2 + %s175_s4]]  ;;  %s2507_s11 = ssub.f32 %s2485_s25, %s2482_s23  ;;  %v2258_v26 = vtrunc.f32 %v774_v24 }
  0x31   : > { %5607 = sst [smem:[#allocation14_spill]] %s2499_s5  ;;  %s187_s12 = smul.f32 %s2499_s5, %s2499_s5 }
  0x32   : > { %5609 = sst [smem:[#allocation16_spill]] %s2507_s11  ;;  %s188_s15 = smul.f32 %s2507_s11, %s2507_s11  ;;  %v2259_v28 = vcvt.f32.s32 %v2258_v26 }
  0x33   : > { %s2513_s13 = ssub.f32 %s2488_s27, %s2479_s21  ;;  %s2515_s14 = sld [smem:[#allocation2 + %s161_s7]] }
  0x34   : > { %s2521_s16 = ssub.f32 %s2491_s29, %s2485_s25  ;;  %s2537_s4 = sld [smem:[#allocation2 + %s177_s8]]  ;;  %v776_v29 = vmul.u32 16, %v2259_v28  ;;  %v781_v31 = vadd.s32 1, %v2259_v28  ;;  %v2180_v34 = vadd.s32 4294967295, %v2259_v28 }
  0x35   : > { %5606 = sst [smem:[#allocation13_spill]] %s2494_s3  ;;  %s202_s17 = smul.f32 %s2513_s13, %s2513_s13 }
  0x36   : > { %5608 = sst [smem:[#allocation15_spill]] %s2501_s6  ;;  %s203_s24 = smul.f32 %s2521_s16, %s2521_s16  ;;  %v2735_v32 = vsub.s32 %v771_v19, %v776_v29 }
  0x37   : > { %5610 = sst [smem:[#allocation17_spill]] %s2513_s13  ;;  %s5725_s11 = sld [smem:[#allocation13_spill]] }
  0x38   : > { %5612 = sst [smem:[#allocation19_spill]] %s2521_s16  ;;  %vm780_vm0 = vcmp.ge.s32.totalorder %v2735_v32, 16  ;;  %vm778_vm1 = vcmp.lt.s32.totalorder %v2735_v32, 0 }
  0x39   : > { %5611 = sst [smem:[#allocation18_spill]] %s2515_s14  ;;  %v782_v35 = vsel %vm780_vm0, %v781_v31, %v2259_v28 }
  0x3a   : > { %s2527_s20 = ssub.f32 %s2494_s3, %s2488_s27  ;;  %v783_v37 = vsel %vm778_vm1, %v2180_v34, %v782_v35 }
  0x3b   : > { %s189_s22 = sadd.f32 %s188_s15, %s187_s12  ;;  %s163_s12 = sadd.s32 10, %s2473_s18  ;;  %v790_v40 = vcvt.s32.f32 %v783_v37 }
  0x3c   : > { %5613 = sst [smem:[#allocation20_spill]] %s2527_s20  ;;  %s217_s28 = smul.f32 %s2527_s20, %s2527_s20 }
  0x3d   : > { %s2533_s26 = ssub.f32 %s2501_s6, %s2491_s29  ;;  %s2546_s2 = sld [smem:[#allocation2 + %s163_s12]]  ;;  %v2794_v43 = vadd.f32 0.5, %v790_v40 }
  0x3e   : > { %s190_s30 = sadd.f32 1e-09, %s189_s22  ;;  %s179_s22 = sadd.s32 11, %s2473_s18 }
  0x3f   : > { %5614 = sst [smem:[#allocation21_spill]] %s2533_s26  ;;  %s218_s0 = smul.f32 %s2533_s26, %s2533_s26 }
  0x40   : > { %5615 = sst [smem:[#allocation22_spill]] %s2537_s4  ;;  %v191_v0 = vstv %s190_s30  ;;  %s181_s12 = sadd.s32 13, %s2473_s18 }
  0x41   : > { %s204_s7 = sadd.f32 %s203_s24, %s202_s17  ;;  %2312 = vrcp.f32 %v191_v0  ;;  %s165_s24 = sadd.s32 12, %s2473_s18 }
  0x42   : > { %s2543_s9 = ssub.f32 %s2515_s14, %s2494_s3  ;;  %s2552_s1 = sld [smem:[#allocation2 + %s179_s22]] }
  0x43   : > { %s205_s15 = sadd.f32 1e-09, %s204_s7  ;;  %s2558_s7 = sld [smem:[#allocation2 + %s165_s24]] }
  0x44   : > { %5616 = sst [smem:[#allocation23_spill]] %s2543_s9  ;;  %s232_s17 = smul.f32 %s2543_s9, %s2543_s9 }
  0x45   : > { %5617 = sst [smem:[#allocation24_spill]] %s2546_s2  ;;  %v206_v1 = vstv %s205_s15  ;;  %s183_s3 = sadd.s32 15, %s2473_s18 }
  0x46   : > { %s219_s8 = sadd.f32 %s218_s0, %s217_s28  ;;  %2314 = vrcp.f32 %v206_v1  ;;  %s167_s0 = sadd.s32 14, %s2473_s18 }
  0x47   : > { %s2556_s10 = ssub.f32 %s2537_s4, %s2501_s6  ;;  %s2570_s22 = sld [smem:[#allocation2 + %s167_s0]] }
  0x48   : > { %s220_s30 = sadd.f32 1e-09, %s219_s8  ;;  %s2568_s8 = sld [smem:[#allocation2 + %s181_s12]] }
  0x49   : > { %5618 = sst [smem:[#allocation25_spill]] %s2552_s1  ;;  %s233_s28 = smul.f32 %s2556_s10, %s2556_s10 }
  0x4a   : > { %5619 = sst [smem:[#allocation26_spill]] %s2556_s10  ;;  %v221_v2 = vstv %s220_s30  ;;  %s2591_s0 = sadd.s32 32, %s2473_s18 }
  0x4b   : > { %5620 = sst [smem:[#allocation27_spill]] %s2558_s7  ;;  %2316 = vrcp.f32 %v221_v2  ;;  %v2313_v3 = vpop.eup %2312 }
  0x4c   : > { %s2566_s15 = ssub.f32 %s2546_s2, %s2515_s14  ;;  %s2579_s10 = sld [smem:[#allocation2 + %s183_s3]]  ;;  %2194 = vpush %v2313_v3 }
  0x4d   : > { %5623 = sst [smem:[#allocation30_spill]] %s2570_s22 }
  0x4e   : > { %5621 = sst [smem:[#allocation28_spill]] %s2566_s15  ;;  %s247_s24 = smul.f32 %s2566_s15, %s2566_s15 }
  0x4f   : > { %5622 = sst [smem:[#allocation29_spill]] %s2568_s8 }
  0x50   : > { %s234_s9 = sadd.f32 %s233_s28, %s232_s17  ;;  %s2588_s17 = sadd.s32 16, %s2473_s18  ;;  %v2315_v5 = vpop.eup %2314 }
  0x51   : > { %s2576_s30 = ssub.f32 %s2552_s1, %s2537_s4  ;;  %2196 = vpush %v2315_v5  ;;  %s317_s20 = sadd.s32 10, %s2588_s17 }
  0x52   : > { %s235_s6 = sadd.f32 1e-09, %s234_s9 }
  0x53   : > { %5624 = sst [smem:[#allocation31_spill]] %s2576_s30  ;;  %s248_s14 = smul.f32 %s2576_s30, %s2576_s30 }
  0x54   : > { %5625 = sst [smem:[#allocation32_spill]] %s2579_s10  ;;  %v236_v4 = vstv %s235_s6  ;;  %s309_s30 = sadd.s32 2, %s2588_s17 }
  0x55   : > { %s2585_s12 = ssub.f32 %s2558_s7, %s2546_s2  ;;  %2318 = vrcp.f32 %v236_v4  ;;  %s2600_s6 = sld [smem:[#allocation2 + %s2588_s17]]  ;;  %v2317_v6 = vpop.eup %2316 }
  0x56   : > { %s249_s9 = sadd.f32 %s248_s14, %s247_s24  ;;  %2198 = vpush %v2317_v6  ;;  %s2613_s24 = sld [smem:[#allocation2 + %s309_s30]] }
  0x57   : > { %5626 = sst [smem:[#allocation33_spill]] %s2585_s12  ;;  %s262_s3 = smul.f32 %s2585_s12, %s2585_s12 }
  0x58   : > { %s2597_s28 = ssub.f32 %s2568_s8, %s2552_s1 }
  0x59   : > { %s250_s2 = sadd.f32 1e-09, %s249_s9 }
  0x5a   : > { %5627 = sst [smem:[#allocation34_spill]] %s2597_s28  ;;  %s263_s15 = smul.f32 %s2597_s28, %s2597_s28 }
  0x5b   : > { %5628 = sst [smem:[#allocation35_spill]] %s2600_s6  ;;  %v251_v7 = vstv %s250_s2  ;;  %s323_s2 = sadd.s32 1, %s2588_s17 }
  0x5c   : > { %s2607_s4 = ssub.f32 %s2570_s22, %s2558_s7  ;;  %2320 = vrcp.f32 %v251_v7  ;;  %v2181_v7 = vadd.s32 4294967280, %v2735_v32 }
  0x5d   : > { %s2611_s14 = ssub.f32 %s2579_s10, %s2568_s8 }
  0x5e   : > { %5629 = sst [smem:[#allocation36_spill]] %s2607_s4  ;;  %s277_s9 = smul.f32 %s2607_s4, %s2607_s4 }
  0x5f   : > { %5630 = sst [smem:[#allocation37_spill]] %s2611_s14  ;;  %s278_s1 = smul.f32 %s2611_s14, %s2611_s14  ;;  %v2319_v9 = vpop.eup %2318 }
  0x60   : > { %5631 = sst [smem:[#allocation38_spill]] %s2613_s24  ;;  %2200 = vpush %v2319_v9 }
  0x61   : > { %s264_s12 = sadd.f32 %s263_s15, %s262_s3  ;;  %s2630_s15 = sld [smem:[#allocation2 + %s323_s2]] }
  0x62   : > { %s2621_s28 = ssub.f32 %s2476_s19, %s2570_s22  ;;  %s325_s22 = sadd.s32 3, %s2588_s17 }
  0x63   : > { %s265_s7 = sadd.f32 1e-09, %s264_s12  ;;  %s2635_s14 = sld [smem:[#allocation2 + %s325_s22]] }
  0x64   : > { %5632 = sst [smem:[#allocation39_spill]] %s2621_s28  ;;  %s292_s26 = smul.f32 %s2621_s28, %s2621_s28 }
  0x65   : > { %s279_s8 = sadd.f32 %s278_s1, %s277_s9  ;;  %v266_v8 = vstv %s265_s7  ;;  %s311_s7 = sadd.s32 4, %s2588_s17 }
  0x66   : > { %s2628_s30 = ssub.f32 %s2482_s23, %s2579_s10  ;;  %2322 = vrcp.f32 %v266_v8  ;;  %s2642_s2 = sld [smem:[#allocation2 + %s311_s7]]  ;;  %v2321_v11 = vpop.eup %2320 }
  0x67   : > { %5634 = sst [smem:[#allocation41_spill]] %s2630_s15  ;;  %s327_s28 = sadd.s32 5, %s2588_s17  ;;  %2202 = vpush %v2321_v11  ;;  %v1106_v44 = vstv %s2630_s15  ;;  %v786_v11 = vsel %vm780_vm0, %v2181_v7, %v2735_v32 }
  0x68   : > { %5633 = sst [smem:[#allocation40_spill]] %s2628_s30  ;;  %s293_s12 = smul.f32 %s2628_s30, %s2628_s30  ;;  %vm2808_vm2 = vcmp.gt.f32.partialorder %v1106_v44, %v2794_v43 }
  0x69   : > { %s280_s3 = sadd.f32 1e-09, %s279_s8  ;;  %s2647_s30 = sld [smem:[#allocation2 + %s327_s28]]  ;;  %v1126_v46 = vstv %s2635_s14 }
  0x6a   : > { %5635 = sst [smem:[#allocation42_spill]] %s2635_s14  ;;  %s329_s10 = sadd.s32 7, %s2588_s17  ;;  %vm2818_vm3 = vcmp.gt.f32.partialorder %v1126_v46, %v2794_v43 }
  0x6b   : > { %v281_v10 = vstv %s280_s3  ;;  %s2639_s1 = ssub.f32 %s2613_s24, %s2600_s6  ;;  %s313_s3 = sadd.s32 6, %s2588_s17 }
  0x6c   : > { %2324 = vrcp.f32 %v281_v10  ;;  %s294_s9 = sadd.f32 %s293_s12, %s292_s26  ;;  %s2655_s26 = sld [smem:[#allocation2 + %s313_s3]]  ;;  %v784_v10 = vadd.s32 16, %v2735_v32  ;;  %v889_v32 = vstv %s5725_s11 }
  0x6d   : > { %5636 = sst [smem:[#allocation43_spill]] %s2639_s1  ;;  %s341_s8 = smul.f32 %s2639_s1, %s2639_s1 }
  0x6e   : > { %5637 = sst [smem:[#allocation44_spill]] %s2642_s2  ;;  %s315_s7 = sadd.s32 8, %s2588_s17 }
  0x6f   : > { %s295_s22 = sadd.f32 1e-09, %s294_s9  ;;  %s2657_s12 = sld [smem:[#allocation2 + %s329_s10]]  ;;  %v1156_v49 = vstv %s2647_s30 }
  0x70   : > { %5638 = sst [smem:[#allocation45_spill]] %s2647_s30  ;;  %v2323_v15 = vpop.eup %2322  ;;  %s331_s3 = sadd.s32 9, %s2588_s17  ;;  %vm2840_vm5 = vcmp.gt.f32.partialorder %v1156_v49, %v2794_v43 }
  0x71   : > { %v296_v12 = vstv %s295_s22  ;;  %s2653_s4 = ssub.f32 %s2635_s14, %s2630_s15  ;;  %s2668_s22 = sld [smem:[#allocation2 + %s315_s7]]  ;;  %2204 = vpush %v2323_v15  ;;  %v5461_v15 = vstv %s2482_s23 }
  0x72   : > { %5640 = sst [smem:[#allocation47_spill]] %s2655_s26  ;;  %2326 = vrcp.f32 %v296_v12  ;;  %s5740_s23 = sld [smem:[#allocation29_spill]] }
  0x73   : > { %5639 = sst [smem:[#allocation46_spill]] %s2653_s4  ;;  %s342_s28 = smul.f32 %s2653_s4, %s2653_s4 }
  0x74   : > { %s2664_s9 = ssub.f32 %s2642_s2, %s2613_s24  ;;  %s2680_s4 = sld [smem:[#allocation2 + %s331_s3]] }
  0x75   : > { %5641 = sst [smem:[#allocation48_spill]] %s2657_s12  ;;  %v1187_v53 = vstv %s2657_s12 }
  0x76   : > { %5642 = sst [smem:[#allocation49_spill]] %s2664_s9  ;;  %s356_s1 = smul.f32 %s2664_s9, %s2664_s9  ;;  %v2325_v18 = vpop.eup %2324  ;;  %vm2866_vm7 = vcmp.gt.f32.partialorder %v1187_v53, %v2794_v43 }
  0x77   : > { %5644 = sst [smem:[#allocation51_spill]] %s2668_s22  ;;  %2206 = vpush %v2325_v18  ;;  %s5745_s11 = sld [smem:[#allocation32_spill]] }
  0x78   : > { %s343_s10 = sadd.f32 %s342_s28, %s341_s8  ;;  %s2694_s3 = sld [smem:[#allocation2 + %s317_s20]] }
  0x79   : > { %s2678_s24 = ssub.f32 %s2647_s30, %s2635_s14  ;;  %s333_s20 = sadd.s32 11, %s2588_s17 }
  0x7a   : > { %5647 = sst [smem:[#allocation54_spill]] %s2680_s4  ;;  %v1218_v58 = vstv %s2680_s4 }
  0x7b   : > { %5646 = sst [smem:[#allocation53_spill]] %s2678_s24  ;;  %s357_s8 = smul.f32 %s2678_s24, %s2678_s24  ;;  %vm2897_vm9 = vcmp.gt.f32.partialorder %v1218_v58, %v2794_v43  ;;  %v3325_v34 = vsub.f32 %v2794_v43, %v1218_v58 }
  0x7c   : > { %s344_s7 = sadd.f32 1e-09, %s343_s10  ;;  %v2327_v23 = vpop.eup %2326 }
  0x7d   : > { %s2688_s28 = ssub.f32 %s2655_s26, %s2642_s2  ;;  %2208 = vpush %v2327_v23 }
  0x7e   : > { %v345_v20 = vstv %s344_s7  ;;  %s2692_s9 = ssub.f32 %s2657_s12, %s2647_s30  ;;  %s484_s30 = sadd.s32 9, %s2591_s0 }
  0x7f   : > { %5648 = sst [smem:[#allocation55_spill]] %s2688_s28  ;;  %2328 = vrcp.f32 %v345_v20  ;;  %s371_s27 = smul.f32 %s2688_s28, %s2688_s28  ;;  %v787_v20 = vsel %vm778_vm1, %v784_v10, %v786_v11  ;;  %v3121_v11 = vsub.f32 %v2794_v43, %v5461_v15 }
  0x80   : > { %5649 = sst [smem:[#allocation56_spill]] %s2692_s9  ;;  %s372_s29 = smul.f32 %s2692_s9, %s2692_s9  ;;  %v788_v31 = vcvt.s32.f32 %v787_v20 }
  0x81   : > { %5650 = sst [smem:[#allocation57_spill]] %s2694_s3  ;;  %s319_s28 = sadd.s32 12, %s2588_s17  ;;  %5764 = vst [vmem:[#allocation107_spill] sm:$0xff] %v3121_v11 }
  0x82   : > { %s358_s10 = sadd.f32 %s357_s8, %s356_s1  ;;  %s2711_s8 = sld [smem:[#allocation2 + %s333_s20]] }
  0x83   : > { %s2702_s24 = ssub.f32 %s2668_s22, %s2655_s26 }
  0x84   : > { %s359_s7 = sadd.f32 1e-09, %s358_s10 }
  0x85   : > { %5651 = sst [smem:[#allocation58_spill]] %s2702_s24  ;;  %s386_s16 = smul.f32 %s2702_s24, %s2702_s24 }
  0x86   : > { %s373_s2 = sadd.f32 %s372_s29, %s371_s27  ;;  %v360_v25 = vstv %s359_s7  ;;  %s2720_s27 = sld [smem:[#allocation2 + %s319_s28]] }
  0x87   : > { %s2709_s1 = ssub.f32 %s2680_s4, %s2657_s12  ;;  %2330 = vrcp.f32 %v360_v25  ;;  %s335_s29 = sadd.s32 13, %s2588_s17 }
  0x88   : > { %5653 = sst [smem:[#allocation60_spill]] %s2711_s8  ;;  %v1249_v62 = vstv %s2711_s8 }
  0x89   : > { %5652 = sst [smem:[#allocation59_spill]] %s2709_s1  ;;  %s387_s10 = smul.f32 %s2709_s1, %s2709_s1  ;;  %v2329_v30 = vpop.eup %2328  ;;  %vm2931_vm11 = vcmp.gt.f32.partialorder %v1249_v62, %v2794_v43 }
  0x8a   : > { %s374_s9 = sadd.f32 1e-09, %s373_s2  ;;  %s2725_s20 = sld [smem:[#allocation2 + %s335_s29]]  ;;  %2210 = vpush %v2329_v30 }
  0x8b   : > { %s2718_s26 = ssub.f32 %s2694_s3, %s2668_s22  ;;  %s321_s1 = sadd.s32 14, %s2588_s17 }
  0x8c   : > { %v375_v27 = vstv %s374_s9  ;;  %5655 = sst [smem:[#allocation62_spill]] %s2720_s27 }
  0x8d   : > { %5654 = sst [smem:[#allocation61_spill]] %s2718_s26  ;;  %2332 = vrcp.f32 %v375_v27  ;;  %s401_s2 = smul.f32 %s2718_s26, %s2718_s26 }
  0x8e   : > { %s388_s7 = sadd.f32 %s387_s10, %s386_s16  ;;  %s2728_s9 = sld [smem:[#allocation2 + %s321_s1]] }
  0x8f   : > { %s2732_s28 = ssub.f32 %s2711_s8, %s2680_s4  ;;  %s337_s16 = sadd.s32 15, %s2588_s17 }
  0x90   : > { %5656 = sst [smem:[#allocation63_spill]] %s2725_s20  ;;  %s462_s17 = sadd.s32 2, %s2591_s0  ;;  %v1280_v2 = vstv %s2725_s20 }
  0x91   : > { %s389_s24 = sadd.f32 1e-09, %s388_s7  ;;  %s2737_s10 = sld [smem:[#allocation2 + %s337_s16]]  ;;  %v2331_v36 = vpop.eup %2330  ;;  %vm2960_vm13 = vcmp.gt.f32.partialorder %v1280_v2, %v2794_v43 }
  0x92   : > { %5658 = sst [smem:[#allocation65_spill]] %s2732_s28  ;;  %s402_s7 = smul.f32 %s2732_s28, %s2732_s28  ;;  %2212 = vpush %v2331_v36 }
  0x93   : > { %v390_v33 = vstv %s389_s24  ;;  %s2740_s29 = sld [smem:[#allocation2 + %s2591_s0]]  ;;  %s2746_s1 = ssub.f32 %s2720_s27, %s2694_s3 }
  0x94   : > { %5657 = sst [smem:[#allocation64_spill]] %s2728_s9  ;;  %2334 = vrcp.f32 %v390_v33  ;;  %s476_s26 = sadd.s32 1, %s2591_s0 }
  0x95   : > { %5661 = sst [smem:[#allocation68_spill]] %s2746_s1  ;;  %s416_s16 = smul.f32 %s2746_s1, %s2746_s1 }
  0x96   : > { %s403_s24 = sadd.f32 %s402_s7, %s401_s2  ;;  %s2760_s3 = sld [smem:[#allocation2 + %s462_s17]] }
  0x97   : > { %5659 = sst [smem:[#allocation66_spill]] %s2737_s10  ;;  %v2333_v38 = vpop.eup %2332  ;;  %s478_s17 = sadd.s32 3, %s2591_s0  ;;  %v1311_v5 = vstv %s2737_s10 }
  0x98   : > { %s2758_s28 = ssub.f32 %s2725_s20, %s2711_s8  ;;  %s2762_s13 = sld [smem:[#allocation2 + %s476_s26]]  ;;  %2214 = vpush %v2333_v38  ;;  %vm2994_vm15 = vcmp.gt.f32.partialorder %v1311_v5, %v2794_v43  ;;  %v5812_v38 = vmov 0 }
  0x99   : > { %5660 = sst [smem:[#allocation67_spill]] %s2740_s29 }
  0x9a   : > { %5662 = sst [smem:[#allocation69_spill]] %s2758_s28  ;;  %s417_s21 = smul.f32 %s2758_s28, %s2758_s28 }
  0x9b   : > { %s404_s22 = sadd.f32 1e-09, %s403_s24 }
  0x9c   : > { %5663 = sst [smem:[#allocation70_spill]] %s2760_s3 }
  0x9d   : > { %s2770_s2 = ssub.f32 %s2728_s9, %s2720_s27  ;;  %v405_v39 = vstv %s404_s22  ;;  %s2785_s27 = sld [smem:[#allocation2 + %s478_s17]] }
  0x9e   : > { %5664 = sst [smem:[#allocation71_spill]] %s2762_s13  ;;  %2336 = vrcp.f32 %v405_v39  ;;  %v2335_v41 = vpop.eup %2334 }
  0x9f   : > { %5665 = sst [smem:[#allocation72_spill]] %s2770_s2  ;;  %s431_s24 = smul.f32 %s2770_s2, %s2770_s2  ;;  %2216 = vpush %v2335_v41 }
  0xa0   : > { %s2774_s7 = ssub.f32 %s2737_s10, %s2725_s20 }
  0xa1   : > { %s418_s26 = sadd.f32 %s417_s21, %s416_s16 }
  0xa2   : > { %5666 = sst [smem:[#allocation73_spill]] %s2774_s7  ;;  %s432_s28 = smul.f32 %s2774_s7, %s2774_s7 }
  0xa3   : > { %s2783_s1 = ssub.f32 %s2600_s6, %s2728_s9  ;;  %s464_s7 = sadd.s32 4, %s2591_s0 }
  0xa4   : > { %s419_s22 = sadd.f32 1e-09, %s418_s26  ;;  %s2796_s26 = sld [smem:[#allocation2 + %s464_s7]] }
  0xa5   : > { %5667 = sst [smem:[#allocation74_spill]] %s2783_s1  ;;  %s446_s21 = smul.f32 %s2783_s1, %s2783_s1 }
  0xa6   : > { %5668 = sst [smem:[#allocation75_spill]] %s2785_s27  ;;  %v420_v42 = vstv %s419_s22  ;;  %s480_s22 = sadd.s32 5, %s2591_s0 }
  0xa7   : > { %s433_s25 = sadd.f32 %s432_s28, %s431_s24  ;;  %2338 = vrcp.f32 %v420_v42  ;;  %s2832_s1 = sld [smem:[#allocation2 + %s480_s22]]  ;;  %v5804_v42 = vmov 0 }
  0xa8   : > { %s2791_s16 = ssub.f32 %s2630_s15, %s2737_s10  ;;  %v2337_v50 = vpop.eup %2336  ;;  %s482_s22 = sadd.s32 7, %s2591_s0 }
  0xa9   : > { %s434_s17 = sadd.f32 1e-09, %s433_s25  ;;  %s466_s25 = sadd.s32 6, %s2591_s0  ;;  %2218 = vpush %v2337_v50  ;;  %v5458_v50 = vstv %s5740_s23 }
  0xaa   : > { %5669 = sst [smem:[#allocation76_spill]] %s2791_s16  ;;  %s447_s28 = smul.f32 %s2791_s16, %s2791_s16 }
  0xab   : > { %5670 = sst [smem:[#allocation77_spill]] %s2796_s26  ;;  %v435_v47 = vstv %s434_s17 }
  0xac   : > { %s2803_s24 = ssub.f32 %s2760_s3, %s2740_s29  ;;  %2340 = vrcp.f32 %v435_v47  ;;  %s2835_s9 = sld [smem:[#allocation2 + %s466_s25]] }
  0xad   : > { %s448_s7 = sadd.f32 %s447_s28, %s446_s21  ;;  %s468_s25 = sadd.s32 8, %s2591_s0 }
  0xae   : > { %5671 = sst [smem:[#allocation78_spill]] %s2803_s24  ;;  %s494_s16 = smul.f32 %s2803_s24, %s2803_s24 }
  0xaf   : > { %s2830_s17 = ssub.f32 %s2785_s27, %s2762_s13  ;;  %s2859_s24 = sld [smem:[#allocation2 + %s482_s22]] }
  0xb0   : > { %5677 = sst [smem:[#allocation80_spill]] %s2832_s1 }
  0xb1   : > { %5676 = sst [smem:[#allocation79_spill]] %s2830_s17  ;;  %s495_s21 = smul.f32 %s2830_s17, %s2830_s17  ;;  %v2339_v55 = vpop.eup %2338 }
  0xb2   : > { %s449_s2 = sadd.f32 1e-09, %s448_s7  ;;  %2220 = vpush %v2339_v55 }
  0xb3   : > { %5678 = sst [smem:[#allocation81_spill]] %s2835_s9 }
  0xb4   : > { %s2848_s28 = ssub.f32 %s2796_s26, %s2760_s3  ;;  %v450_v52 = vstv %s449_s2  ;;  %s2861_s3 = sld [smem:[#allocation2 + %s468_s25]] }
  0xb5   : > { %2342 = vrcp.f32 %v450_v52  ;;  %s496_s7 = sadd.f32 %s495_s21, %s494_s16  ;;  %s2879_s21 = sld [smem:[#allocation2 + %s484_s30]] }
  0xb6   : > { %5681 = sst [smem:[#allocation82_spill]] %s2848_s28  ;;  %s509_s17 = smul.f32 %s2848_s28, %s2848_s28  ;;  %v2341_v57 = vpop.eup %2340 }
  0xb7   : > { %5682 = sst [smem:[#allocation83_spill]] %s2859_s24  ;;  %s470_s25 = sadd.s32 10, %s2591_s0  ;;  %2222 = vpush %v2341_v57 }
  0xb8   : > { %s497_s2 = sadd.f32 1e-09, %s496_s7  ;;  %s2888_s28 = sld [smem:[#allocation2 + %s470_s25]] }
  0xb9   : > { %s2877_s16 = ssub.f32 %s2832_s1, %s2785_s27  ;;  %s5730_s27 = sld [smem:[#allocation18_spill]] }
  0xba   : > { %5683 = sst [smem:[#allocation84_spill]] %s2861_s3  ;;  %v498_v56 = vstv %s497_s2  ;;  %s486_s2 = sadd.s32 11, %s2591_s0 }
  0xbb   : > { %5686 = sst [smem:[#allocation85_spill]] %s2877_s16  ;;  %2344 = vrcp.f32 %v498_v56  ;;  %s510_s7 = smul.f32 %s2877_s16, %s2877_s16 }
  0xbc   : > { %5687 = sst [smem:[#allocation86_spill]] %s2879_s21  ;;  %s5786_s23 = sld [smem:[#allocation83_spill]] }
  0xbd   : > { %s2883_s22 = ssub.f32 %s2835_s9, %s2796_s26  ;;  %s2901_s26 = sld [smem:[#allocation2 + %s486_s2]] }
  0xbe   : > { %5689 = sst [smem:[#allocation88_spill]] %s2888_s28 }
  0xbf   : > { %5688 = sst [smem:[#allocation87_spill]] %s2883_s22  ;;  %s524_s30 = smul.f32 %s2883_s22, %s2883_s22  ;;  %v2343_v60 = vpop.eup %2342  ;;  %v920_v36 = vstv %s5730_s27 }
  0xc0   : > { %s511_s16 = sadd.f32 %s510_s7, %s509_s17  ;;  %s472_s22 = sadd.s32 12, %s2591_s0  ;;  %2224 = vpush %v2343_v60  ;;  %v3094_v60 = vadd.f32 0.5, %v788_v31 }
  0xc1   : > { %s2909_s25 = ssub.f32 %s2859_s24, %s2832_s1  ;;  %s2912_s12 = sld [smem:[#allocation2 + %s472_s22]] }
  0xc2   : > { %s512_s4 = sadd.f32 1e-09, %s511_s16  ;;  %s488_s1 = sadd.s32 13, %s2591_s0  ;;  %5754 = vst [vmem:[#allocation106_spill] sm:$0xff] %v3094_v60  ;;  %v3147_v31 = vsub.f32 %v3094_v60, %v795_v13 }
  0xc3   : > { %5692 = sst [smem:[#allocation89_spill]] %s2901_s26  ;;  %s525_s17 = smul.f32 %s2909_s25, %s2909_s25 }
  0xc4   : > { %5693 = sst [smem:[#allocation90_spill]] %s2909_s25  ;;  %v513_v61 = vstv %s512_s4  ;;  %5768 = vst [vmem:[#allocation109_spill] sm:$0xff] %v3147_v31  ;;  %s5781_s27 = sld [smem:[#allocation57_spill]] }
  0xc5   : > { %s2918_s7 = ssub.f32 %s2861_s3, %s2835_s9  ;;  %2346 = vrcp.f32 %v513_v61  ;;  %v2345_v0 = vpop.eup %2344  ;;  %s474_s9 = sadd.s32 14, %s2591_s0  ;;  %v5460_v61 = vstv %s5745_s11 }
  0xc6   : > { %s2922_s2 = ssub.f32 %s2879_s21, %s2859_s24  ;;  %2226 = vpush %v2345_v0  ;;  %s5729_s24 = sld [smem:[#allocation22_spill]] }
  0xc7   : > { %5694 = sst [smem:[#allocation91_spill]] %s2912_s12  ;;  %s539_s22 = smul.f32 %s2918_s7, %s2918_s7 }
  0xc8   : > { %5695 = sst [smem:[#allocation92_spill]] %s2918_s7  ;;  %s540_s4 = smul.f32 %s2922_s2, %s2922_s2 }
  0xc9   : > { %5696 = sst [smem:[#allocation93_spill]] %s2922_s2  ;;  %s5783_s11 = sld [smem:[#allocation75_spill]] }
  0xca   : > { %s526_s16 = sadd.f32 %s525_s17, %s524_s30  ;;  %s2945_s17 = sld [smem:[#allocation2 + %s488_s1]] }
  0xcb   : > { %s2939_s25 = ssub.f32 %s2888_s28, %s2861_s3  ;;  %s2955_s1 = sld [smem:[#allocation2 + %s474_s9]] }
  0xcc   : > { %s527_s30 = sadd.f32 1e-09, %s526_s16  ;;  %s490_s9 = sadd.s32 15, %s2591_s0  ;;  %v5456_v35 = vstv %s5729_s24 }
  0xcd   : > { %5699 = sst [smem:[#allocation94_spill]] %s2939_s25  ;;  %s554_s2 = smul.f32 %s2939_s25, %s2939_s25  ;;  %v3167_v13 = vsub.f32 %v2794_v43, %v5456_v35 }
  0xce   : > { %s541_s7 = sadd.f32 %s540_s4, %s539_s22  ;;  %v528_v1 = vstv %s527_s30 }
  0xcf   : > { %s2951_s3 = ssub.f32 %s2901_s26, %s2879_s21  ;;  %2348 = vrcp.f32 %v528_v1  ;;  %v2347_v6 = vpop.eup %2346 }
  0xd0   : > { %5700 = sst [smem:[#allocation95_spill]] %s2945_s17  ;;  %2228 = vpush %v2347_v6 }
  0xd1   : > { %5701 = sst [smem:[#allocation96_spill]] %s2951_s3  ;;  %s555_s22 = smul.f32 %s2951_s3, %s2951_s3 }
  0xd2   : > { %s542_s16 = sadd.f32 1e-09, %s541_s7  ;;  %s2976_s7 = sadd.s32 48, %s2473_s18 }
  0xd3   : > { %5702 = sst [smem:[#allocation97_spill]] %s2955_s1  ;;  %s631_s10 = sadd.s32 3, %s2976_s7 }
  0xd4   : > { %s2968_s4 = ssub.f32 %s2912_s12, %s2888_s28  ;;  %v543_v4 = vstv %s542_s16  ;;  %s2984_s28 = sld [smem:[#allocation2 + %s490_s9]] }
  0xd5   : > { %2350 = vrcp.f32 %v543_v4  ;;  %s556_s30 = sadd.f32 %s555_s22, %s554_s2  ;;  %s2988_s20 = sld [smem:[#allocation2 + %s2976_s7]] }
  0xd6   : > { %5705 = sst [smem:[#allocation98_spill]] %s2968_s4  ;;  %s569_s3 = smul.f32 %s2968_s4, %s2968_s4 }
  0xd7   : > { %s2982_s25 = ssub.f32 %s2945_s17, %s2901_s26  ;;  %s615_s22 = sadd.s32 2, %s2976_s7 }
  0xd8   : > { %s557_s16 = sadd.f32 1e-09, %s556_s30  ;;  %s5713_s4 = sld [smem:[#allocation10_spill]] }
  0xd9   : > { %5706 = sst [smem:[#allocation99_spill]] %s2982_s25  ;;  %s570_s18 = smul.f32 %s2982_s25, %s2982_s25  ;;  %v2349_v12 = vpop.eup %2348 }
  0xda   : > { %5707 = sst [smem:[#allocation100_spill]] %s2984_s28  ;;  %v558_v9 = vstv %s557_s16  ;;  %2230 = vpush %v2349_v12  ;;  %s617_s15 = sadd.s32 4, %s2976_s7 }
  0xdb   : > { %s3002_s0 = ssub.f32 %s2955_s1, %s2912_s12  ;;  %2352 = vrcp.f32 %v558_v9  ;;  %s3018_s16 = sld [smem:[#allocation2 + %s615_s22]]  ;;  %v5499_v9 = vstv %s5786_s23 }
  0xdc   : > { %s3010_s2 = ssub.f32 %s2740_s29, %s2955_s1  ;;  %s5714_s1 = sld [smem:[#allocation8_spill]]  ;;  %vm3286_vm10 = vcmp.gt.f32.partialorder %v5499_v9, %v2794_v43 }
  0xdd   : > { %5710 = sst [smem:[#allocation101_spill]] %s3002_s0  ;;  %s5719_s22 = sld [smem:[#allocation12_spill]]  ;;  %v5805_v42 = vsel %vm3286_vm10, 4294967295, %v5804_v42  ;;  %vm5972_vm10 = vmxor %vm2818_vm3, %vm2840_vm5 }
  0xde   : > { %5711 = sst [smem:[#allocation102_spill]] %s3010_s2  ;;  %s5724_s29 = sld [smem:[#allocation15_spill]]  ;;  %v5453_v21 = vstv %s5713_s4  ;;  %5806 = vst [vmem:[#allocation112_spill] sm:$0xff] %v5805_v42 }
  0xdf   : > { %s571_s9 = sadd.f32 %s570_s18, %s569_s3  ;;  %s629_s3 = sadd.s32 1, %s2976_s7  ;;  %v2351_v23 = vpop.eup %2350  ;;  %v3126_v12 = vsub.f32 %v2794_v43, %v5453_v21  ;;  %v3162_v21 = vsub.f32 %v3094_v60, %v920_v36 }
  0xe0   : > { %s3026_s18 = ssub.f32 %s2984_s28, %s2945_s17  ;;  %s3028_s30 = sld [smem:[#allocation2 + %s629_s3]]  ;;  %2232 = vpush %v2351_v23 }
  0xe1   : > { %5712 = sst [smem:[#allocation103_spill]] %s3018_s16  ;;  %s5735_s26 = sld [smem:[#allocation24_spill]] }
  0xe2   : > { %s572_s12 = sadd.f32 1e-09, %s571_s9  ;;  %s5720_s9 = sld [smem:[#allocation11_spill]]  ;;  %v827_v22 = vstv %s5714_s1 }
  0xe3   : > { %5715 = sst [smem:[#allocation104_spill]] %s3026_s18  ;;  %v5466_v26 = vstv %s5719_s22  ;;  %s633_s3 = sadd.s32 5, %s2976_s7 }
  0xe4   : > { %v573_v19 = vstv %s572_s12  ;;  %s3040_s17 = ssub.f32 %s2762_s13, %s2984_s28  ;;  %s585_s12 = smul.f32 %s3026_s18, %s3026_s18  ;;  %v5462_v30 = vstv %s5724_s29 }
  0xe5   : > { %2354 = vrcp.f32 %v573_v19  ;;  %s3049_s28 = sld [smem:[#allocation2 + %s631_s10]]  ;;  %s5734_s18 = smul.f32 %s3002_s0, %s3002_s0  ;;  %v2353_v47 = vpop.eup %2352  ;;  %v3131_v19 = vsub.f32 %v2794_v43, %v5466_v26  ;;  %v3136_v20 = vsub.f32 %v2794_v43, %v5462_v30  ;;  %v1260_v26 = vstv %s5781_s27 }
  0xe6   : > { %5716 = sst [smem:[#allocation105_spill]] %s3028_s30  ;;  %s600_s13 = smul.f32 %s3040_s17, %s3040_s17  ;;  %2234 = vpush %v2353_v47  ;;  %v3152_v47 = vsub.f32 %v3094_v60, %v827_v22  ;;  %v3328_v33 = vsub.f32 %v3094_v60, %v1260_v26 }
  0xe7   : > { %5721 = sst [smem:[#allocation11_spill]] %s3040_s17  ;;  %s5733_s10 = sld [smem:[#allocation25_spill]]  ;;  %v951_v40 = vstv %s5735_s26  ;;  %5766 = vst [vmem:[#allocation108_spill] sm:$0xff] %v3131_v19 }
  0xe8   : > { %v858_v27 = vstv %s5720_s9  ;;  %s586_s19 = sadd.f32 %s585_s12, %s5734_s18  ;;  %s3064_s25 = sld [smem:[#allocation2 + %s617_s15]]  ;;  %v3170_v22 = vsub.f32 %v3094_v60, %v951_v40  ;;  %v3190_v40 = vsub.f32 %v2794_v43, %v5458_v50  ;;  %v3209_v50 = vsub.f32 %v2794_v43, %v1106_v44 }
  0xe9   : > { %s5739_s17 = smul.f32 %s3010_s2, %s3010_s2  ;;  %s5741_s9 = sld [smem:[#allocation27_spill]] }
  0xea   : > { %s587_s15 = sadd.f32 1e-09, %s586_s19  ;;  %s3077_s18 = sld [smem:[#allocation2 + %s633_s3]] }
  0xeb   : > { %5727 = sst [smem:[#allocation13_spill]] %s3049_s28  ;;  %s5746_s12 = sld [smem:[#allocation30_spill]] }
  0xec   : > { %s601_s6 = sadd.f32 %s600_s13, %s5739_s17  ;;  %s619_s17 = sadd.s32 6, %s2976_s7  ;;  %v588_v57 = vstv %s587_s15 }
  0xed   : > { %v5457_v39 = vstv %s5733_s10  ;;  %s5749_s19 = sld [smem:[#allocation35_spill]]  ;;  %s3090_s3 = ssub.f32 %s3018_s16, %s2988_s20  ;;  %2356 = vrcp.f32 %v588_v57  ;;  %v3155_v57 = vsub.f32 %v3094_v60, %v858_v27 }
  0xee   : > { %5737 = sst [smem:[#allocation18_spill]] %s3064_s25  ;;  %s635_s15 = sadd.s32 7, %s2976_s7 }
  0xef   : > { %s602_s13 = sadd.f32 1e-09, %s601_s6  ;;  %v982_v52 = vstv %s5741_s9  ;;  %s3092_s4 = sld [smem:[#allocation2 + %s619_s17]]  ;;  %v2355_v23 = vpop.eup %2354  ;;  %5770 = vst [vmem:[#allocation110_spill] sm:$0xff] %v3155_v57 }
  0xf0   : > { %5744 = sst [smem:[#allocation24_spill]] %s3077_s18  ;;  %s647_s5 = smul.f32 %s3090_s3, %s3090_s3  ;;  %2236 = vpush %v2355_v23  ;;  %v3185_v36 = vsub.f32 %v3094_v60, %v982_v52  ;;  %v3201_v52 = vsub.f32 %v2794_v43, %v5460_v61  ;;  %v3219_v61 = vsub.f32 %v2794_v43, %v1126_v46 }
  0xf1   : > { %5751 = sst [smem:[#allocation27_spill]] %s3090_s3  ;;  %v1013_v0 = vstv %s5746_s12  ;;  %v603_v1 = vstv %s602_s13  ;;  %s5765_s1 = sld [smem:[#allocation38_spill]] }
  0xf2   : > { %s3100_s14 = ssub.f32 %s3049_s28, %s3028_s30  ;;  %2358 = vrcp.f32 %v603_v1  ;;  %s3116_s13 = sld [smem:[#allocation2 + %s635_s15]]  ;;  %v3158_v1 = vsub.f32 %v3094_v60, %v889_v32  ;;  %v3182_v32 = vsub.f32 %v2794_v43, %v5457_v39  ;;  %v3196_v35 = vsub.f32 %v3094_v60, %v1013_v0 }
  0xf3   : > { %s3109_s2 = ssub.f32 %s3064_s25, %s3018_s16  ;;  %v1104_v7 = vstv %s5749_s19  ;;  %s5769_s9 = sld [smem:[#allocation44_spill]] }
  0xf4   : > { %5759 = sst [smem:[#allocation35_spill]] %s3100_s14  ;;  %s648_s12 = smul.f32 %s3100_s14, %s3100_s14  ;;  %v3204_v39 = vsub.f32 %v3094_v60, %v1104_v7 }
  0xf5   : > { %5753 = sst [smem:[#allocation30_spill]] %s3092_s4  ;;  %s662_s15 = smul.f32 %s3109_s2, %s3109_s2 }
  0xf6   : > { %5762 = sst [smem:[#allocation7_spill]] %s3109_s2  ;;  %s621_s8 = sadd.s32 8, %s2976_s7 }
  0xf7   : > { %s3140_s19 = ssub.f32 %s3077_s18, %s3049_s28  ;;  %v1136_v27 = vstv %s5765_s1  ;;  %s3193_s24 = sld [smem:[#allocation2 + %s621_s8]]  ;;  %v2357_v10 = vpop.eup %2356 }
  0xf8   : > { %5763 = sst [smem:[#allocation8_spill]] %s3116_s13  ;;  %s5778_s10 = sld [smem:[#allocation47_spill]]  ;;  %v3214_v0 = vsub.f32 %v3094_v60, %v1136_v27  ;;  %v3234_v27 = vsub.f32 %v2794_v43, %v1156_v49  ;;  %2238 = vpush %v2357_v10  ;;  %v5797_v10 = vmov 0 }
  0xf9   : > { %5767 = sst [smem:[#allocation38_spill]] %s3140_s19  ;;  %s663_s29 = smul.f32 %s3140_s19, %s3140_s19  ;;  %v1167_v23 = vstv %s5769_s9 }
  0xfa   : > { %s649_s6 = sadd.f32 %s648_s12, %s647_s5  ;;  %s5780_s8 = sld [smem:[#allocation51_spill]]  ;;  %v3229_v44 = vsub.f32 %v3094_v60, %v1167_v23  ;;  %v1434_v23 = vstv %s5783_s11 }
  0xfb   : > { %s3177_s22 = ssub.f32 %s3092_s4, %s3064_s25  ;;  %s5782_s17 = sld [smem:[#allocation71_spill]]  ;;  %vm3262_vm0 = vcmp.gt.f32.partialorder %v1434_v23, %v2794_v43  ;;  %v3429_v18 = vsub.f32 %v2794_v43, %v1434_v23 }
  0xfc   : > { %s650_s1 = sadd.f32 1e-09, %s649_s6  ;;  %s623_s12 = sadd.s32 10, %s2976_s7  ;;  %v2359_v6 = vpop.eup %2358 }
  0xfd   : > { %5774 = sst [smem:[#allocation44_spill]] %s3177_s22  ;;  %2240 = vpush %v2359_v6  ;;  %s5811_s14 = sld [smem:[#allocation64_spill]] }
  0xfe   : > { %5777 = sst [smem:[#allocation41_spill]] %s3193_s24  ;;  %v651_v30 = vstv %s650_s1  ;;  %v1198_v46 = vstv %s5778_s10  ;;  %s5789_s10 = sld [smem:[#allocation86_spill]] }
  0xff   : > { %s664_s6 = sadd.f32 %s663_s29, %s662_s15  ;;  %s5785_s29 = sld [smem:[#allocation80_spill]]  ;;  %2360 = vrcp.f32 %v651_v30 }
 0x100   : > { %s3225_s19 = ssub.f32 %s3116_s13, %s3077_s18  ;;  %s637_s15 = sadd.s32 9, %s2976_s7  ;;  %v1229_v15 = vstv %s5780_s8 }
 0x101   : > { %s665_s21 = sadd.f32 1e-09, %s664_s6  ;;  %s3237_s26 = sld [smem:[#allocation2 + %s637_s15]]  ;;  %v1414_v49 = vstv %s5782_s17  ;;  %v3320_v37 = vsub.f32 %v3094_v60, %v1229_v15  ;;  %v3345_v15 = vsub.f32 %v2794_v43, %v1249_v62 }
 0x102   : > { %5784 = sst [smem:[#allocation42_spill]] %s3225_s19  ;;  %s678_s1 = smul.f32 %s3225_s19, %s3225_s19  ;;  %vm3255_vm1 = vcmp.gt.f32.partialorder %v1414_v49, %v2794_v43 }
 0x103   : > { %v666_v7 = vstv %s665_s21  ;;  %s3249_s27 = sld [smem:[#allocation2 + %s623_s12]]  ;;  %s639_s8 = sadd.s32 11, %s2976_s7  ;;  %v1322_v26 = vstv %s5811_s14 }
 0x104   : > { %s5791_s6 = sld [smem:[#allocation62_spill]]  ;;  %s5792_s15 = sld [smem:[#allocation67_spill]]  ;;  %2362 = vrcp.f32 %v666_v7  ;;  %v5498_v6 = vstv %s5789_s10  ;;  %v3297_v7 = vsub.f32 %v3094_v60, %v1198_v46  ;;  %v3317_v46 = vsub.f32 %v2794_v43, %v1187_v53 }
 0x105   : > { %v5500_v30 = vstv %s5785_s29  ;;  %s5800_s21 = smul.f32 %s3177_s22, %s3177_s22  ;;  %s3276_s9 = sld [smem:[#allocation2 + %s639_s8]]  ;;  %vm3308_vm8 = vcmp.gt.f32.partialorder %v5498_v6, %v2794_v43  ;;  %v3360_v53 = vsub.f32 %v2794_v43, %v1280_v2  ;;  %v3381_v2 = vsub.f32 %v3094_v60, %v1322_v26 }
 0x106   : > { %vm3269_vm14 = vcmp.gt.f32.partialorder %v5500_v30, %v2794_v43  ;;  %s3293_s22 = ssub.f32 %s3193_s24, %s3092_s4  ;;  %s625_s8 = sadd.s32 12, %s2976_s7  ;;  %v5813_v38 = vsel %vm3308_vm8, 4294967295, %v5812_v38  ;;  %v3397_v26 = vsub.f32 %v2794_v43, %v1414_v49  ;;  %v5847_v16 = vstv %s5785_s29 }
 0x107   : > { %5787 = sst [smem:[#allocation45_spill]] %s3237_s26  ;;  %v5798_v10 = vsel %vm3269_vm14, 4294967295, %v5797_v10  ;;  %5814 = vst [vmem:[#allocation113_spill] sm:$0xff] %v5813_v38  ;;  %s5819_s2 = sld [smem:[#allocation65_spill]]  ;;  %v3441_v24 = vsub.f32 %v2794_v43, %v5847_v16  ;;  %v5859_v38 = vmov 0 }
 0x108   : > { %5799 = vst [vmem:[#allocation111_spill] sm:$0xff] %v5798_v10  ;;  %s679_s19 = sadd.f32 %s678_s1, %s5800_s21  ;;  %s3312_s3 = sld [smem:[#allocation2 + %s625_s8]] }
 0x109   : > { %5790 = sst [smem:[#allocation47_spill]] %s3249_s27  ;;  %s692_s12 = smul.f32 %s3293_s22, %s3293_s22  ;;  %v2361_v28 = vpop.eup %2360  ;;  %5848 = vst [vmem:[#allocation116_spill] sm:$0xff] %v3441_v24 }
 0x10a   : > { %5807 = sst [smem:[#allocation57_spill]] %s3293_s22  ;;  %v1291_v55 = vstv %s5791_s6  ;;  %v1412_v41 = vstv %s5792_s15  ;;  %s5820_s8 = sld [smem:[#allocation70_spill]]  ;;  %2242 = vpush %v2361_v28 }
 0x10b   : > { %5802 = sst [smem:[#allocation51_spill]] %s3276_s9  ;;  %s5822_s18 = sld [smem:[#allocation77_spill]]  ;;  %v3355_v58 = vsub.f32 %v3094_v60, %v1291_v55  ;;  %v3363_v62 = vsub.f32 %v3094_v60, %v1412_v41 }
 0x10c   : > { %s680_s4 = sadd.f32 1e-09, %s679_s19  ;;  %s641_s22 = sadd.s32 13, %s2976_s7 }
 0x10d   : > { %s3336_s19 = ssub.f32 %s3237_s26, %s3116_s13  ;;  %s5823_s25 = sld [smem:[#allocation89_spill]] }
 0x10e   : > { %5815 = sst [smem:[#allocation71_spill]] %s3312_s3  ;;  %v681_v29 = vstv %s680_s4  ;;  %s5824_s14 = sld [smem:[#allocation68_spill]]  ;;  %v2363_v6 = vpop.eup %2362 }
 0x10f   : > { %5817 = sst [smem:[#allocation75_spill]] %s3336_s19  ;;  %2364 = vrcp.f32 %v681_v29  ;;  %s5825_s5 = sld [smem:[#allocation69_spill]]  ;;  %v3386_v29 = vsub.f32 %v2794_v43, %v1311_v5  ;;  %v5834_v5 = vmov 0  ;;  %2244 = vpush %v2363_v6  ;;  %v5857_v6 = vstv %s5786_s23 }
 0x110   : > { %s693_s21 = smul.f32 %s3336_s19, %s3336_s19  ;;  %s3369_s4 = ssub.f32 %s3249_s27, %s3193_s24  ;;  %v1444_v55 = vstv %s5820_s8  ;;  %v3458_v14 = vsub.f32 %v2794_v43, %v5857_v6 }
 0x111   : > { %s3376_s6 = ssub.f32 %s3276_s9, %s3237_s26  ;;  %s3378_s0 = sld [smem:[#allocation2 + %s641_s22]]  ;;  %v1475_v41 = vstv %s5822_s18  ;;  %v3413_v49 = vsub.f32 %v3094_v60, %v1444_v55 }
 0x112   : > { %5826 = sst [smem:[#allocation80_spill]] %s3369_s4  ;;  %s5831_s24 = sld [smem:[#allocation81_spill]]  ;;  %v3432_v55 = vsub.f32 %v3094_v60, %v1475_v41  ;;  %5858 = vst [vmem:[#allocation118_spill] sm:$0xff] %v3458_v14  ;;  %v5866_v14 = vstv %s5789_s10 }
 0x113   : > { %5827 = sst [smem:[#allocation83_spill]] %s3376_s6  ;;  %v1557_v25 = vstv %s5823_s25  ;;  %s707_s26 = smul.f32 %s3369_s4, %s3369_s4  ;;  %v3488_v42 = vsub.f32 %v2794_v43, %v5866_v14 }
 0x114   : > { %s694_s8 = sadd.f32 %s693_s21, %s692_s12  ;;  %s5833_s15 = sld [smem:[#allocation76_spill]]  ;;  %vm3400_vm12 = vcmp.gt.f32.partialorder %v1557_v25, %v2794_v43  ;;  %5845 = vst [vmem:[#allocation115_spill] sm:$0xff] %v3432_v55 }
 0x115   : > { %v5835_v5 = vsel %vm3400_vm12, 4294967295, %v5834_v5  ;;  %s708_s25 = smul.f32 %s3376_s6, %s3376_s6  ;;  %s3408_s18 = ssub.f32 %s3312_s3, %s3249_s27  ;;  %5868 = vst [vmem:[#allocation121_spill] sm:$0xff] %v3488_v42  ;;  %v3502_v42 = vsub.f32 %v2794_v43, %v1557_v25 }
 0x116   : > { %5836 = vst [vmem:[#allocation114_spill] sm:$0xff] %v5835_v5  ;;  %s5839_s13 = sld [smem:[#allocation79_spill]]  ;;  %s5840_s17 = sld [smem:[#allocation84_spill]] }
 0x117   : > { %5829 = sst [smem:[#allocation86_spill]] %s3378_s0  ;;  %s5841_s12 = sadd.s32 14, %s2976_s7  ;;  %5873 = vst [vmem:[#allocation123_spill] sm:$0xff] %v3502_v42 }
 0x118   : > { %5838 = sst [smem:[#allocation62_spill]] %s3408_s18  ;;  %v1506_v17 = vstv %s5831_s24  ;;  %s5843_s4 = sld [smem:[#allocation88_spill]] }
 0x119   : > { %s695_s21 = sadd.f32 1e-09, %s694_s8  ;;  %s3422_s27 = sld [smem:[#allocation2 + %s5841_s12]]  ;;  %v3448_v9 = vsub.f32 %v3094_v60, %v1506_v17  ;;  %v2365_v17 = vpop.eup %2364 }
 0x11a   : > { %s5844_s6 = sld [smem:[#allocation95_spill]]  ;;  %s709_s24 = sadd.f32 %s708_s25, %s707_s26  ;;  %2246 = vpush %v2365_v17 }
 0x11b   : > { %s5849_s11 = sld [smem:[#allocation14_spill]]  ;;  %s5850_s8 = sld [smem:[#allocation85_spill]]  ;;  %v696_v41 = vstv %s695_s21  ;;  %5853 = vst [vmem:[#allocation117_spill] sm:$0xff] %v3448_v9 }
 0x11c   : > { %v1537_v23 = vstv %s5840_s17  ;;  %s643_s26 = sadd.s32 15, %s2976_s7  ;;  %s3445_s25 = spop %2194  ;;  %2366 = vrcp.f32 %v696_v41 }
 0x11d   : > { %s5854_s29 = sld [smem:[#allocation16_spill]]  ;;  %s710_s16 = sadd.f32 1e-09, %s709_s24  ;;  %v3475_v16 = vsub.f32 %v3094_v60, %v1537_v23 }
 0x11e   : > { %v1568_v30 = vstv %s5843_s4  ;;  %s3452_s17 = sld [smem:[#allocation2 + %s643_s26]]  ;;  %s3467_s7 = ssub.f32 %s3378_s0, %s3276_s9 }
 0x11f   : > { %5842 = sst [smem:[#allocation67_spill]] %s3422_s27  ;;  %5864 = vst [vmem:[#allocation120_spill] sm:$0xff] %v3475_v16  ;;  %v711_v6 = vstv %s710_s16  ;;  %s3483_s24 = spop %2196  ;;  %v3491_v23 = vsub.f32 %v3094_v60, %v1568_v30 }
 0x120   : > { %v1588_v28 = vstv %s5844_s6  ;;  %s5856_s22 = sld [smem:[#allocation91_spill]]  ;;  %5862 = sst [smem:[#allocation54_spill]] %s3467_s7  ;;  %2368 = vrcp.f32 %v711_v6 }
 0x121   : > { %vm3461_vm6 = vcmp.gt.f32.partialorder %v1588_v28, %v2794_v43  ;;  %s194_s4 = smul.f32 %s3445_s25, %s5849_s11  ;;  %s5865_s21 = sld [smem:[#allocation17_spill]]  ;;  %5870 = vst [vmem:[#allocation122_spill] sm:$0xff] %v3491_v23  ;;  %v3532_v10 = vsub.f32 %v2794_v43, %v1588_v28 }
 0x122   : > { %v5860_v38 = vsel %vm3461_vm6, 4294967295, %v5859_v38  ;;  %s5867_s26 = sld [smem:[#allocation100_spill]]  ;;  %s5869_s9 = sld [smem:[#allocation97_spill]] }
 0x123   : > { %5861 = vst [vmem:[#allocation119_spill] sm:$0xff] %v5860_v38  ;;  %s195_s23 = smul.f32 %s3445_s25, %s5854_s29  ;;  %s5871_s16 = sld [smem:[#allocation93_spill]]  ;;  %v799_v5 = vstv %s194_s4  ;;  %5881 = vst [vmem:[#allocation125_spill] sm:$0xff] %v3532_v10 }
 0x124   : > { %5855 = sst [smem:[#allocation48_spill]] %s3452_s17  ;;  %s723_s25 = smul.f32 %s3467_s7, %s3467_s7  ;;  %v800_v30 = vmul.f32 %v799_v5, %v3147_v31  ;;  %v1720_v5 = vstv %s2988_s20 }
 0x125   : > { %s3498_s12 = ssub.f32 %s3422_s27, %s3312_s3  ;;  %v801_v6 = vstv %s195_s23  ;;  %s5876_s3 = sld [smem:[#allocation19_spill]] }
 0x126   : > { %v1599_v41 = vstv %s5856_s22  ;;  %s3506_s19 = ssub.f32 %s2988_s20, %s3422_s27  ;;  %s5877_s4 = smul.f32 %s3408_s18, %s3408_s18  ;;  %v802_v25 = vmul.f32 %v801_v6, %v3121_v11  ;;  %v5882_v6 = vmov 0  ;;  %v2367_v10 = vpop.eup %2366 }
 0x127   : > { %5872 = sst [smem:[#allocation60_spill]] %s3498_s12  ;;  %s209_s22 = smul.f32 %s3483_s24, %s5865_s21  ;;  %v3521_v14 = vsub.f32 %v3094_v60, %v1599_v41  ;;  %2248 = vpush %v2367_v10  ;;  %v5903_v10 = vstv %s3049_s28 }
 0x128   : > { %5875 = sst [smem:[#allocation64_spill]] %s3506_s19  ;;  %v1619_v23 = vstv %s5867_s26  ;;  %v1630_v16 = vstv %s5869_s9  ;;  %v803_v41 = vadd.f32 %v802_v25, %v800_v30  ;;  %v3560_v25 = vsub.f32 %v3094_v60, %v1720_v5  ;;  %s3565_s27 = spop %2198 }
 0x129   : > { %s5878_s7 = sld [smem:[#allocation96_spill]]  ;;  %s724_s1 = sadd.f32 %s723_s25, %s5877_s4  ;;  %5879 = vst [vmem:[#allocation124_spill] sm:$0xff] %v3521_v14  ;;  %v830_v42 = vstv %s209_s22  ;;  %vm3535_vm4 = vcmp.gt.f32.partialorder %v1619_v23, %v2794_v43  ;;  %v3547_v9 = vsub.f32 %v3094_v60, %v1630_v16  ;;  %v3550_v28 = vsub.f32 %v2794_v43, %v1619_v23 }
 0x12a   : > { %s3526_s23 = ssub.f32 %s3452_s17, %s3378_s0  ;;  %v5883_v6 = vsel %vm3535_vm4, 4294967295, %v5882_v6  ;;  %s5885_s25 = sld [smem:[#allocation103_spill]]  ;;  %v831_v30 = vmul.f32 %v830_v42, %v3152_v47  ;;  %5891 = vst [vmem:[#allocation129_spill] sm:$0xff] %v3560_v25  ;;  %v804_v38 = vmax.f32 %v803_v41, 0.0  ;;  %v5899_v25 = vstv %s3028_s30  ;;  %vm5962_vm4 = vmxor %vm2808_vm2, %vm2818_vm3 }
 0x12b   : > { %5884 = vst [vmem:[#allocation126_spill] sm:$0xff] %v5883_v6  ;;  %s725_s9 = sadd.f32 1e-09, %s724_s1  ;;  %s210_s20 = smul.f32 %s3483_s24, %s5876_s3  ;;  %5886 = vst [vmem:[#allocation127_spill] sm:$0xff] %v3547_v9  ;;  %v3583_v14 = vsub.f32 %v2794_v43, %v5899_v25  ;;  %v2369_v25 = vpop.eup %2368  ;;  %v5908_v41 = vstv %s5854_s29 }
 0x12c   : > { %5880 = sst [smem:[#allocation63_spill]] %s3526_s23  ;;  %5887 = vst [vmem:[#allocation128_spill] sm:$0xff] %v3550_v28  ;;  %s738_s22 = smul.f32 %s3526_s23, %s3526_s23  ;;  %v805_v16 = vmin.f32 %v804_v38, 1.0  ;;  %2250 = vpush %v2369_v25 }
 0x12d   : > { %s3556_s1 = ssub.f32 %s3028_s30, %s3452_s17  ;;  %s5889_s24 = sld [smem:[#allocation98_spill]]  ;;  %v726_v9 = vstv %s725_s9  ;;  %v832_v23 = vstv %s210_s20  ;;  %5900 = vst [vmem:[#allocation130_spill] sm:$0xff] %v3583_v14 }
 0x12e   : > { %s5890_s4 = sld [smem:[#allocation99_spill]]  ;;  %s5893_s6 = sld [smem:[#allocation104_spill]]  ;;  %2370 = vrcp.f32 %v726_v9  ;;  %v833_v42 = vmul.f32 %v832_v23, %v3126_v12  ;;  %v3597_v9 = vsub.f32 %v2794_v43, %v5903_v10  ;;  %v810_v5 = vmul.f32 %v5908_v41, %v805_v16 }
 0x12f   : > { %5888 = sst [smem:[#allocation65_spill]] %s3556_s1  ;;  %p211_p0 = scmp.lt.f32.partialorder %s5876_s3, 0.0 }
 0x130   : > { %v1752_v28 = vstv %s5885_s25  ;;  %s5894_s17 = sld [smem:[#allocation20_spill]]  ;;  %s5895_s0 = smul.f32 %s3498_s12, %s3498_s12  ;;  %v834_v23 = vadd.f32 %v833_v42, %v831_v30  ;;  %5904 = vst [vmem:[#allocation132_spill] sm:$0xff] %v3597_v9  ;;  %v5907_v30 = vstv %s5849_s11 }
 0x131   : > { %s753_s18 = smul.f32 %s3556_s1, %s3556_s1  ;;  %s5896_s9 = sld [smem:[#allocation18_spill]]  ;;  %v3592_v38 = vsub.f32 %v3094_v60, %v1752_v28  ;;  %v807_v42 = vmul.f32 %v5907_v30, %v805_v16  ;;  %v811_v16 = vsub.f32 %v3121_v11, %v810_v5 }
 0x132   : > { %s739_s23 = sadd.f32 %s738_s22, %s5895_s0  ;;  %s5898_s10 = sld [smem:[#allocation24_spill]]  ;;  %v835_v9 = vmax.f32 %v834_v23, 0.0 }
 0x133   : > { %s3576_s25 = scalar_select %p211_p0, -1.0, 1.0  ;;  %5902 = vst [vmem:[#allocation131_spill] sm:$0xff] %v3592_v38  ;;  %v808_v24 = vsub.f32 %v3147_v31, %v807_v42  ;;  %v813_v42 = vmul.f32 %v811_v16, %v811_v16 }
 0x134   : > { %s740_s0 = sadd.f32 1e-09, %s739_s23  ;;  %s5905_s12 = sld [smem:[#allocation21_spill]]  ;;  %v836_v25 = vmin.f32 %v835_v9, 1.0  ;;  %v5918_v9 = vstv %s5876_s3 }
 0x135   : > { %s5906_s23 = smul.f32 %s3506_s19, %s3506_s19  ;;  %s5910_s28 = sld [smem:[#allocation30_spill]]  ;;  %v812_v14 = vmul.f32 %v808_v24, %v808_v24 }
 0x136   : > { %s224_s1 = smul.f32 %s3565_s27, %s5894_s17  ;;  %v741_v10 = vstv %s740_s0  ;;  %v841_v31 = vmul.f32 %v5918_v9, %v836_v25  ;;  %s5919_s29 = sld [smem:[#allocation26_spill]] }
 0x137   : > { %v1783_v17 = vstv %s5896_s9  ;;  %s754_s30 = sadd.f32 %s753_s18, %s5906_s23  ;;  %2372 = vrcp.f32 %v741_v10  ;;  %s213_s23 = smul.f32 %s3576_s25, %s5876_s3 }
 0x138   : > { %v5558_v28 = vstv %s5898_s10  ;;  %v861_v38 = vstv %s224_s1  ;;  %v3615_v41 = vsub.f32 %v3094_v60, %v1783_v17  ;;  %s5913_s1 = sld [smem:[#allocation8_spill]]  ;;  %s214_s11 = smul.f32 %s3576_s25, %s5865_s21  ;;  %v5917_v17 = vstv %s5865_s21  ;;  %v2371_v16 = vpop.eup %2370 }
 0x139   : > { %s755_s18 = sadd.f32 1e-09, %s754_s30  ;;  %v3623_v30 = vsub.f32 %v2794_v43, %v5558_v28  ;;  %s5915_s30 = sld [smem:[#allocation23_spill]]  ;;  %v862_v5 = vmul.f32 %v861_v38, %v3155_v57  ;;  %v838_v11 = vmul.f32 %v5917_v17, %v836_v25  ;;  %v842_v38 = vsub.f32 %v3126_v12, %v841_v31  ;;  %2252 = vpush %v2371_v16 }
 0x13a   : > { %s225_s9 = smul.f32 %s3565_s27, %s5905_s12  ;;  %5911 = vst [vmem:[#allocation133_spill] sm:$0xff] %v3615_v41  ;;  %v814_v41 = vadd.f32 %v813_v42, %v812_v14  ;;  %s5921_s25 = sld [smem:[#allocation28_spill]]  ;;  %v852_v25 = vstv %s214_s11 }
 0x13b   : > { %5914 = vst [vmem:[#allocation134_spill] sm:$0xff] %v3623_v30  ;;  %v1814_v10 = vstv %s5910_s28  ;;  %v756_v6 = vstv %s755_s18  ;;  %s2201_s28 = spop %2200  ;;  %v839_v55 = vsub.f32 %v3152_v47, %v838_v11  ;;  %s5922_s3 = sld [smem:[#allocation31_spill]]  ;;  %v844_v11 = vmul.f32 %v842_v38, %v842_v38 }
 0x13c   : > { %2374 = vrcp.f32 %v756_v6  ;;  %v863_v23 = vstv %s225_s9  ;;  %v850_v6 = vstv %s213_s23  ;;  %s240_s18 = smul.f32 %s2201_s28, %s5919_s29  ;;  %s2203_s9 = spop %2202  ;;  %v815_v42 = vmin.f32 %v814_v41, 1e+30 }
 0x13d   : > { %v864_v28 = vmul.f32 %v863_v23, %v3131_v19  ;;  %v3643_v23 = vsub.f32 %v3094_v60, %v1814_v10  ;;  %s5923_s10 = sld [smem:[#allocation33_spill]]  ;;  %v843_v30 = vmul.f32 %v839_v55, %v839_v55  ;;  %s5924_s23 = sld [smem:[#allocation34_spill]]  ;;  %v3647_v31 = vmul.f32 %v850_v6, %v3152_v47 }
 0x13e   : > { %v3652_v10 = vmul.f32 %v852_v25, %v3126_v12  ;;  %s5927_s27 = sld [smem:[#allocation36_spill]]  ;;  %s5928_s19 = sld [smem:[#allocation37_spill]] }
 0x13f   : > { %s239_s21 = smul.f32 %s2201_s28, %s5915_s30  ;;  %v865_v9 = vadd.f32 %v864_v28, %v862_v5  ;;  %5925 = vst [vmem:[#allocation135_spill] sm:$0xff] %v3647_v31  ;;  %v894_v5 = vstv %s240_s18  ;;  %s2205_s28 = spop %2204  ;;  %v845_v14 = vadd.f32 %v844_v11, %v843_v30  ;;  %v5933_v31 = vstv %s5905_s12 }
 0x140   : > { %s254_s26 = smul.f32 %s2203_s9, %s5921_s25  ;;  %5926 = vst [vmem:[#allocation136_spill] sm:$0xff] %v3652_v10  ;;  %v895_v55 = vmul.f32 %v894_v5, %v3136_v20  ;;  %s5931_s0 = sld [smem:[#allocation39_spill]] }
 0x141   : > { %v892_v24 = vstv %s239_s21  ;;  %v866_v16 = vmax.f32 %v865_v9, 0.0  ;;  %s255_s11 = smul.f32 %s2203_s9, %s5922_s3  ;;  %v2373_v47 = vpop.eup %2372  ;;  %s2207_s9 = spop %2206  ;;  %v5929_v9 = vstv %s5913_s1  ;;  %v3663_v12 = vmin.f32 %v815_v42, %v845_v14 }
 0x142   : > { %v893_v28 = vmul.f32 %v892_v24, %v3158_v1  ;;  %v923_v41 = vstv %s254_s26  ;;  %v3661_v30 = vsub.f32 %v2794_v43, %v5929_v9  ;;  %2254 = vpush %v2373_v47  ;;  %s2209_s1 = spop %2208  ;;  %s5935_s20 = sld [smem:[#allocation46_spill]] }
 0x143   : > { %s269_s21 = smul.f32 %s2205_s28, %s5923_s10  ;;  %v867_v38 = vmin.f32 %v866_v16, 1.0  ;;  %v924_v6 = vmul.f32 %v923_v41, %v3162_v21  ;;  %v925_v24 = vstv %s255_s11  ;;  %v5932_v16 = vstv %s5894_s17  ;;  %s5934_s11 = sld [smem:[#allocation40_spill]] }
 0x144   : > { %s270_s18 = smul.f32 %s2205_s28, %s5924_s23  ;;  %5930 = vst [vmem:[#allocation137_spill] sm:$0xff] %v3661_v30  ;;  %v896_v25 = vadd.f32 %v895_v55, %v893_v28  ;;  %v926_v11 = vmul.f32 %v925_v24, %v3167_v13  ;;  %s5958_s17 = sld [smem:[#allocation12_spill]] }
 0x145   : > { %v954_v5 = vstv %s269_s21  ;;  %s284_s26 = smul.f32 %s2207_s9, %s5927_s27  ;;  %v869_v17 = vmul.f32 %v5932_v16, %v867_v38  ;;  %v872_v41 = vmul.f32 %v5933_v31, %v867_v38  ;;  %p410_p5 = scmp.lt.f32.partialorder %s5819_s2, 0.0 }
 0x146   : > { %v955_v10 = vmul.f32 %v954_v5, %v3170_v22  ;;  %v956_v60 = vstv %s270_s18  ;;  %s285_s28 = smul.f32 %s2207_s9, %s5928_s19  ;;  %v2375_v9 = vpop.eup %2374  ;;  %v897_v47 = vmax.f32 %v896_v25, 0.0  ;;  %v927_v14 = vadd.f32 %v926_v11, %v924_v6  ;;  %s5936_s18 = sld [smem:[#allocation43_spill]] }
 0x147   : > { %v957_v42 = vmul.f32 %v956_v60, %v3182_v32  ;;  %v985_v28 = vstv %s284_s26  ;;  %s299_s22 = smul.f32 %s2209_s1, %s5931_s0  ;;  %2256 = vpush %v2375_v9  ;;  %v870_v55 = vsub.f32 %v3155_v57, %v869_v17  ;;  %v873_v31 = vsub.f32 %v3131_v19, %v872_v41  ;;  %s3680_s9 = spop %2210 }
 0x148   : > { %v986_v38 = vmul.f32 %v985_v28, %v3185_v36  ;;  %v987_v24 = vstv %s285_s28  ;;  %v898_v5 = vmin.f32 %v897_v47, 1.0  ;;  %v928_v16 = vmax.f32 %v927_v14, 0.0  ;;  %p350_p1 = scmp.lt.f32.partialorder %s5935_s20, 0.0  ;;  %s5939_s26 = sld [smem:[#allocation53_spill]] }
 0x149   : > { %s300_s21 = smul.f32 %s2209_s1, %s5934_s11  ;;  %v958_v25 = vadd.f32 %v957_v42, %v955_v10  ;;  %v988_v6 = vmul.f32 %v987_v24, %v3190_v40  ;;  %v874_v60 = vmul.f32 %v870_v55, %v870_v55  ;;  %v875_v17 = vmul.f32 %v873_v31, %v873_v31  ;;  %s5942_s28 = sld [smem:[#allocation49_spill]] }
 0x14a   : > { %v1016_v11 = vstv %s299_s22  ;;  %v5937_v9 = vstv %s5915_s30  ;;  %v5938_v19 = vstv %s5919_s29  ;;  %v929_v14 = vmin.f32 %v928_v16, 1.0  ;;  %s3699_s22 = scalar_select %p350_p1, -1.0, 1.0 }
 0x14b   : > { %v1018_v41 = vstv %s300_s21  ;;  %v900_v28 = vmul.f32 %v5937_v9, %v898_v5  ;;  %v903_v47 = vmul.f32 %v5938_v19, %v898_v5  ;;  %v959_v10 = vmax.f32 %v958_v25, 0.0  ;;  %s3702_s21 = spop %2212  ;;  %s5944_s30 = sld [smem:[#allocation56_spill]] }
 0x14c   : > { %v876_v42 = vadd.f32 %v875_v17, %v874_v60  ;;  %v989_v57 = vadd.f32 %v988_v6, %v986_v38  ;;  %v1017_v24 = vmul.f32 %v1016_v11, %v3196_v35  ;;  %v1019_v30 = vmul.f32 %v1018_v41, %v3201_v52  ;;  %s348_s1 = smul.f32 %s3680_s9, %s5936_s18  ;;  %p425_p6 = scmp.lt.f32.partialorder %s5825_s5, 0.0 }
 0x14d   : > { %v901_v55 = vsub.f32 %v3158_v1, %v900_v28  ;;  %v904_v31 = vsub.f32 %v3136_v20, %v903_v47  ;;  %v5940_v9 = vstv %s5921_s25  ;;  %v5941_v5 = vstv %s5922_s3  ;;  %s353_s25 = smul.f32 %s3699_s22, %s5936_s18  ;;  %s5948_s3 = sld [smem:[#allocation55_spill]] }
 0x14e   : > { %v931_v19 = vmul.f32 %v5940_v9, %v929_v14  ;;  %v934_v16 = vmul.f32 %v5941_v5, %v929_v14  ;;  %v877_v38 = vmin.f32 %v3663_v12, %v876_v42  ;;  %v960_v25 = vmin.f32 %v959_v10, 1.0  ;;  %p365_p2 = scmp.lt.f32.partialorder %s5939_s26, 0.0  ;;  %p455_p8 = scmp.lt.f32.partialorder %s5833_s15, 0.0 }
 0x14f   : > { %v990_v6 = vmax.f32 %v989_v57, 0.0  ;;  %v1020_v60 = vadd.f32 %v1019_v30, %v1017_v24  ;;  %v905_v17 = vmul.f32 %v901_v55, %v901_v55  ;;  %v906_v11 = vmul.f32 %v904_v31, %v904_v31  ;;  %p503_p9 = scmp.lt.f32.partialorder %s5839_s13, 0.0  ;;  %p518_p10 = scmp.lt.f32.partialorder %s5850_s8, 0.0 }
 0x150   : > { %v932_v41 = vsub.f32 %v3162_v21, %v931_v19  ;;  %v935_v28 = vsub.f32 %v3167_v13, %v934_v16  ;;  %v5943_v12 = vstv %s5923_s10  ;;  %v5945_v30 = vstv %s5924_s23  ;;  %s5951_s10 = smul.f32 %s3680_s9, %s5935_s20  ;;  %s5952_s23 = sld [smem:[#allocation59_spill]] }
 0x151   : > { %v962_v57 = vmul.f32 %v5943_v12, %v960_v25  ;;  %v965_v47 = vmul.f32 %v5945_v30, %v960_v25  ;;  %v991_v14 = vmin.f32 %v990_v6, 1.0  ;;  %v1021_v10 = vmax.f32 %v1020_v60, 0.0  ;;  %p380_p3 = scmp.lt.f32.partialorder %s5944_s30, 0.0  ;;  %p548_p12 = scmp.lt.f32.partialorder %s5871_s16, 0.0 }
 0x152   : > { %v907_v42 = vadd.f32 %v906_v11, %v905_v17  ;;  %v936_v24 = vmul.f32 %v932_v41, %v932_v41  ;;  %v937_v55 = vmul.f32 %v935_v28, %v935_v28  ;;  %v1108_v31 = vstv %s348_s1  ;;  %s3729_s1 = scalar_select %p365_p2, -1.0, 1.0 }
 0x153   : > { %v963_v9 = vsub.f32 %v3170_v22, %v962_v57  ;;  %v966_v19 = vsub.f32 %v3182_v32, %v965_v47  ;;  %v5946_v5 = vstv %s5927_s27  ;;  %v5947_v12 = vstv %s5928_s19  ;;  %s3735_s27 = spop %2214  ;;  %p563_p13 = scmp.lt.f32.partialorder %s5878_s7, 0.0 }
 0x154   : > { %v993_v16 = vmul.f32 %v5946_v5, %v991_v14  ;;  %v996_v25 = vmul.f32 %v5947_v12, %v991_v14  ;;  %v908_v6 = vmin.f32 %v877_v38, %v907_v42  ;;  %v938_v60 = vadd.f32 %v937_v55, %v936_v24  ;;  %s3749_s29 = scalar_select %p380_p3, -1.0, 1.0 }
 0x155   : > { %v1022_v17 = vmin.f32 %v1021_v10, 1.0  ;;  %v1109_v11 = vmul.f32 %v1108_v31, %v3204_v39  ;;  %v967_v41 = vmul.f32 %v963_v9, %v963_v9  ;;  %v968_v28 = vmul.f32 %v966_v19, %v966_v19  ;;  %s367_s9 = smul.f32 %s3729_s1, %s5939_s26  ;;  %p578_p0 = scmp.lt.f32.partialorder %s5890_s4, 0.0 }
 0x156   : > { %v994_v57 = vsub.f32 %v3185_v36, %v993_v16  ;;  %v997_v30 = vsub.f32 %v3190_v40, %v996_v25  ;;  %v939_v38 = vmin.f32 %v908_v6, %v938_v60  ;;  %v5949_v47 = vstv %s5931_s0  ;;  %s368_s19 = smul.f32 %s3729_s1, %s5942_s28  ;;  %p395_p4 = scmp.lt.f32.partialorder %s5952_s23, 0.0 }
 0x157   : > { %v1024_v14 = vmul.f32 %v5949_v47, %v1022_v17  ;;  %v5950_v10 = vstv %s5934_s11  ;;  %v1110_v24 = vstv %s5951_s10  ;;  %v969_v55 = vadd.f32 %v968_v28, %v967_v41  ;;  %s5953_s10 = smul.f32 %s3699_s22, %s5935_s20  ;;  %s5956_s0 = sld [smem:[#allocation58_spill]] }
 0x158   : > { %v1027_v42 = vmul.f32 %v5950_v10, %v1022_v17  ;;  %v998_v31 = vmul.f32 %v994_v57, %v994_v57  ;;  %v999_v9 = vmul.f32 %v997_v30, %v997_v30  ;;  %v1111_v19 = vmul.f32 %v1110_v24, %v3209_v50  ;;  %s5954_s22 = smul.f32 %s3702_s21, %s5942_s28  ;;  %s3777_s11 = spop %2216 }
 0x159   : > { %v1025_v5 = vsub.f32 %v3196_v35, %v1024_v14  ;;  %v1129_v12 = vstv %s5953_s10  ;;  %v1131_v25 = vstv %s353_s25  ;;  %v970_v6 = vmin.f32 %v939_v38, %v969_v55  ;;  %s379_s25 = smul.f32 %s3735_s27, %s5944_s30  ;;  %p593_p1 = scmp.lt.f32.partialorder %s5893_s6, 0.0 }
 0x15a   : > { %v1028_v16 = vsub.f32 %v3201_v52, %v1027_v42  ;;  %v1000_v60 = vadd.f32 %v999_v9, %v998_v31  ;;  %v1112_v17 = vadd.f32 %v1111_v19, %v1109_v11  ;;  %v1130_v41 = vmul.f32 %v1129_v12, %v3204_v39  ;;  %s5955_s10 = smul.f32 %s3702_s21, %s5939_s26 }
 0x15b   : > { %v1029_v28 = vmul.f32 %v1025_v5, %v1025_v5  ;;  %v1132_v30 = vmul.f32 %v1131_v25, %v3209_v50  ;;  %v1139_v47 = vstv %s5954_s22  ;;  %s382_s1 = smul.f32 %s3749_s29, %s5944_s30  ;;  %v1159_v31 = vstv %s367_s9  ;;  %s5959_s9 = sld [smem:[#allocation15_spill]] }
 0x15c   : > { %v1030_v57 = vmul.f32 %v1028_v16, %v1028_v16  ;;  %v1001_v14 = vmin.f32 %v970_v6, %v1000_v60  ;;  %v1113_v38 = vmax.f32 %v1112_v17, 0.0  ;;  %v1140_v11 = vmul.f32 %v1139_v47, %v3214_v0  ;;  %s383_s22 = smul.f32 %s3749_s29, %s5948_s3 }
 0x15d   : > { %v1141_v10 = vstv %s5955_s10  ;;  %v1133_v24 = vsub.f32 %v1130_v41, %v1132_v30  ;;  %v1160_v19 = vmul.f32 %v1159_v31, %v3214_v0  ;;  %v1161_v5 = vstv %s368_s19  ;;  %s5957_s21 = smul.f32 %s3735_s27, %s5948_s3  ;;  %s5971_s27 = sld [smem:[#allocation61_spill]] }
 0x15e   : > { %v1031_v42 = vadd.f32 %v1030_v57, %v1029_v28  ;;  %v1142_v55 = vmul.f32 %v1141_v10, %v3219_v61  ;;  %v1114_v9 = vmin.f32 %v1113_v38, 1.0  ;;  %s3785_s10 = scalar_select %p395_p4, -1.0, 1.0  ;;  %v1162_v6 = vmul.f32 %v1161_v5, %v3219_v61 }
 0x15f   : > { %v1170_v16 = vstv %s5957_s21  ;;  %vm1134_vm12 = vcmp.lt.f32.partialorder %v1133_v24, 0.0  ;;  %s393_s29 = smul.f32 %s3777_s11, %s5956_s0  ;;  %v5960_v60 = vstv %s5936_s18  ;;  %v5961_v41 = vstv %s5935_s20  ;;  %s3829_s20 = spop %2218 }
 0x160   : > { %v3787_v12 = vmin.f32 %v1001_v14, %v1031_v42  ;;  %v1143_v25 = vadd.f32 %v1142_v55, %v1140_v11  ;;  %v1116_v17 = vmul.f32 %v5960_v60, %v1114_v9  ;;  %v1119_v28 = vmul.f32 %v5961_v41, %v1114_v9  ;;  %vm3802_vm6 = vmand %vm5962_vm4, %vm1134_vm12  ;;  %s394_s19 = smul.f32 %s3777_s11, %s5952_s23 }
 0x161   : > { %v1171_v30 = vmul.f32 %v1170_v16, %v3229_v44  ;;  %v1172_v47 = vstv %s379_s25  ;;  %v1163_v38 = vsub.f32 %v1160_v19, %v1162_v6  ;;  %v1190_v10 = vstv %s382_s1  ;;  %s3834_s18 = scalar_select %p410_p5, -1.0, 1.0 }
 0x162   : > { %v1144_v14 = vmax.f32 %v1143_v25, 0.0  ;;  %v1173_v11 = vmul.f32 %v1172_v47, %v3234_v27  ;;  %v5965_v42 = vstv %s5958_s17  ;;  %v5968_v55 = vstv %s5959_s9  ;;  %s397_s17 = smul.f32 %s3785_s10, %s5952_s23  ;;  %s5984_s9 = sld [smem:[#allocation72_spill]] }
 0x163   : > { %vm3813_vm8 = vcmp.gt.f32.partialorder %v5965_v42, %v2794_v43  ;;  %vm3820_vm4 = vcmp.gt.f32.partialorder %v5968_v55, %v2794_v43  ;;  %v1117_v9 = vsub.f32 %v3204_v39, %v1116_v17  ;;  %v1120_v19 = vsub.f32 %v3209_v50, %v1119_v28  ;;  %s398_s25 = smul.f32 %s3785_s10, %s5956_s0 }
 0x164   : > { %v1191_v5 = vmul.f32 %v1190_v10, %v3229_v44  ;;  %v1192_v16 = vstv %s383_s22  ;;  %v1145_v25 = vmin.f32 %v1144_v14, 1.0  ;;  %vm1164_vm12 = vcmp.lt.f32.partialorder %v1163_v38, 0.0  ;;  %s408_s1 = smul.f32 %s3829_s20, %s5971_s27  ;;  %s3869_s22 = spop %2220 }
 0x165   : > { %v1174_v6 = vadd.f32 %v1173_v11, %v1171_v30  ;;  %v1193_v60 = vmul.f32 %v1192_v16, %v3234_v27  ;;  %v1121_v39 = vmul.f32 %v1117_v9, %v1117_v9  ;;  %v1122_v50 = vmul.f32 %v1120_v19, %v1120_v19  ;;  %vm3841_vm14 = vmand %vm5972_vm10, %vm1164_vm12  ;;  %s409_s11 = smul.f32 %s3829_s20, %s5819_s2 }
 0x166   : > { %v1201_v41 = vstv %s393_s29  ;;  %v1203_v28 = vstv %s394_s19  ;;  %v5975_v30 = vstv %s5942_s28  ;;  %v5976_v14 = vstv %s5939_s26  ;;  %s5977_s26 = sld [smem:[#allocation73_spill]]  ;;  %s412_s28 = smul.f32 %s3834_s18, %s5819_s2  ;;  %vm5978_vm12 = vmxor %vm2840_vm5, %vm2866_vm7 }
 0x167   : > { %v1147_v47 = vmul.f32 %v5975_v30, %v1145_v25  ;;  %v1150_v48 = vmul.f32 %v5976_v14, %v1145_v25  ;;  %v1175_v38 = vmax.f32 %v1174_v6, 0.0  ;;  %v1194_v11 = vsub.f32 %v1191_v5, %v1193_v60  ;;  %s3879_s21 = scalar_select %p425_p6, -1.0, 1.0  ;;  %vm5981_vm5 = vmxor %vm3802_vm6, %vm3841_vm14 }
 0x168   : > { %v1123_v10 = vadd.f32 %v1122_v50, %v1121_v39  ;;  %v1202_v42 = vmul.f32 %v1201_v41, %v3297_v7  ;;  %v1204_v55 = vmul.f32 %v1203_v28, %v3317_v46  ;;  %v1221_v9 = vstv %s397_s17  ;;  %s423_s10 = smul.f32 %s3869_s22, %s5824_s14  ;;  %s3908_s19 = spop %2222 }
 0x169   : > { %v1148_v19 = vsub.f32 %v3214_v0, %v1147_v47  ;;  %v1151_v16 = vsub.f32 %v3219_v61, %v1150_v48  ;;  %v1176_v25 = vmin.f32 %v1175_v38, 1.0  ;;  %vm1195_vm10 = vcmp.lt.f32.partialorder %v1194_v11, 0.0  ;;  %s427_s29 = smul.f32 %s3879_s21, %s5825_s5 }
 0x16a   : > { %v1124_v5 = vmin.f32 %v1123_v10, 1e+30  ;;  %vm1196_vm3 = vmand %vm5978_vm12, %vm1195_vm10  ;;  %v1205_v0 = vadd.f32 %v1204_v55, %v1202_v42  ;;  %v1222_v61 = vmul.f32 %v1221_v9, %v3297_v7  ;;  %v1223_v6 = vstv %s398_s25  ;;  %s438_s20 = smul.f32 %s3908_s19, %s5984_s9 }
 0x16b   : > { %v1152_v60 = vmul.f32 %v1148_v19, %v1148_v19  ;;  %v1153_v39 = vmul.f32 %v1151_v16, %v1151_v16  ;;  %v5979_v50 = vstv %s5948_s3  ;;  %v5980_v28 = vstv %s5944_s30  ;;  %vm3890_vm10 = vmxor %vm5981_vm5, %vm1196_vm3  ;;  %s413_s3 = smul.f32 %s3834_s18, %s5971_s27 }
 0x16c   : > { %v1178_v41 = vmul.f32 %v5979_v50, %v1176_v25  ;;  %v1181_v30 = vmul.f32 %v5980_v28, %v1176_v25  ;;  %p440_p7 = scmp.lt.f32.partialorder %s5977_s26, 0.0  ;;  %v1206_v47 = vmax.f32 %v1205_v0, 0.0  ;;  %v1224_v14 = vmul.f32 %v1223_v6, %v3317_v46  ;;  %s424_s30 = smul.f32 %s3869_s22, %s5825_s5  ;;  %vm5987_vm3 = vmxor %vm2866_vm7, %vm2897_vm9 }
 0x16d   : > { %v1232_v48 = vstv %s408_s1  ;;  %v1234_v38 = vstv %s409_s11  ;;  %v1154_v11 = vadd.f32 %v1153_v39, %v1152_v60  ;;  %v1252_v19 = vstv %s412_s28  ;;  %s5990_s1 = sld [smem:[#allocation74_spill]]  ;;  %s3964_s28 = spop %2224 }
 0x16e   : > { %v1179_v57 = vsub.f32 %v3229_v44, %v1178_v41  ;;  %v1182_v17 = vsub.f32 %v3234_v27, %v1181_v30  ;;  %v1233_v10 = vmul.f32 %v1232_v48, %v3320_v37  ;;  %v1207_v42 = vmin.f32 %v1206_v47, 1.0  ;;  %s3913_s17 = scalar_select %p440_p7, -1.0, 1.0 }
 0x16f   : > { %v1225_v55 = vsub.f32 %v1222_v61, %v1224_v14  ;;  %v1235_v9 = vmul.f32 %v1234_v38, %v3325_v34  ;;  %v1155_v44 = vmin.f32 %v1124_v5, %v1154_v11  ;;  %v1253_v25 = vmul.f32 %v1252_v19, %v3320_v37  ;;  %s3958_s11 = scalar_select %p455_p8, -1.0, 1.0 }
 0x170   : > { %v1183_v27 = vmul.f32 %v1179_v57, %v1179_v57  ;;  %v1184_v16 = vmul.f32 %v1182_v17, %v1182_v17  ;;  %v5985_v0 = vstv %s5956_s0  ;;  %v5986_v6 = vstv %s5952_s23  ;;  %s428_s0 = smul.f32 %s3879_s21, %s5824_s14  ;;  %s5996_s22 = sld [smem:[#allocation78_spill]] }
 0x171   : > { %v1209_v61 = vmul.f32 %v5985_v0, %v1207_v42  ;;  %v1212_v60 = vmul.f32 %v5986_v6, %v1207_v42  ;;  %vm1226_vm14 = vcmp.lt.f32.partialorder %v1225_v55, 0.0  ;;  %v1236_v5 = vadd.f32 %v1235_v9, %v1233_v10  ;;  %s439_s23 = smul.f32 %s3908_s19, %s5977_s26  ;;  %s3992_s21 = spop %2226 }
 0x172   : > { %v1185_v39 = vadd.f32 %v1184_v16, %v1183_v27  ;;  %vm3930_vm12 = vmand %vm5987_vm3, %vm1226_vm14  ;;  %v1254_v41 = vstv %s413_s3  ;;  %v1263_v28 = vstv %s423_s10  ;;  %v1265_v30 = vstv %s424_s30  ;;  %s442_s18 = smul.f32 %s3913_s17, %s5977_s26  ;;  %s6002_s19 = sld [smem:[#allocation82_spill]] }
 0x173   : > { %v1210_v47 = vsub.f32 %v3297_v7, %v1209_v61  ;;  %v1213_v54 = vsub.f32 %v3317_v46, %v1212_v60  ;;  %vm1228_vm7 = vmxor %vm3890_vm10, %vm3930_vm12  ;;  %v1237_v14 = vmax.f32 %v1236_v5, 0.0  ;;  %v1255_v48 = vmul.f32 %v1254_v41, %v3325_v34  ;;  %s443_s25 = smul.f32 %s3913_s17, %s5984_s9  ;;  %p226_p8 = scmp.lt.f32.partialorder %s5905_s12, 0.0 }
 0x174   : > { %v1186_v38 = vmin.f32 %v1155_v44, %v1185_v39  ;;  %v1264_v11 = vmul.f32 %v1263_v28, %v3328_v33  ;;  %v1266_v57 = vmul.f32 %v1265_v30, %v3345_v15  ;;  %v1283_v7 = vstv %s427_s29  ;;  %vm5993_vm14 = vmxor %vm2897_vm9, %vm2931_vm11  ;;  %s457_s10 = smul.f32 %s3958_s11, %s5833_s15  ;;  %s4032_s29 = spop %2228 }
 0x175   : > { %v1214_v46 = vmul.f32 %v1210_v47, %v1210_v47  ;;  %v1215_v17 = vmul.f32 %v1213_v54, %v1213_v54  ;;  %v1238_v10 = vmin.f32 %v1237_v14, 1.0  ;;  %v1256_v42 = vsub.f32 %v1253_v25, %v1255_v48  ;;  %s4002_s3 = scalar_select %p503_p9, -1.0, 1.0  ;;  %vm5999_vm12 = vmxor %vm2931_vm11, %vm2960_vm13 }
 0x176   : > { %v1267_v55 = vadd.f32 %v1266_v57, %v1264_v11  ;;  %v1284_v9 = vmul.f32 %v1283_v7, %v3328_v33  ;;  %v1285_v19 = vstv %s428_s0  ;;  %v1294_v44 = vstv %s438_s20  ;;  %s501_s30 = smul.f32 %s3992_s21, %s5996_s22  ;;  %s6003_s20 = sld [smem:[#allocation90_spill]] }
 0x177   : > { %v1216_v27 = vadd.f32 %v1215_v17, %v1214_v46  ;;  %v5991_v16 = vstv %s5971_s27  ;;  %v5992_v61 = vstv %s5819_s2  ;;  %vm1257_vm5 = vcmp.lt.f32.partialorder %v1256_v42, 0.0  ;;  %s453_s2 = smul.f32 %s3964_s28, %s5990_s1 }
 0x178   : > { %v1240_v0 = vmul.f32 %v5991_v16, %v1238_v10  ;;  %v1243_v6 = vmul.f32 %v5992_v61, %v1238_v10  ;;  %vm1258_vm3 = vmand %vm5993_vm14, %vm1257_vm5  ;;  %v1268_v25 = vmax.f32 %v1267_v55, 0.0  ;;  %v1286_v60 = vmul.f32 %v1285_v19, %v3345_v15  ;;  %s454_s27 = smul.f32 %s3964_s28, %s5833_s15  ;;  %s6009_s28 = sld [smem:[#allocation87_spill]] }
 0x179   : > { %v1295_v5 = vmul.f32 %v1294_v44, %v3355_v58  ;;  %v1296_v39 = vstv %s439_s23  ;;  %v3976_v41 = vmin.f32 %v1186_v38, %v1216_v27  ;;  %vm3985_vm9 = vmxor %vm1228_vm7, %vm1258_vm3  ;;  %v1314_v51 = vstv %s442_s18  ;;  %s505_s17 = smul.f32 %s4002_s3, %s5839_s13 }
 0x17a   : > { %v1241_v59 = vsub.f32 %v3320_v37, %v1240_v0  ;;  %v1244_v28 = vsub.f32 %v3325_v34, %v1243_v6  ;;  %v1297_v47 = vmul.f32 %v1296_v39, %v3360_v53  ;;  %v1269_v37 = vmin.f32 %v1268_v25, 1.0  ;;  %s4041_s0 = scalar_select %p518_p10, -1.0, 1.0  ;;  %vm6006_vm14 = vmxor %vm2960_vm13, %vm2994_vm15 }
 0x17b   : > { %v1287_v34 = vsub.f32 %v1284_v9, %v1286_v60  ;;  %v1316_v54 = vstv %s443_s25  ;;  %v1315_v38 = vmul.f32 %v1314_v51, %v3355_v58  ;;  %v5997_v11 = vstv %s5824_s14  ;;  %s458_s14 = smul.f32 %s3958_s11, %s5990_s1  ;;  %s4081_s11 = spop %2230 }
 0x17c   : > { %v1245_v50 = vmul.f32 %v1241_v59, %v1241_v59  ;;  %v1246_v14 = vmul.f32 %v1244_v28, %v1244_v28  ;;  %v1298_v48 = vadd.f32 %v1297_v47, %v1295_v5  ;;  %v1271_v57 = vmul.f32 %v5997_v11, %v1269_v37  ;;  %s516_s23 = smul.f32 %s4032_s29, %s6002_s19  ;;  %p533_p11 = scmp.lt.f32.partialorder %s6003_s20, 0.0 }
 0x17d   : > { %v5998_v7 = vstv %s5825_s5  ;;  %vm1288_vm10 = vcmp.lt.f32.partialorder %v1287_v34, 0.0  ;;  %v1317_v17 = vmul.f32 %v1316_v54, %v3360_v53  ;;  %v1325_v9 = vstv %s453_s2  ;;  %s502_s5 = smul.f32 %s3992_s21, %s5839_s13 }
 0x17e   : > { %v1274_v46 = vmul.f32 %v5998_v7, %v1269_v37  ;;  %v1247_v10 = vadd.f32 %v1246_v14, %v1245_v50  ;;  %vm4017_vm7 = vmand %vm5999_vm12, %vm1288_vm10  ;;  %v1299_v55 = vmax.f32 %v1298_v48, 0.0  ;;  %v1327_v19 = vstv %s454_s27  ;;  %s520_s18 = smul.f32 %s4041_s0, %s5850_s8 }
 0x17f   : > { %v1272_v44 = vsub.f32 %v3328_v33, %v1271_v57  ;;  %vm1290_vm11 = vmxor %vm3985_vm9, %vm4017_vm7  ;;  %v1318_v63 = vsub.f32 %v1315_v38, %v1317_v17  ;;  %v1326_v16 = vmul.f32 %v1325_v9, %v3381_v2  ;;  %v1343_v61 = vstv %s457_s10  ;;  %s521_s25 = smul.f32 %s4041_s0, %s6002_s19  ;;  %s4120_s10 = spop %2232 }
 0x180   : > { %v1275_v27 = vsub.f32 %v3345_v15, %v1274_v46  ;;  %v1248_v33 = vmin.f32 %v3976_v41, %v1247_v10  ;;  %v1300_v0 = vmin.f32 %v1299_v55, 1.0  ;;  %v1328_v15 = vmul.f32 %v1327_v19, %v3386_v29  ;;  %s4085_s2 = scalar_select %p533_p11, -1.0, 1.0  ;;  %vm6012_vm9 = vmxor %vm2994_vm15, %vm2808_vm2 }
 0x181   : > { %v1276_v6 = vmul.f32 %v1272_v44, %v1272_v44  ;;  %vm1319_vm5 = vcmp.lt.f32.partialorder %v1318_v63, 0.0  ;;  %v1344_v60 = vmul.f32 %v1343_v61, %v3381_v2  ;;  %v6004_v5 = vstv %s5984_s9  ;;  %s517_s9 = smul.f32 %s4032_s29, %s5850_s8  ;;  %vm6018_vm15 = vmxor %vm3255_vm1, %vm3262_vm0  ;;  %s4150_s29 = spop %2234 }
 0x182   : > { %v1277_v25 = vmul.f32 %v1275_v27, %v1275_v27  ;;  %v1302_v39 = vmul.f32 %v6004_v5, %v1300_v0  ;;  %v6005_v41 = vstv %s5977_s26  ;;  %vm1320_vm3 = vmand %vm6006_vm14, %vm1319_vm5  ;;  %v1329_v28 = vadd.f32 %v1328_v15, %v1326_v16  ;;  %s506_s26 = smul.f32 %s4002_s3, %s5996_s22  ;;  %s6016_s3 = sld [smem:[#allocation92_spill]] }
 0x183   : > { %v1305_v59 = vmul.f32 %v6005_v41, %v1300_v0  ;;  %v1345_v47 = vstv %s458_s14  ;;  %vm4059_vm10 = vmxor %vm1290_vm11, %vm1320_vm3  ;;  %v6007_v34 = vmov 0  ;;  %v1416_v51 = vstv %s501_s30  ;;  %s535_s27 = smul.f32 %s4085_s2, %s6003_s20  ;;  %s6023_s30 = sld [smem:[#allocation44_spill]] }
 0x184   : > { %v1278_v37 = vadd.f32 %v1277_v25, %v1276_v6  ;;  %v6008_v34 = vsel %vm4059_vm10, 4294967295, %v6007_v34  ;;  %v1346_v3 = vmul.f32 %v1345_v47, %v3386_v29  ;;  %v1418_v54 = vstv %s502_s5  ;;  %s536_s21 = smul.f32 %s4085_s2, %s6009_s28  ;;  %s6024_s14 = sld [smem:[#allocation45_spill]] }
 0x185   : > { %v1303_v30 = vsub.f32 %v3355_v58, %v1302_v39  ;;  %v1306_v50 = vsub.f32 %v3360_v53, %v1305_v59  ;;  %v1330_v14 = vmax.f32 %v1329_v28, 0.0  ;;  %v1417_v48 = vmul.f32 %v1416_v51, %v3363_v62  ;;  %s547_s5 = smul.f32 %s4120_s10, %s5871_s16 }
 0x186   : > { %v1279_v38 = vmin.f32 %v1248_v33, %v1278_v37  ;;  %v1347_v11 = vsub.f32 %v1344_v60, %v1346_v3  ;;  %v1419_v57 = vmul.f32 %v1418_v54, %v3397_v26  ;;  %v1437_v7 = vstv %s505_s17  ;;  %s6025_s17 = sld [smem:[#allocation94_spill]] }
 0x187   : > { %v1307_v46 = vmul.f32 %v1303_v30, %v1303_v30  ;;  %v1308_v17 = vmul.f32 %v1306_v50, %v1306_v50  ;;  %v1331_v10 = vmin.f32 %v1330_v14, 1.0  ;;  %v1438_v58 = vmul.f32 %v1437_v7, %v3363_v62 }
 0x188   : > { %vm1348_vm13 = vcmp.lt.f32.partialorder %v1347_v11, 0.0  ;;  %v1420_v53 = vadd.f32 %v1419_v57, %v1417_v48  ;;  %v1439_v42 = vstv %s506_s26  ;;  %v1447_v55 = vstv %s516_s23  ;;  %s4171_s23 = scalar_select %p563_p13, -1.0, 1.0 }
 0x189   : > { %v1309_v9 = vadd.f32 %v1308_v17, %v1307_v46  ;;  %v6010_v19 = vstv %s5990_s1  ;;  %v6011_v27 = vstv %s5833_s15  ;;  %vm4096_vm12 = vmand %vm6012_vm9, %vm1348_vm13  ;;  %v6013_v16 = vmov 0  ;;  %s531_s15 = smul.f32 %s4081_s11, %s6009_s28 }
 0x18a   : > { %v1333_v44 = vmul.f32 %v6010_v19, %v1331_v10  ;;  %v1336_v63 = vmul.f32 %v6011_v27, %v1331_v10  ;;  %v6014_v16 = vsel %vm4096_vm12, 4294967295, %v6013_v16  ;;  %v1440_v33 = vmul.f32 %v1439_v42, %v3397_v26  ;;  %s532_s1 = smul.f32 %s4081_s11, %s6003_s20  ;;  %v6022_v10 = vld [vmem:[#allocation116_spill] sm:$0xff]  ;;  %v6026_v19 = vld [vmem:[#allocation111_spill] sm:$0xff] }
 0x18b   : > { %v1421_v0 = vmax.f32 %v1420_v53, 0.0  ;;  %v1448_v15 = vmul.f32 %v1447_v55, %v3413_v49  ;;  %v1449_v8 = vstv %s517_s9  ;;  %v1467_v61 = vstv %s520_s18  ;;  %s565_s18 = smul.f32 %s4171_s23, %s5878_s7 }
 0x18c   : > { %v1310_v45 = vmin.f32 %v1279_v38, %v1309_v9  ;;  %v1334_v6 = vsub.f32 %v3381_v2, %v1333_v44  ;;  %v1337_v25 = vsub.f32 %v3386_v29, %v1336_v63  ;;  %v1441_v60 = vsub.f32 %v1438_v58, %v1440_v33  ;;  %v6021_v38 = vld [vmem:[#allocation115_spill] sm:$0xff]  ;;  %s561_s26 = smul.f32 %s4150_s29, %s6025_s17 }
 0x18d   : > { %v1422_v5 = vmin.f32 %v1421_v0, 1.0  ;;  %v1450_v39 = vmul.f32 %v1449_v8, %v3429_v18  ;;  %v1468_v41 = vmul.f32 %v1467_v61, %v3413_v49  ;;  %v1469_v59 = vstv %s521_s25  ;;  %s4229_s11 = scalar_select %p578_p0, -1.0, 1.0 }
 0x18e   : > { %v1338_v28 = vmul.f32 %v1334_v6, %v1334_v6  ;;  %v1339_v47 = vmul.f32 %v1337_v25, %v1337_v25  ;;  %vm1442_vm2 = vcmp.lt.f32.partialorder %v1441_v60, 0.0  ;;  %v1470_v37 = vmul.f32 %v1469_v59, %v3429_v18 }
 0x18f   : > { %v6015_v2 = vstv %s5996_s22  ;;  %v6017_v3 = vstv %s5839_s13  ;;  %vm4131_vm11 = vmand %vm6018_vm15, %vm1442_vm2  ;;  %v1451_v30 = vadd.f32 %v1450_v39, %v1448_v15  ;;  %v1478_v50 = vstv %s531_s15  ;;  %s4137_s22 = scalar_select %p548_p12, -1.0, 1.0 }
 0x190   : > { %v1424_v29 = vmul.f32 %v6015_v2, %v1422_v5  ;;  %v1427_v51 = vmul.f32 %v6017_v3, %v1422_v5  ;;  %v1340_v14 = vadd.f32 %v1339_v47, %v1338_v28  ;;  %v1471_v48 = vsub.f32 %v1468_v41, %v1470_v37  ;;  %s546_s13 = smul.f32 %s4120_s10, %s6016_s3  ;;  %v6033_v2 = vld [vmem:[#allocation117_spill] sm:$0xff]  ;;  %v6034_v3 = vld [vmem:[#allocation118_spill] sm:$0xff]  ;;  %s6053_s10 = sld [smem:[#allocation102_spill]] }
 0x191   : > { %v1479_v11 = vmul.f32 %v1478_v50, %v6021_v38  ;;  %v1480_v57 = vstv %s532_s1  ;;  %v1452_v17 = vmax.f32 %v1451_v30, 0.0  ;;  %v1498_v42 = vstv %s535_s27  ;;  %s550_s0 = smul.f32 %s4137_s22, %s5871_s16  ;;  %s6050_s27 = sld [smem:[#allocation11_spill]] }
 0x192   : > { %v1425_v7 = vsub.f32 %v3363_v62, %v1424_v29  ;;  %v1428_v46 = vsub.f32 %v3397_v26, %v1427_v51  ;;  %v1481_v58 = vmul.f32 %v1480_v57, %v6022_v10  ;;  %v4146_v53 = vmin.f32 %v1310_v45, %v1340_v14  ;;  %s551_s9 = smul.f32 %s4137_s22, %s6016_s3  ;;  %s6054_s22 = sld [smem:[#allocation42_spill]] }
 0x193   : > { %vm1472_vm5 = vcmp.lt.f32.partialorder %v1471_v48, 0.0  ;;  %v1500_v55 = vstv %s536_s21  ;;  %v1453_v9 = vmin.f32 %v1452_v17, 1.0  ;;  %vm6027_vm14 = vnez %v6026_v19  ;;  %s580_s21 = smul.f32 %s4229_s11, %s5890_s4 }
 0x194   : > { %v1429_v62 = vmul.f32 %v1425_v7, %v1425_v7  ;;  %v1430_v26 = vmul.f32 %v1428_v46, %v1428_v46  ;;  %vm6028_vm3 = vmxor %vm3262_vm0, %vm6027_vm14  ;;  %v1482_v27 = vadd.f32 %v1481_v58, %v1479_v11  ;;  %2376 = vrsqrt.f32 %v4146_v53 }
 0x195   : > { %vm4157_vm13 = vmand %vm6028_vm3, %vm1472_vm5  ;;  %v1356_v63 = vand.u32 2147483648, %v4146_v53  ;;  %v1793_v56 = vstv %s6023_s30  ;;  %v1834_v33 = vstv %s6024_s14  ;;  %v6031_v15 = vstv %s6002_s19  ;;  %s4189_s19 = spop %2236 }
 0x196   : > { %vm1474_vm9 = vmxor %vm4131_vm11, %vm4157_vm13  ;;  %v1431_v0 = vadd.f32 %v1430_v26, %v1429_v62  ;;  %v1455_v8 = vmul.f32 %v6031_v15, %v1453_v9  ;;  %v6032_v61 = vstv %s5850_s8  ;;  %v1483_v6 = vmax.f32 %v1482_v27, 0.0  ;;  %s562_s8 = smul.f32 %s4150_s29, %s5878_s7  ;;  %s4239_s15 = spop %2238 }
 0x197   : > { %v1458_v45 = vmul.f32 %v6032_v61, %v1453_v9  ;;  %v1499_v25 = vmul.f32 %v1498_v42, %v6021_v38  ;;  %v1501_v60 = vmul.f32 %v1500_v55, %v6022_v10  ;;  %v1509_v5 = vstv %s546_s13  ;;  %s576_s25 = smul.f32 %s4189_s19, %s5889_s24  ;;  %v6037_v55 = vld [vmem:[#allocation112_spill] sm:$0xff]  ;;  %p608_p2 = scmp.lt.f32.partialorder %s6050_s27, 0.0 }
 0x198   : > { %v1511_v39 = vstv %s547_s5  ;;  %v1432_v41 = vmin.f32 %v1431_v0, 1e+30  ;;  %v1456_v59 = vsub.f32 %v3413_v49, %v1455_v8  ;;  %v1484_v47 = vmin.f32 %v1483_v6, 1.0  ;;  %s577_s2 = smul.f32 %s4189_s19, %s5890_s4  ;;  %v6043_v61 = vld [vmem:[#allocation120_spill] sm:$0xff]  ;;  %v6044_v6 = vld [vmem:[#allocation121_spill] sm:$0xff]  ;;  %s4288_s5 = spop %2240 }
 0x199   : > { %v1459_v28 = vsub.f32 %v3429_v18, %v1458_v45  ;;  %vm1353_vm0 = vcmp.eq.f32.partialorder %v4146_v53, inf  ;;  %v1502_v37 = vsub.f32 %v1499_v25, %v1501_v60  ;;  %v1510_v29 = vmul.f32 %v1509_v5, %v6033_v2  ;;  %s592_s13 = smul.f32 %s4239_s15, %s5893_s6  ;;  %p686_p5 = scmp.lt.f32.partialorder %s6054_s22, 0.0 }
 0x19a   : > { %v1512_v51 = vmul.f32 %v1511_v39, %v6034_v3  ;;  %v1529_v30 = vstv %s550_s0  ;;  %vm1355_vm2 = vcmp.eq.f32.partialorder %v4146_v53, 0.0  ;;  %v1460_v18 = vmul.f32 %v1456_v59, %v1456_v59  ;;  %s606_s29 = smul.f32 %s4288_s5, %s6053_s10  ;;  %s6058_s0 = sld [smem:[#allocation35_spill]] }
 0x19b   : > { %v1461_v49 = vmul.f32 %v1459_v28, %v1459_v28  ;;  %v6035_v50 = vstv %s6009_s28  ;;  %v6036_v48 = vstv %s6003_s20  ;;  %vm1503_vm15 = vcmp.lt.f32.partialorder %v1502_v37, 0.0  ;;  %s566_s20 = smul.f32 %s4171_s23, %s6025_s17  ;;  %s6042_s28 = sld [smem:[#allocation101_spill]] }
 0x19c   : > { %v1486_v14 = vmul.f32 %v6035_v50, %v1484_v47  ;;  %v1489_v11 = vmul.f32 %v6036_v48, %v1484_v47  ;;  %v1513_v57 = vadd.f32 %v1512_v51, %v1510_v29  ;;  %v1530_v7 = vmul.f32 %v1529_v30, %v6033_v2  ;;  %v6047_v29 = vld [vmem:[#allocation113_spill] sm:$0xff] }
 0x19d   : > { %v1531_v46 = vstv %s551_s9  ;;  %v1462_v17 = vadd.f32 %v1461_v49, %v1460_v18  ;;  %vm6038_vm5 = vnez %v6037_v55  ;;  %v1542_v9 = vstv %s562_s8  ;;  %s4316_s9 = scalar_select %p608_p2, -1.0, 1.0 }
 0x19e   : > { %v1487_v58 = vsub.f32 %v6021_v38, %v1486_v14  ;;  %v1490_v42 = vsub.f32 %v6022_v10, %v1489_v11  ;;  %vm6039_vm3 = vmxor %vm6027_vm14, %vm6038_vm5  ;;  %v1532_v62 = vmul.f32 %v1531_v46, %v6034_v3  ;;  %v1514_v38 = vmax.f32 %v1513_v57, 0.0  ;;  %v2377_v15 = vpop.eup %2376  ;;  %s607_s8 = smul.f32 %s4288_s5, %s6050_s27 }
 0x19f   : > { %vm1504_vm6 = vmand %vm6039_vm3, %vm1503_vm15  ;;  %v1540_v10 = vstv %s561_s26  ;;  %v1560_v19 = vstv %s565_s18  ;;  %v4231_v27 = vmin.f32 %v1432_v41, %v1462_v17  ;;  %v1543_v25 = vmul.f32 %v1542_v9, %v6044_v6  ;;  %s4301_s26 = spop %2242  ;;  %s610_s18 = smul.f32 %s4316_s9, %s6050_s27 }
 0x1a0   : > { %vm4220_vm7 = vmxor %vm1474_vm9, %vm1504_vm6  ;;  %v1491_v0 = vmul.f32 %v1487_v58, %v1487_v58  ;;  %v1492_v54 = vmul.f32 %v1490_v42, %v1490_v42  ;;  %v1533_v44 = vsub.f32 %v1530_v7, %v1532_v62  ;;  %v1515_v8 = vmin.f32 %v1514_v38, 1.0  ;;  %v6055_v42 = vld [vmem:[#allocation122_spill] sm:$0xff]  ;;  %v6056_v62 = vld [vmem:[#allocation123_spill] sm:$0xff]  ;;  %p656_p3 = scmp.lt.f32.partialorder %s6058_s0, 0.0 }
 0x1a1   : > { %v1541_v45 = vmul.f32 %v1540_v10, %v6043_v61  ;;  %v1561_v60 = vmul.f32 %v1560_v19, %v6043_v61  ;;  %v1352_v5 = vmul.f32 %v2377_v15, %v4146_v53  ;;  %v1562_v41 = vstv %s566_s20  ;;  %s591_s1 = smul.f32 %s4239_s15, %s6042_s28 }
 0x1a2   : > { %v1493_v39 = vadd.f32 %v1492_v54, %v1491_v0  ;;  %vm1534_vm6 = vcmp.lt.f32.partialorder %v1533_v44, 0.0  ;;  %v6045_v59 = vstv %s6016_s3  ;;  %v6046_v47 = vstv %s5871_s16  ;;  %s4273_s16 = scalar_select %p593_p1, -1.0, 1.0 }
 0x1a3   : > { %v1517_v28 = vmul.f32 %v6045_v59, %v1515_v8  ;;  %v1520_v37 = vmul.f32 %v6046_v47, %v1515_v8  ;;  %vm6048_vm11 = vnez %v6047_v29  ;;  %v1544_v30 = vadd.f32 %v1543_v25, %v1541_v45  ;;  %s581_s3 = smul.f32 %s4229_s11, %s5889_s24  ;;  %v6061_v8 = vld [vmem:[#allocation114_spill] sm:$0xff]  ;;  %v6067_v29 = vld [vmem:[#allocation124_spill] sm:$0xff] }
 0x1a4   : > { %vm6049_vm14 = vmxor %vm6038_vm5, %vm6048_vm11  ;;  %v1563_v18 = vmul.f32 %v1562_v41, %v6044_v6  ;;  %v1354_v49 = vsel %vm1353_vm0, %v4146_v53, %v1352_v5  ;;  %v1494_v50 = vmin.f32 %v4231_v27, %v1493_v39  ;;  %v1571_v14 = vstv %s576_s25  ;;  %s595_s23 = smul.f32 %s4273_s16, %s5893_s6  ;;  %s6070_s25 = sld [smem:[#allocation38_spill]] }
 0x1a5   : > { %vm4253_vm13 = vmand %vm6049_vm14, %vm1534_vm6  ;;  %v1573_v48 = vstv %s577_s2  ;;  %v1357_v11 = vsel %vm1355_vm2, %v1356_v63, %v1354_v49  ;;  %v1518_v57 = vsub.f32 %v6033_v2, %v1517_v28  ;;  %v1521_v7 = vsub.f32 %v6034_v3, %v1520_v37  ;;  %s4351_s20 = scalar_select %p656_p3, -1.0, 1.0 }
 0x1a6   : > { %vm1536_vm9 = vmxor %vm4220_vm7, %vm4253_vm13  ;;  %v1545_v46 = vmax.f32 %v1544_v30, 0.0  ;;  %v1358_v17 = vsub.f32 0.0, %v1357_v11  ;;  %v1564_v58 = vsub.f32 %v1561_v60, %v1563_v18  ;;  %v1572_v55 = vmul.f32 %v1571_v14, %v6055_v42  ;;  %v6068_v30 = vld [vmem:[#allocation125_spill] sm:$0xff]  ;;  %s611_s11 = smul.f32 %s4316_s9, %s6053_s10  ;;  %s6079_s2 = sld [smem:[#allocation105_spill]] }
 0x1a7   : > { %v1574_v38 = vmul.f32 %v1573_v48, %v6056_v62  ;;  %v1522_v53 = vmul.f32 %v1518_v57, %v1518_v57  ;;  %v1523_v63 = vmul.f32 %v1521_v7, %v1521_v7  ;;  %v1591_v3 = vstv %s580_s21  ;;  %vm6057_vm0 = vmxor %vm4059_vm10, %vm4096_vm12  ;;  %s6080_s21 = sld [smem:[#allocation7_spill]]  ;;  %s6105_s9 = sld [smem:[#allocation24_spill]] }
 0x1a8   : > { %v1546_v2 = vmin.f32 %v1545_v46, 1.0  ;;  %v4297_v10 = vsel %vm6057_vm0, %v1357_v11, %v1358_v17  ;;  %vm1565_vm2 = vcmp.lt.f32.partialorder %v1564_v58, 0.0  ;;  %v1796_v19 = vstv %s6054_s22 }
 0x1a9   : > { %v1575_v9 = vadd.f32 %v1574_v38, %v1572_v55  ;;  %v1524_v27 = vadd.f32 %v1523_v63, %v1522_v53  ;;  %v6059_v0 = vstv %s6025_s17  ;;  %v6060_v44 = vstv %s5878_s7  ;;  %s6066_s7 = sld [smem:[#allocation27_spill]]  ;;  %s596_s17 = smul.f32 %s4273_s16, %s6042_s28 }
 0x1aa   : > { %v1548_v54 = vmul.f32 %v6059_v0, %v1546_v2  ;;  %v1551_v15 = vmul.f32 %v6060_v44, %v1546_v2  ;;  %vm6062_vm15 = vnez %v6061_v8  ;;  %v1592_v45 = vmul.f32 %v1591_v3, %v6055_v42  ;;  %v6072_v2 = vld [vmem:[#allocation119_spill] sm:$0xff]  ;;  %p671_p4 = scmp.lt.f32.partialorder %s6070_s25, 0.0 }
 0x1ab   : > { %vm6063_vm5 = vmxor %vm6048_vm11, %vm6062_vm15  ;;  %v1576_v60 = vmax.f32 %v1575_v9, 0.0  ;;  %v1593_v5 = vstv %s581_s3  ;;  %v1602_v39 = vstv %s591_s1  ;;  %v1604_v41 = vstv %s592_s13  ;;  %s4387_s1 = spop %2244 }
 0x1ac   : > { %vm1566_vm3 = vmand %vm6063_vm5, %vm1565_vm2  ;;  %v1525_v26 = vmin.f32 %v1494_v50, %v1524_v27  ;;  %v1549_v59 = vsub.f32 %v6043_v61, %v1548_v54  ;;  %v1552_v28 = vsub.f32 %v6044_v6, %v1551_v15  ;;  %v1594_v47 = vmul.f32 %v1593_v5, %v6056_v62  ;;  %v6077_v27 = vld [vmem:[#allocation127_spill] sm:$0xff]  ;;  %s4400_s16 = scalar_select %p671_p4, -1.0, 1.0 }
 0x1ad   : > { %vm4323_vm6 = vmxor %vm1536_vm9, %vm1566_vm3  ;;  %v1577_v37 = vmin.f32 %v1576_v60, 1.0  ;;  %v1603_v51 = vmul.f32 %v1602_v39, %v6067_v29  ;;  %v1605_v18 = vmul.f32 %v1604_v41, %v6068_v30  ;;  %v1622_v49 = vstv %s595_s23  ;;  %v6078_v60 = vld [vmem:[#allocation128_spill] sm:$0xff]  ;;  %s670_s3 = smul.f32 %s4387_s1, %s6070_s25  ;;  %s4433_s5 = spop %2246 }
 0x1ae   : > { %v1553_v50 = vmul.f32 %v1549_v59, %v1549_v59  ;;  %v1554_v14 = vmul.f32 %v1552_v28, %v1552_v28  ;;  %v1595_v61 = vsub.f32 %v1592_v45, %v1594_v47  ;;  %v1623_v6 = vmul.f32 %v1622_v49, %v6067_v29  ;;  %s673_s13 = smul.f32 %s4400_s16, %s6070_s25 }
 0x1af   : > { %s654_s19 = smul.f32 %s4301_s26, %s6066_s7  ;;  %v6069_v48 = vstv %s5889_s24  ;;  %v6071_v57 = vstv %s5890_s4  ;;  %v1606_v46 = vadd.f32 %v1605_v18, %v1603_v51  ;;  %v1624_v17 = vstv %s596_s17  ;;  %v6083_v18 = vld [vmem:[#allocation126_spill] sm:$0xff]  ;;  %s4479_s17 = spop %2248 }
 0x1b0   : > { %v1579_v11 = vmul.f32 %v6069_v48, %v1577_v37  ;;  %v1582_v7 = vmul.f32 %v6071_v57, %v1577_v37  ;;  %v1555_v58 = vadd.f32 %v1554_v14, %v1553_v50  ;;  %vm1596_vm7 = vcmp.lt.f32.partialorder %v1595_v61, 0.0  ;;  %s655_s24 = smul.f32 %s4301_s26, %s6058_s0  ;;  %v6088_v61 = vld [vmem:[#allocation129_spill] sm:$0xff] }
 0x1b1   : > { %v1625_v55 = vmul.f32 %v1624_v17, %v6068_v30  ;;  %v1633_v38 = vstv %s606_s29  ;;  %vm6073_vm11 = vnez %v6072_v2  ;;  %v1607_v9 = vmax.f32 %v1606_v46, 0.0  ;;  %s658_s4 = smul.f32 %s4351_s20, %s6058_s0 }
 0x1b2   : > { %v1580_v53 = vsub.f32 %v6055_v42, %v1579_v11  ;;  %v1583_v63 = vsub.f32 %v6056_v62, %v1582_v7  ;;  %vm6074_vm14 = vmxor %vm6062_vm15, %vm6073_vm11  ;;  %v1634_v0 = vmul.f32 %v1633_v38, %v6077_v27  ;;  %v1556_v42 = vmin.f32 %v1525_v26, %v1555_v58  ;;  %s659_s15 = smul.f32 %s4351_s20, %s6066_s7 }
 0x1b3   : > { %vm4366_vm13 = vmand %vm6074_vm14, %vm1596_vm7  ;;  %v1626_v62 = vsub.f32 %v1623_v6, %v1625_v55  ;;  %v1635_v54 = vstv %s607_s8  ;;  %v1651_v44 = vstv %s610_s18  ;;  %v1608_v45 = vmin.f32 %v1607_v9, 1.0  ;;  %v6093_v55 = vld [vmem:[#allocation130_spill] sm:$0xff]  ;;  %s674_s29 = smul.f32 %s4400_s16, %s6080_s21  ;;  %s6106_s8 = sld [smem:[#allocation57_spill]] }
 0x1b4   : > { %vm1598_vm9 = vmxor %vm4323_vm6, %vm4366_vm13  ;;  %v1584_v15 = vmul.f32 %v1580_v53, %v1580_v53  ;;  %v1585_v8 = vmul.f32 %v1583_v63, %v1583_v63  ;;  %v1636_v5 = vmul.f32 %v1635_v54, %v6078_v60  ;;  %v1652_v39 = vmul.f32 %v1651_v44, %v6077_v27  ;;  %s4460_s23 = scalar_select %p686_p5, -1.0, 1.0 }
 0x1b5   : > { %vm1627_vm0 = vcmp.lt.f32.partialorder %v1626_v62, 0.0  ;;  %v1653_v41 = vstv %s611_s11  ;;  %v1724_v26 = vstv %s654_s19  ;;  %v6081_v28 = vstv %s6042_s28  ;;  %s6092_s28 = sld [smem:[#allocation13_spill]]  ;;  %s685_s26 = smul.f32 %s4433_s5, %s6054_s22 }
 0x1b6   : > { %v1586_v59 = vadd.f32 %v1585_v8, %v1584_v15  ;;  %v1610_v47 = vmul.f32 %v6081_v28, %v1608_v45  ;;  %v6082_v37 = vstv %s5893_s6  ;;  %vm6084_vm2 = vnez %v6083_v18  ;;  %s669_s6 = smul.f32 %s4387_s1, %s6080_s21  ;;  %v6104_v18 = vld [vmem:[#allocation132_spill] sm:$0xff]  ;;  %s6123_s1 = sld [smem:[#allocation80_spill]] }
 0x1b7   : > { %v1613_v51 = vmul.f32 %v6082_v37, %v1608_v45  ;;  %vm6085_vm15 = vmxor %vm6073_vm11, %vm6084_vm2  ;;  %v1637_v49 = vadd.f32 %v1636_v5, %v1634_v0  ;;  %v6086_v50 = vmov 0  ;;  %v1654_v14 = vmul.f32 %v1653_v41, %v6078_v60  ;;  %s688_s19 = smul.f32 %s4460_s23, %s6054_s22 }
 0x1b8   : > { %vm1628_vm5 = vmand %vm6085_vm15, %vm1627_vm0  ;;  %v1725_v6 = vmul.f32 %v1724_v26, %v6088_v61  ;;  %v1726_v48 = vstv %s655_s24  ;;  %v6089_v11 = vstv %s6079_s2  ;;  %v4420_v25 = vmin.f32 %v1556_v42, %v1586_v59  ;;  %v6103_v59 = vld [vmem:[#allocation131_spill] sm:$0xff]  ;;  %s689_s20 = smul.f32 %s4460_s23, %s6023_s30  ;;  %s6117_s24 = sld [smem:[#allocation8_spill]] }
 0x1b9   : > { %vm4407_vm3 = vmxor %vm1598_vm9, %vm1628_vm5  ;;  %vm4416_vm7 = vcmp.gt.f32.partialorder %v6089_v11, %v2794_v43  ;;  %v1611_v7 = vsub.f32 %v6067_v29, %v1610_v47  ;;  %v1614_v46 = vsub.f32 %v6068_v30, %v1613_v51  ;;  %v1638_v17 = vmax.f32 %v1637_v49, 0.0  ;;  %s699_s18 = smul.f32 %s4479_s17, %s6106_s8  ;;  %s6139_s23 = sld [smem:[#allocation63_spill]] }
 0x1ba   : > { %v6087_v50 = vsel %vm4407_vm3, 4294967295, %v6086_v50  ;;  %v1655_v58 = vsub.f32 %v1652_v39, %v1654_v14  ;;  %v1727_v38 = vmul.f32 %v1726_v48, %v6093_v55  ;;  %v1745_v53 = vstv %s658_s4  ;;  %vm6099_vm14 = vmxor %vm6084_vm2, %vm3255_vm1  ;;  %s6120_s4 = sld [smem:[#allocation83_spill]] }
 0x1bb   : > { %v1747_v63 = vstv %s659_s15  ;;  %v1615_v2 = vmul.f32 %v1611_v7, %v1611_v7  ;;  %v1616_v3 = vmul.f32 %v1614_v46, %v1614_v46  ;;  %v1639_v29 = vmin.f32 %v1638_v17, 1.0  ;;  %s4545_s15 = spop %2250 }
 0x1bc   : > { %v1746_v30 = vmul.f32 %v1745_v53, %v6088_v61  ;;  %vm1656_vm6 = vcmp.lt.f32.partialorder %v1655_v58, 0.0  ;;  %v1728_v9 = vadd.f32 %v1727_v38, %v1725_v6  ;;  %v1748_v0 = vmul.f32 %v1747_v63, %v6093_v55 }
 0x1bd   : > { %v6094_v42 = vstv %s6092_s28  ;;  %v1617_v54 = vadd.f32 %v1616_v3, %v1615_v2  ;;  %v6097_v44 = vstv %s6053_s10  ;;  %v6098_v8 = vstv %s6050_s27  ;;  %vm4454_vm13 = vmand %vm6099_vm14, %vm1656_vm6  ;;  %s6102_s27 = sld [smem:[#allocation75_spill]]  ;;  %s684_s10 = smul.f32 %s4433_s5, %s6023_s30 }
 0x1be   : > { %vm4441_vm11 = vcmp.gt.f32.partialorder %v6094_v42, %v2794_v43  ;;  %v1641_v15 = vmul.f32 %v6097_v44, %v1639_v29  ;;  %v1644_v45 = vmul.f32 %v6098_v8, %v1639_v29  ;;  %v6100_v5 = vmov 0  ;;  %v6115_v44 = vld [vmem:[#allocation133_spill] sm:$0xff]  ;;  %s4650_s5 = spop %2252 }
 0x1bf   : > { %v6101_v5 = vsel %vm4454_vm13, 4294967295, %v6100_v5  ;;  %v1755_v39 = vstv %s669_s6  ;;  %v1729_v41 = vmax.f32 %v1728_v9, 0.0  ;;  %v1749_v26 = vsub.f32 %v1746_v30, %v1748_v0  ;;  %vm1744_vm1 = vmxor %vm4416_vm7, %vm4441_vm11  ;;  %s6128_s6 = sld [smem:[#allocation54_spill]]  ;;  %p746_p10 = scmp.lt.f32.partialorder %s6139_s23, 0.0 }
 0x1c0   : > { %v1756_v28 = vmul.f32 %v1755_v39, %v6103_v59  ;;  %v1757_v4 = vstv %s670_s3  ;;  %v1618_v47 = vmin.f32 %v4420_v25, %v1617_v54  ;;  %v1642_v37 = vsub.f32 %v6077_v27, %v1641_v15  ;;  %v6116_v39 = vld [vmem:[#allocation134_spill] sm:$0xff]  ;;  %p716_p7 = scmp.lt.f32.partialorder %s6120_s4, 0.0  ;;  %s715_s16 = smul.f32 %s4545_s15, %s6120_s4 }
 0x1c1   : > { %v1645_v51 = vsub.f32 %v6078_v60, %v1644_v45  ;;  %v1758_v49 = vmul.f32 %v1757_v4, %v6104_v18  ;;  %v1730_v27 = vmin.f32 %v1729_v41, 1.0  ;;  %vm1750_vm0 = vcmp.lt.f32.partialorder %v1749_v26, 0.0  ;;  %s4592_s3 = scalar_select %p226_p8, -1.0, 1.0 }
 0x1c2   : > { %v1775_v14 = vstv %s673_s13  ;;  %v1777_v60 = vstv %s674_s29  ;;  %v1646_v6 = vmul.f32 %v1642_v37, %v1642_v37  ;;  %vm4482_vm2 = vmand %vm1744_vm1, %vm1750_vm0  ;;  %v6109_v46 = vstv %s6066_s7  ;;  %s4583_s28 = scalar_select %p716_p7, -1.0, 1.0 }
 0x1c3   : > { %p701_p6 = scmp.lt.f32.partialorder %s6102_s27, 0.0  ;;  %v1647_v48 = vmul.f32 %v1645_v51, %v1645_v51  ;;  %v1759_v25 = vadd.f32 %v1758_v49, %v1756_v28  ;;  %v1776_v7 = vmul.f32 %v1775_v14, %v6103_v59  ;;  %v1732_v17 = vmul.f32 %v6109_v46, %v1730_v27  ;;  %s700_s11 = smul.f32 %s4479_s17, %s6102_s27 }
 0x1c4   : > { %v6110_v58 = vstv %s6058_s0  ;;  %v1778_v53 = vmul.f32 %v1777_v60, %v6104_v18  ;;  %v6111_v63 = vstv %s6105_s9  ;;  %s6114_s0 = sld [smem:[#allocation41_spill]]  ;;  %v1786_v30 = vstv %s684_s10  ;;  %s718_s30 = smul.f32 %s4583_s28, %s6120_s4 }
 0x1c5   : > { %v1735_v38 = vmul.f32 %v6110_v58, %v1730_v27  ;;  %vm4497_vm15 = vcmp.gt.f32.partialorder %v6111_v63, %v2794_v43  ;;  %v1648_v3 = vadd.f32 %v1647_v48, %v1646_v6  ;;  %v1760_v29 = vmax.f32 %v1759_v25, 0.0  ;;  %s4514_s7 = scalar_select %p701_p6, -1.0, 1.0 }
 0x1c6   : > { %vm1774_vm5 = vmxor %vm4441_vm11, %vm4497_vm15  ;;  %v1788_v9 = vstv %s685_s26  ;;  %v1733_v0 = vsub.f32 %v6088_v61, %v1732_v17  ;;  %v1779_v54 = vsub.f32 %v1776_v7, %v1778_v53  ;;  %v1787_v15 = vmul.f32 %v1786_v30, %v6115_v44  ;;  %v6127_v30 = vld [vmem:[#allocation137_spill] sm:$0xff]  ;;  %p731_p9 = scmp.lt.f32.partialorder %s6128_s6, 0.0  ;;  %s719_s22 = smul.f32 %s4583_s28, %s6123_s1 }
 0x1c7   : > { %v1736_v42 = vsub.f32 %v6093_v55, %v1735_v38  ;;  %v4516_v8 = vmin.f32 %v1618_v47, %v1648_v3  ;;  %v1761_v45 = vmin.f32 %v1760_v29, 1.0  ;;  %v1789_v41 = vmul.f32 %v1788_v9, %v6116_v39  ;;  %s703_s2 = smul.f32 %s4514_s7, %s6102_s27  ;;  %s6134_s13 = sld [smem:[#allocation20_spill]] }
 0x1c8   : > { %v1806_v26 = vstv %s688_s19  ;;  %v1737_v61 = vmul.f32 %v1733_v0, %v1733_v0  ;;  %vm1780_vm6 = vcmp.lt.f32.partialorder %v1779_v54, 0.0  ;;  %v1824_v51 = vstv %s6106_s8  ;;  %s228_s14 = smul.f32 %s4592_s3, %s5905_s12  ;;  %s6138_s29 = sld [smem:[#allocation62_spill]] }
 0x1c9   : > { %v1738_v55 = vmul.f32 %v1736_v42, %v1736_v42  ;;  %2378 = vrsqrt.f32 %v4516_v8  ;;  %v1664_v4 = vand.u32 2147483648, %v4516_v8  ;;  %vm4529_vm14 = vmand %vm1774_vm5, %vm1780_vm6  ;;  %v1807_v37 = vmul.f32 %v1806_v26, %v6115_v44  ;;  %s6141_s26 = sld [smem:[#allocation51_spill]]  ;;  %s6142_s9 = sld [smem:[#allocation47_spill]] }
 0x1ca   : > { %v1845_v28 = vstv %s6114_s0  ;;  %v6121_v27 = vstv %s6080_s21  ;;  %v6122_v60 = vstv %s6070_s25  ;;  %vm1782_vm1 = vmxor %vm4482_vm2, %vm4529_vm14  ;;  %v1790_v62 = vadd.f32 %v1789_v41, %v1787_v15  ;;  %s704_s21 = smul.f32 %s4514_s7, %s6106_s8  ;;  %s6147_s12 = sld [smem:[#allocation65_spill]] }
 0x1cb   : > { %v1739_v49 = vadd.f32 %v1738_v55, %v1737_v61  ;;  %v1763_v14 = vmul.f32 %v6121_v27, %v1761_v45  ;;  %v1766_v6 = vmul.f32 %v6122_v60, %v1761_v45  ;;  %v1808_v48 = vstv %s689_s20  ;;  %s714_s25 = smul.f32 %s4545_s15, %s6123_s1  ;;  %s6144_s20 = sld [smem:[#allocation60_spill]] }
 0x1cc   : > { %v6124_v25 = vstv %s6117_s24  ;;  %v1817_v46 = vstv %s699_s18  ;;  %v1819_v17 = vstv %s700_s11  ;;  %v1791_v63 = vmax.f32 %v1790_v62, 0.0  ;;  %s730_s8 = smul.f32 %s4650_s5, %s6128_s6  ;;  %s4692_s18 = spop %2254 }
 0x1cd   : > { %vm4556_vm0 = vcmp.gt.f32.partialorder %v6124_v25, %v2794_v43  ;;  %v1740_v58 = vmin.f32 %v1739_v49, 1e+30  ;;  %v1764_v38 = vsub.f32 %v6103_v59, %v1763_v14  ;;  %v1767_v53 = vsub.f32 %v6104_v18, %v1766_v6  ;;  %s229_s10 = smul.f32 %s4592_s3, %s6134_s13  ;;  %s4706_s7 = spop %2256 }
 0x1ce   : > { %vm1805_vm5 = vmxor %vm4497_vm15, %vm4556_vm0  ;;  %v1809_v3 = vmul.f32 %v1808_v48, %v6116_v39  ;;  %v1818_v29 = vmul.f32 %v1817_v46, %v3643_v23  ;;  %v1820_v9 = vmul.f32 %v1819_v17, %v6127_v30  ;;  %v1827_v0 = vstv %s6102_s27  ;;  %s4663_s27 = scalar_select %p731_p9, -1.0, 1.0 }
 0x1cf   : > { %v1768_v59 = vmul.f32 %v1764_v38, %v1764_v38  ;;  %v1769_v18 = vmul.f32 %v1767_v53, %v1767_v53  ;;  %v1792_v42 = vmin.f32 %v1791_v63, 1.0  ;;  %v1837_v54 = vstv %s703_s2  ;;  %s729_s17 = smul.f32 %s4650_s5, %s6138_s29  ;;  %s6148_s24 = sld [smem:[#allocation64_spill]] }
 0x1d0   : > { %v1810_v15 = vsub.f32 %v1807_v37, %v1809_v3  ;;  %v1821_v45 = vadd.f32 %v1820_v9, %v1818_v29  ;;  %v1838_v41 = vmul.f32 %v1837_v54, %v3643_v23  ;;  %v1839_v26 = vstv %s704_s21  ;;  %s733_s19 = smul.f32 %s4663_s27, %s6128_s6  ;;  %s6149_s2 = sld [smem:[#allocation86_spill]] }
 0x1d1   : > { %v1770_v61 = vadd.f32 %v1769_v18, %v1768_v59  ;;  %v1794_v55 = vmul.f32 %v1793_v56, %v1792_v42  ;;  %v1797_v49 = vmul.f32 %v1796_v19, %v1792_v42  ;;  %v1840_v27 = vmul.f32 %v1839_v26, %v6127_v30  ;;  %v6131_v56 = vld [vmem:[#allocation106_spill] sm:$0xff]  ;;  %s734_s0 = smul.f32 %s4663_s27, %s6138_s29  ;;  %s6150_s15 = sld [smem:[#allocation6_spill]] }
 0x1d2   : > { %vm1811_vm9 = vcmp.lt.f32.partialorder %v1810_v15, 0.0  ;;  %v1822_v37 = vmax.f32 %v1821_v45, 0.0  ;;  %vm4597_vm6 = vcmp.gt.f32.partialorder %v1834_v33, %v2794_v43  ;;  %v4602_v19 = vsub.f32 %v6131_v56, %v1845_v28  ;;  %s4720_s11 = scalar_select %p746_p10, -1.0, 1.0 }
 0x1d3   : > { %v4604_v60 = vmin.f32 %v1740_v58, %v1770_v61  ;;  %v1795_v6 = vsub.f32 %v6115_v44, %v1794_v55  ;;  %v1798_v62 = vsub.f32 %v6116_v39, %v1797_v49  ;;  %vm1812_vm11 = vmand %vm1805_vm5, %vm1811_vm9  ;;  %v1841_v48 = vsub.f32 %v1838_v41, %v1840_v27  ;;  %v2379_v28 = vpop.eup %2378  ;;  %p761_p11 = scmp.lt.f32.partialorder %s6147_s12, 0.0  ;;  %s6151_s21 = sld [smem:[#allocation16_spill]] }
 0x1d4   : > { %vm4619_vm12 = vmxor %vm1782_vm1, %vm1812_vm11  ;;  %v1823_v2 = vmin.f32 %v1822_v37, 1.0  ;;  %v4628_v39 = vsub.f32 %v2794_v43, %v1834_v33  ;;  %v1848_v25 = vstv %s714_s25  ;;  %v1850_v46 = vstv %s715_s16  ;;  %s6152_s25 = sld [smem:[#allocation71_spill]]  ;;  %s748_s28 = smul.f32 %s4720_s11, %s6139_s23 }
 0x1d5   : > { %v1660_v17 = vmul.f32 %v2379_v28, %v4516_v8  ;;  %v1799_v11 = vmul.f32 %v1795_v6, %v1795_v6  ;;  %v1800_v47 = vmul.f32 %v1798_v62, %v1798_v62  ;;  %vm1836_vm9 = vmxor %vm4556_vm0, %vm4597_vm6  ;;  %vm1842_vm2 = vcmp.lt.f32.partialorder %v1841_v48, 0.0  ;;  %s759_s16 = smul.f32 %s4706_s7, %s6148_s24  ;;  %s6158_s5 = sld [smem:[#allocation48_spill]] }
 0x1d6   : > { %v1825_v33 = vmul.f32 %v1824_v51, %v1823_v2  ;;  %v1828_v58 = vmul.f32 %v1827_v0, %v1823_v2  ;;  %vm4644_vm15 = vmand %vm1836_vm9, %vm1842_vm2  ;;  %v1849_v53 = vmul.f32 %v1848_v25, %v4602_v19  ;;  %v1851_v63 = vmul.f32 %v1850_v46, %v4628_v39  ;;  %s6160_s27 = sld [smem:[#allocation31_spill]]  ;;  %s6174_s13 = sld [smem:[#allocation40_spill]] }
 0x1d7   : > { %vm6137_vm14 = vcmp.eq.f32.partialorder %v4516_v8, inf  ;;  %v1801_v3 = vadd.f32 %v1800_v47, %v1799_v11  ;;  %vm1844_vm1 = vmxor %vm4619_vm12, %vm4644_vm15  ;;  %v1855_v51 = vstv %s6123_s1  ;;  %v1858_v29 = vstv %s6120_s4  ;;  %s744_s4 = smul.f32 %s4692_s18, %s6144_s20  ;;  %p145_p12 = scmp.lt.s32.totalorder %s6150_s15, 5 }
 0x1d8   : > { %v1662_v7 = vsel %vm6137_vm14, %v4516_v8, %v1660_v17  ;;  %vm6140_vm11 = vcmp.eq.f32.partialorder %v4516_v8, 0.0  ;;  %v1826_v0 = vsub.f32 %v3643_v23, %v1825_v33  ;;  %v1829_v59 = vsub.f32 %v6127_v30, %v1828_v58  ;;  %vm6143_vm0 = vmxor %vm4407_vm3, %vm4454_vm13  ;;  %s745_s1 = smul.f32 %s4692_s18, %s6139_s23 }
 0x1d9   : > { %v1665_v9 = vsel %vm6140_vm11, %v1664_v4, %v1662_v7  ;;  %v1852_v18 = vadd.f32 %v1851_v63, %v1849_v53  ;;  %v1802_v54 = vmin.f32 %v4604_v60, %v1801_v3  ;;  %v1868_v15 = vstv %s718_s30  ;;  %s749_s30 = smul.f32 %s4720_s11, %s6144_s20  ;;  %p196_p13 = scmp.lt.f32.partialorder %s6151_s21, 0.0 }
 0x1da   : > { %v1666_v42 = vsub.f32 0.0, %v1665_v9  ;;  %v1870_v45 = vstv %s719_s22  ;;  %v1830_v8 = vmul.f32 %v1826_v0, %v1826_v0  ;;  %v1831_v23 = vmul.f32 %v1829_v59, %v1829_v59  ;;  %s4774_s22 = scalar_select %p761_p11, -1.0, 1.0 }
 0x1db   : > { %v1853_v4 = vmax.f32 %v1852_v18, 0.0  ;;  %v1869_v41 = vmul.f32 %v1868_v15, %v4602_v19  ;;  %v1871_v26 = vmul.f32 %v1870_v45, %v4628_v39  ;;  %v1865_v61 = vstv %s6141_s26  ;;  %s6243_s15 = smov (!%p145_p12, %s6150_s15), 5  ;;  %s6170_s11 = sld [smem:[#allocation37_spill]] }
 0x1dc   : > { %v4685_v30 = vsel %vm6143_vm0, %v1665_v9, %v1666_v42  ;;  %v1876_v55 = vstv %s6142_s9  ;;  %v4697_v49 = vstv %s228_s14  ;;  %v1832_v27 = vadd.f32 %v1831_v23, %v1830_v8  ;;  %s760_s14 = smul.f32 %s4706_s7, %s6147_s12  ;;  %p256_p1 = scmp.lt.f32.partialorder %s6160_s27, 0.0 }
 0x1dd   : > { %v1854_v37 = vmin.f32 %v1853_v4, 1.0  ;;  %vm4702_vm5 = vcmp.gt.f32.partialorder %v1865_v61, %v2794_v43  ;;  %v1872_v6 = vsub.f32 %v1869_v41, %v1871_v26  ;;  %v4713_v62 = vsub.f32 %v6131_v56, %v1876_v55  ;;  %s4801_s26 = scalar_select %p196_p13, -1.0, 1.0 }
 0x1de   : > { %vm1867_vm9 = vmxor %vm4597_vm6, %vm4702_vm5  ;;  %v4716_v48 = vsub.f32 %v2794_v43, %v1865_v61  ;;  %v1879_v28 = vstv %s729_s17  ;;  %v4722_v2 = vmin.f32 %v1802_v54, %v1832_v27  ;;  %v1881_v17 = vstv %s730_s8  ;;  %s764_s9 = smul.f32 %s4774_s22, %s6148_s24  ;;  %s6163_s17 = sld [smem:[#allocation14_spill]] }
 0x1df   : > { %v1856_v25 = vmul.f32 %v1855_v51, %v1854_v37  ;;  %v1859_v46 = vmul.f32 %v1858_v29, %v1854_v37  ;;  %vm1873_vm2 = vcmp.lt.f32.partialorder %v1872_v6, 0.0  ;;  %v1880_v11 = vmul.f32 %v1879_v28, %v4713_v62  ;;  %s6164_s8 = sld [smem:[#allocation34_spill]]  ;;  %s198_s18 = smul.f32 %s4801_s26, %s6151_s21 }
 0x1e0   : > { %v1882_v47 = vmul.f32 %v1881_v17, %v4716_v48  ;;  %v1886_v33 = vstv %s6138_s29  ;;  %vm1874_vm14 = vmand %vm1867_vm9, %vm1873_vm2  ;;  %v1889_v63 = vstv %s6128_s6  ;;  %v1899_v7 = vstv %s733_s19  ;;  %s6155_s6 = sld [smem:[#allocation26_spill]]  ;;  %s6159_s29 = sld [smem:[#allocation67_spill]] }
 0x1e1   : > { %v1857_v58 = vsub.f32 %v4602_v19, %v1856_v25  ;;  %v1860_v53 = vsub.f32 %v4628_v39, %v1859_v46  ;;  %vm4750_vm11 = vmxor %vm1844_vm1, %vm1874_vm14  ;;  %v1900_v39 = vmul.f32 %v1899_v7, %v4713_v62  ;;  %v1901_v3 = vstv %s734_s0  ;;  %s6169_s0 = sld [smem:[#allocation23_spill]]  ;;  %s6175_s7 = sld [smem:[#allocation28_spill]] }
 0x1e2   : > { %v1883_v14 = vadd.f32 %v1882_v47, %v1880_v11  ;;  %v1896_v51 = vstv %s6149_s2  ;;  %v1902_v38 = vmul.f32 %v1901_v3, %v4716_v48  ;;  %v1907_v59 = vstv %s6152_s25  ;;  %p286_p3 = scmp.lt.f32.partialorder %s6170_s11, 0.0  ;;  %s6177_s2 = sld [smem:[#allocation9_spill]] }
 0x1e3   : > { %v1861_v29 = vmul.f32 %v1857_v58, %v1857_v58  ;;  %v1862_v44 = vmul.f32 %v1860_v53, %v1860_v53  ;;  %vm4763_vm12 = vcmp.gt.f32.partialorder %v1896_v51, %v2794_v43  ;;  %v4770_v18 = vsub.f32 %v2794_v43, %v1896_v51  ;;  %p301_p4 = scmp.lt.f32.partialorder %s6174_s13, 0.0 }
 0x1e4   : > { %v1884_v0 = vmax.f32 %v1883_v14, 0.0  ;;  %v1910_v42 = vstv %s744_s4  ;;  %v1903_v15 = vsub.f32 %v1900_v39, %v1902_v38  ;;  %v4779_v45 = vsub.f32 %v6131_v56, %v1907_v59  ;;  %vm1898_vm15 = vmxor %vm4702_vm5, %vm4763_vm12  ;;  %s4866_s4 = scalar_select %p256_p1, -1.0, 1.0 }
 0x1e5   : > { %v4776_v54 = vadd.f32 %v1862_v44, %v1861_v29  ;;  %v1912_v8 = vstv %s745_s1  ;;  %v1917_v41 = vstv %s6144_s20  ;;  %v1920_v26 = vstv %s6139_s23  ;;  %s763_s23 = smul.f32 %s4774_s22, %s6147_s12  ;;  %p271_p2 = scmp.lt.f32.partialorder %s6164_s8, 0.0 }
 0x1e6   : > { %p241_p0 = scmp.lt.f32.partialorder %s6155_s6, 0.0  ;;  %v1885_v23 = vmin.f32 %v1884_v0, 1.0  ;;  %v1913_v4 = vmul.f32 %v1912_v8, %v4770_v18  ;;  %vm4794_vm6 = vcmp.lt.f32.partialorder %v1903_v15, 0.0  ;;  %v1911_v27 = vmul.f32 %v1910_v42, %v4779_v45  ;;  %s199_s20 = smul.f32 %s4801_s26, %s6163_s17  ;;  %v6171_v0 = vld [vmem:[#allocation110_spill] sm:$0xff] }
 0x1e7   : > { %v1864_v61 = vmin.f32 %v4722_v2, %v4776_v54  ;;  %v1930_v37 = vstv %s748_s28  ;;  %v1932_v25 = vstv %s749_s30  ;;  %v1927_v11 = vstv %s6158_s5  ;;  %vm4837_vm0 = vmand %vm1898_vm15, %vm4794_vm6  ;;  %s6178_s1 = sld [smem:[#allocation10_spill]]  ;;  %s6187_s28 = sld [smem:[#allocation33_spill]] }
 0x1e8   : > { %v1887_v6 = vmul.f32 %v1886_v33, %v1885_v23  ;;  %v1890_v28 = vmul.f32 %v1889_v63, %v1885_v23  ;;  %v1931_v2 = vmul.f32 %v1930_v37, %v4779_v45  ;;  %v1914_v46 = vadd.f32 %v1913_v4, %v1911_v27  ;;  %s4828_s19 = scalar_select %p241_p0, -1.0, 1.0  ;;  %vm1906_vm2 = vmxor %vm4750_vm11, %vm4837_vm0 }
 0x1e9   : > { %v1933_v17 = vmul.f32 %v1932_v25, %v4770_v18  ;;  %v1938_v47 = vstv %s6159_s29  ;;  %vm4819_vm1 = vcmp.gt.f32.partialorder %v1927_v11, %v2794_v43  ;;  %v1941_v14 = vstv %s759_s16  ;;  %s4901_s25 = scalar_select %p271_p2, -1.0, 1.0 }
 0x1ea   : > { %v1888_v33 = vsub.f32 %v4713_v62, %v1887_v6  ;;  %v1891_v58 = vsub.f32 %v4716_v48, %v1890_v28  ;;  %v4824_v63 = vsub.f32 %v6131_v56, %v1938_v47  ;;  %v1915_v48 = vmax.f32 %v1914_v46, 0.0  ;;  %vm1929_vm5 = vmxor %vm4763_vm12, %vm4819_vm1  ;;  %s243_s3 = smul.f32 %s4828_s19, %s6155_s6  ;;  %v6188_v62 = vld [vmem:[#allocation109_spill] sm:$0xff]  ;;  %s6189_s30 = sld [smem:[#allocation22_spill]] }
 0x1eb   : > { %v1934_v7 = vsub.f32 %v1931_v2, %v1933_v17  ;;  %v4842_v56 = vsub.f32 %v2794_v43, %v1927_v11  ;;  %v1943_v51 = vstv %s760_s14  ;;  %v883_v29 = vstv %s229_s10  ;;  %s244_s10 = smul.f32 %s4828_s19, %s6169_s0  ;;  %vm1958_vm12 = vmxor %vm4819_vm1, %vm4416_vm7  ;;  %s6192_s22 = sld [smem:[#allocation36_spill]] }
 0x1ec   : > { %v1892_v39 = vmul.f32 %v1888_v33, %v1888_v33  ;;  %v1893_v60 = vmul.f32 %v1891_v58, %v1891_v58  ;;  %v1942_v3 = vmul.f32 %v1941_v14, %v4824_v63  ;;  %v1916_v44 = vmin.f32 %v1915_v48, 1.0  ;;  %s4946_s16 = scalar_select %p286_p3, -1.0, 1.0  ;;  %v6190_v14 = vld [vmem:[#allocation136_spill] sm:$0xff] }
 0x1ed   : > { %vm1935_vm9 = vcmp.lt.f32.partialorder %v1934_v7, 0.0  ;;  %v1944_v38 = vmul.f32 %v1943_v51, %v4842_v56  ;;  %v882_v59 = vmul.f32 %v4697_v49, %v6171_v0  ;;  %v1959_v54 = vstv %s763_s23  ;;  %s273_s21 = smul.f32 %s4901_s25, %s6164_s8  ;;  %v6195_v0 = vld [vmem:[#allocation107_spill] sm:$0xff]  ;;  %s6199_s29 = sld [smem:[#allocation39_spill]] }
 0x1ee   : > { %v1894_v42 = vadd.f32 %v1893_v60, %v1892_v39  ;;  %v1961_v15 = vstv %s764_s9  ;;  %v1918_v8 = vmul.f32 %v1917_v41, %v1916_v44  ;;  %v1921_v23 = vmul.f32 %v1920_v26, %v1916_v44  ;;  %vm4887_vm14 = vmand %vm1929_vm5, %vm1935_vm9  ;;  %v6176_v41 = vld [vmem:[#allocation108_spill] sm:$0xff]  ;;  %v6191_v39 = vld [vmem:[#allocation135_spill] sm:$0xff]  ;;  %s4975_s14 = scalar_select %p301_p4, -1.0, 1.0 }
 0x1ef   : > { %v1945_v4 = vadd.f32 %v1944_v38, %v1942_v3  ;;  %v1960_v55 = vmul.f32 %v1959_v54, %v4824_v63  ;;  %v884_v9 = vmul.f32 %v883_v29, %v6176_v41  ;;  %v1948_v26 = vstv %s6148_s24  ;;  %vm4921_vm6 = vmxor %vm1906_vm2, %vm4887_vm14  ;;  %s259_s24 = smul.f32 %s4866_s4, %s6175_s7  ;;  %s6200_s23 = sld [smem:[#allocation25_spill]] }
 0x1f0   : > { %v1951_v27 = vstv %s6147_s12  ;;  %v1962_v37 = vmul.f32 %v1961_v15, %v4842_v56  ;;  %v4903_v6 = vmin.f32 %v1864_v61, %v1894_v42  ;;  %v1919_v28 = vsub.f32 %v4779_v45, %v1918_v8  ;;  %s258_s12 = smul.f32 %s4866_s4, %s6160_s27  ;;  %vm6203_vm14 = vmxor %vm3813_vm8, %vm3820_vm4  ;;  %s6206_s9 = sld [smem:[#allocation29_spill]] }
 0x1f1   : > { %v1922_v2 = vsub.f32 %v4770_v18, %v1921_v23  ;;  %v1946_v25 = vmax.f32 %v1945_v4, 0.0  ;;  %v6181_v61 = vstv %s6177_s2  ;;  %v6184_v17 = vstv %s6178_s1  ;;  %s274_s5 = smul.f32 %s4901_s25, %s6187_s28  ;;  %s2173_s27 = sshll.u32 %s6243_s15, 1 }
 0x1f2   : > { %v1963_v45 = vsub.f32 %v1960_v55, %v1962_v37  ;;  %vm4930_vm15 = vcmp.gt.f32.partialorder %v6181_v61, %v2794_v43  ;;  %vm4937_vm5 = vcmp.gt.f32.partialorder %v6184_v17, %v2794_v43  ;;  %v820_v19 = vstv %s198_s18  ;;  %s288_s26 = smul.f32 %s4946_s16, %s6170_s11  ;;  %s6219_s8 = sld [smem:[#allocation32_spill]] }
 0x1f3   : > { %v1923_v47 = vmul.f32 %v1919_v28, %v1919_v28  ;;  %v1924_v33 = vmul.f32 %v1922_v2, %v1922_v2  ;;  %v1947_v58 = vmin.f32 %v1946_v25, 1.0  ;;  %v821_v48 = vmul.f32 %v820_v19, %v6188_v62  ;;  %vm849_vm9 = vmxor %vm4937_vm5, %vm3813_vm8  ;;  %s289_s6 = smul.f32 %s4946_s16, %s6192_s22  ;;  %s6220_s0 = sld [smem:[#allocation139_spill]] }
 0x1f4   : > { %vm1964_vm0 = vcmp.lt.f32.partialorder %v1963_v45, 0.0  ;;  %v822_v7 = vstv %s199_s20  ;;  %v854_v60 = vsub.f32 %v6191_v39, %v6190_v14  ;;  %v885_v3 = vsub.f32 %v882_v59, %v884_v9  ;;  %s303_s17 = smul.f32 %s4975_s14, %s6174_s13 }
 0x1f5   : > { %v1925_v51 = vadd.f32 %v1924_v33, %v1923_v47  ;;  %v1949_v29 = vmul.f32 %v1948_v26, %v1947_v58  ;;  %v1952_v44 = vmul.f32 %v1951_v27, %v1947_v58  ;;  %vm4969_vm2 = vmand %vm1958_vm12, %vm1964_vm0  ;;  %v823_v42 = vmul.f32 %v822_v7, %v6195_v0  ;;  %s304_s19 = smul.f32 %s4975_s14, %s6199_s29 }
 0x1f6   : > { %vm855_vm7 = vcmp.lt.f32.partialorder %v854_v60, 0.0  ;;  %vm886_vm1 = vcmp.lt.f32.partialorder %v885_v3, 0.0  ;;  %v6196_v57 = vstv %s6189_s30  ;;  %v912_v59 = vstv %s243_s3 }
 0x1f7   : > { %vm4987_vm12 = vcmp.gt.f32.partialorder %v6196_v57, %v2794_v43  ;;  %v1950_v54 = vsub.f32 %v4824_v63, %v1949_v29  ;;  %v1953_v15 = vsub.f32 %v4842_v56, %v1952_v44  ;;  %v824_v8 = vsub.f32 %v821_v48, %v823_v42  ;;  %vm5003_vm0 = vmand %vm849_vm9, %vm855_vm7 }
 0x1f8   : > { %v1926_v49 = vmin.f32 %v4903_v6, %v1925_v51  ;;  %vm5015_vm11 = vmand %vm6203_vm14, %vm886_vm1  ;;  %v913_v56 = vmul.f32 %v912_v59, %v3158_v1  ;;  %v914_v4 = vstv %s244_s10  ;;  %v943_v55 = vstv %s258_s12 }
 0x1f9   : > { %v1954_v41 = vmul.f32 %v1950_v54, %v1950_v54  ;;  %v1955_v9 = vmul.f32 %v1953_v15, %v1953_v15  ;;  %vm825_vm9 = vcmp.lt.f32.partialorder %v824_v8, 0.0  ;;  %v915_v24 = vmul.f32 %v914_v4, %v3136_v20  ;;  %vm6207_vm14 = vmxor %vm4930_vm15, %vm4937_vm5  ;;  %s148_s11 = scalar_lea.vmem %s6220_s0, %s2173_s27 }
 0x1fa   : > { %vm826_vm7 = vmand %vm6207_vm14, %vm825_vm9  ;;  %v6208_v1 = vstv %s6200_s23  ;;  %v944_v27 = vmul.f32 %v943_v55, %v3162_v21  ;;  %v945_v37 = vstv %s259_s24  ;;  %v974_v20 = vstv %s273_s21  ;;  %s6240_s23 = sld [smem:[#allocation140_spill]] }
 0x1fb   : > { %vm5043_vm1 = vcmp.gt.f32.partialorder %v6208_v1, %v2794_v43  ;;  %v1956_v6 = vadd.f32 %v1955_v9, %v1954_v41  ;;  %vm857_vm8 = vmxor %vm826_vm7, %vm5003_vm0  ;;  %v916_v28 = vsub.f32 %v913_v56, %v915_v24  ;;  %v946_v2 = vmul.f32 %v945_v37, %v3167_v13 }
 0x1fc   : > { %v6211_v25 = vstv %s6206_s9  ;;  %vm5067_vm9 = vmxor %vm857_vm8, %vm5015_vm11  ;;  %v975_v61 = vmul.f32 %v974_v20, %v3170_v22  ;;  %v976_v17 = vstv %s274_s5  ;;  %v1005_v11 = vstv %s288_s26  ;;  %s2174_s5 = sshll.u32 %s6243_s15, 2 }
 0x1fd   : > { %vm5060_vm5 = vcmp.gt.f32.partialorder %v6211_v25, %v2794_v43  ;;  %v1007_v13 = vstv %s289_s6  ;;  %v1957_v19 = vmin.f32 %v1926_v49, %v1956_v6  ;;  %vm917_vm0 = vcmp.lt.f32.partialorder %v916_v28, 0.0  ;;  %vm942_vm14 = vmxor %vm4987_vm12, %vm5043_vm1 }
 0x1fe   : > { %v947_v47 = vsub.f32 %v944_v27, %v946_v2  ;;  %v977_v33 = vmul.f32 %v976_v17, %v3182_v32  ;;  %vm6216_vm11 = vmxor %vm3820_vm4, %vm4987_vm12  ;;  %v1006_v58 = vmul.f32 %v1005_v11, %v3185_v36  ;;  %v1008_v62 = vmul.f32 %v1007_v13, %v3190_v40 }
 0x1ff   : > { %vm5088_vm8 = vmand %vm6216_vm11, %vm917_vm0  ;;  %v1034_v48 = vstv %s303_s17  ;;  %v1036_v7 = vstv %s304_s19  ;;  %v1360_v14 = vsub.f32 0.0, %v4297_v10  ;;  %v1668_v32 = vsub.f32 0.0, %v4685_v30  ;;  %v5115_v30 = vld [vmem:[%s148_s11] sm:$0x3] }
 0x200   : > { %2380 = vrsqrt.f32 %v1957_v19  ;;  %vm919_vm4 = vmxor %vm5067_vm9, %vm5088_vm8  ;;  %vm948_vm7 = vcmp.lt.f32.partialorder %v947_v47, 0.0  ;;  %v978_v36 = vsub.f32 %v975_v61, %v977_v33  ;;  %v1009_v40 = vsub.f32 %v1006_v58, %v1008_v62  ;;  %s152_s6 = scalar_lea.vmem %s6240_s23, %s2174_s5 }
 0x201   : > { %vm973_vm0 = vmxor %vm5043_vm1, %vm5060_vm5  ;;  %v1035_v31 = vmul.f32 %v1034_v48, %v3196_v35  ;;  %v1037_v10 = vmul.f32 %v1036_v7, %v3201_v52  ;;  %2382 = vrsqrt.f32 %v3787_v12  ;;  %v6223_v60 = vstv %s6219_s8 }
 0x202   : > { %vm949_vm11 = vmand %vm942_vm14, %vm948_vm7  ;;  %vm979_vm8 = vcmp.lt.f32.partialorder %v978_v36, 0.0  ;;  %vm5124_vm13 = vcmp.gt.f32.partialorder %v6223_v60, %v2794_v43  ;;  %vm1010_vm12 = vcmp.lt.f32.partialorder %v1009_v40, 0.0  ;;  %v1361_v51 = vmul.f32 1.442695, %v1360_v14 }
 0x203   : > { %vm5117_vm9 = vmxor %vm919_vm4, %vm949_vm11  ;;  %v1038_v3 = vsub.f32 %v1035_v31, %v1037_v10  ;;  %v1669_v52 = vmul.f32 1.442695, %v1668_v32  ;;  %vm792_vm4 = vcmp.gt.f32.partialorder %v5115_v30, 0.5  ;;  %v1972_v44 = vand.u32 2147483648, %v1957_v19 }
 0x204   : > { %vm980_vm3 = vmand %vm973_vm0, %vm979_vm8  ;;  %2384 = vpow2.f32 %v1361_v51  ;;  %vm1969_vm0 = vcmp.eq.f32.partialorder %v1957_v19, inf  ;;  %v2428_v0 = vmov 0.0   ;;  %v1047_v49 = vand.u32 2147483648, %v3787_v12 }
 0x205   : > { %vm981_vm1 = vmxor %vm5117_vm9, %vm980_vm3  ;;  %vm1039_vm11 = vcmp.lt.f32.partialorder %v1038_v3, 0.0  ;;  %2386 = vpow2.f32 %v1669_v52  ;;  %v5143_v42 = vsel %vm792_vm4, 1.0, %v2428_v0  ;;  %vm1971_vm9 = vcmp.eq.f32.partialorder %v1957_v19, 0.0 }
 0x206   : > { %vm1004_vm14 = vmxor %vm5060_vm5, %vm5124_vm13  ;;  %vm6232_vm4 = vnez %v6014_v16 }
 0x207   : > { %vm1011_vm7 = vmand %vm1004_vm14, %vm1010_vm12  ;;  %vm1046_vm12 = vcmp.eq.f32.partialorder %v3787_v12, 0.0  ;;  %vm6231_vm14 = vnez %v6008_v34 }
 0x208   : > { %vm5135_vm10 = vmxor %vm981_vm1, %vm1011_vm7 }
 0x209   : > { %vm1033_vm3 = vmxor %vm5124_vm13, %vm4930_vm15  ;;  %vm1058_vm13 = vcmask 1041408   ;;  %vm1044_vm15 = vcmp.eq.f32.partialorder %v3787_v12, inf }
 0x20a   : > { %v2381_v29 = vpop.eup %2380  ;;  %vm5145_vm5 = vmand %vm1033_vm3, %vm1039_vm11  ;;  %vm6235_vm11 = vnez %v6101_v5 }
 0x20b   : > { %v1968_v53 = vmul.f32 %v2381_v29, %v1957_v19  ;;  %vm1041_vm8 = vmxor %vm5135_vm10, %vm5145_vm5  ;;  %v2383_v46 = vpop.eup %2382  ;;  %vm6234_vm10 = vnez %v6087_v50 }
 0x20c   : > { %v1056_v59 = vsel %vm1041_vm8, 1.0, %v2428_v0  ;;  %v1043_v15 = vmul.f32 %v2383_v46, %v3787_v12  ;;  %vm6230_vm1 = vmxor %vm4921_vm6, %vm4969_vm2 }
 0x20d   : > { %v1970_v54 = vsel %vm1969_vm0, %v1957_v19, %v1968_v53  ;;  %v1081_v8 = vmul.f32 %v5143_v42, %v1056_v59  ;;  %v1093_v1 = vsel %vm1058_vm13, %v1056_v59, 0.0  ;;  %vm6233_vm7 = vmxor %vm6231_vm14, %vm6232_vm4 }
 0x20e   : > { %v1973_v23 = vsel %vm1971_vm9, %v1972_v44, %v1970_v54  ;;  %v1045_v56 = vsel %vm1044_vm15, %v3787_v12, %v1043_v15  ;;  %v2385_v55 = vpop.eup %2384  ;;  %v1365_v45 = vsel %vm6233_vm7, 1.0, %v2428_v0  ;;  %vm6236_vm3 = vmxor %vm6234_vm10, %vm6235_vm11 }
 0x20f   : > { %v1974_v63 = vsub.f32 0.0, %v1973_v23  ;;  %v1082_v4 = vsel %vm1058_vm13, %v1081_v8, 0.0  ;;  %v1048_v41 = vsel %vm1046_vm12, %v1047_v49, %v1045_v56  ;;  %v1363_v26 = vadd.f32 1.0, %v2385_v55  ;;  %v2387_v27 = vpop.eup %2386  ;;  %vm6237_vm0 = vmmov %vm6230_vm1 }
 0x210   : > { %1083 = vadd.xlane.f32.xlu1 %v1082_v4  ;;  %v1049_v24 = vsub.f32 0.0, %v1048_v41  ;;  %v1671_v28 = vadd.f32 1.0, %v2387_v27  ;;  %v1401_v17 = vsel %vm1058_vm13, %v1365_v45, 0.0  ;;  %v1673_v34 = vsel %vm6236_vm3, 1.0, %v2428_v0 }
 0x211   : > { %v1975_v9 = vsel %vm6230_vm1, %v1973_v23, %v1974_v63  ;;  %2388 = vrcp.f32 %v1363_v26  ;;  %v1709_v33 = vsel %vm1058_vm13, %v1673_v34, 0.0  ;;  %v1981_v58 = vsel %vm6237_vm0, 1.0, %v2428_v0 }
 0x212   : > { %v1976_v37 = vsub.f32 0.0, %v1975_v9  ;;  %v1050_v12 = vsel %vm1041_vm8, %v1048_v41, %v1049_v24  ;;  %v2017_v48 = vsel %vm1058_vm13, %v1981_v58, 0.0  ;;  %v1389_v38 = vmul.f32 %v5143_v42, %v1365_v45 }
 0x213   : > { %v1051_v20 = vsub.f32 0.0, %v1050_v12  ;;  %v1697_v31 = vmul.f32 %v5143_v42, %v1673_v34  ;;  %v2005_v35 = vmul.f32 %v5143_v42, %v1981_v58 }
 0x214   : > { %1094 = vadd.xlane.f32.xlu1 %v1093_v1  ;;  %v1977_v6 = vmul.f32 1.442695, %v1976_v37  ;;  %v1390_v36 = vsel %vm1058_vm13, %v1389_v38, 0.0 }
 0x215   : > { %v1052_v2 = vmul.f32 1.442695, %v1051_v20  ;;  %v1698_v39 = vsel %vm1058_vm13, %v1697_v31, 0.0  ;;  %v2006_v51 = vsel %vm1058_vm13, %v2005_v35, 0.0 }
 0x216   : > { %2390 = vpow2.f32 %v1977_v6 }
 0x217   : > { %2392 = vpow2.f32 %v1052_v2 }
 0x218   : > { %2394 = vrcp.f32 %v1671_v28 }
 0x21b   : > { %v2389_v25 = vpop.eup %2388 }
 0x21c   : > { %v1378_v21 = vsel %vm1058_vm13, %v2389_v25, 0.0  ;;  %v1366_v18 = vmul.f32 %v2389_v25, %v5115_v30 }
 0x21d   : > { %1379 = vadd.xlane.f32.xlu1 %v1378_v21 }
 0x21e   : > { %v1367_v32 = vsel %vm1058_vm13, %v1366_v18, 0.0 }
 0x220   : > { %v2391_v61 = vpop.eup %2390 }
 0x221   : > { %v1979_v11 = vadd.f32 1.0, %v2391_v61  ;;  %v2393_v13 = vpop.eup %2392  ;;  %1402 = vadd.xlane.f32.xlu1 %v1401_v17 }
 0x222   : > { %v2395_v19 = vpop.eup %2394  ;;  %v1054_v47 = vadd.f32 1.0, %v2393_v13 }
 0x223   : > { %2396 = vrcp.f32 %v1979_v11  ;;  %v1686_v16 = vsel %vm1058_vm13, %v2395_v19, 0.0  ;;  %v1674_v40 = vmul.f32 %v2395_v19, %v5115_v30 }
 0x224   : > { %2398 = vrcp.f32 %v1054_v47 }
 0x225   : > { %1687 = vadd.xlane.f32.xlu1 %v1686_v16  ;;  %v1675_v10 = vsel %vm1058_vm13, %v1674_v40, 0.0 }
 0x229   : > { %1710 = vadd.xlane.f32.xlu1 %v1709_v33 }
 0x22d   : > { %v2397_v22 = vpop.eup %2396 }
 0x22e   : > { %v1994_v62 = vsel %vm1058_vm13, %v2397_v22, 0.0  ;;  %v2399_v50 = vpop.eup %2398  ;;  %v1982_v60 = vmul.f32 %v2397_v22, %v5115_v30 }
 0x22f   : > { %1995 = vadd.xlane.f32.xlu1 %v1994_v62  ;;  %v1057_v5 = vmul.f32 %v2399_v50, %v5115_v30  ;;  %v1070_v14 = vsel %vm1058_vm13, %v2399_v50, 0.0 }
 0x230   : > { %v1983_v3 = vsel %vm1058_vm13, %v1982_v60, 0.0 }
 0x231   : > { %v1059_v7 = vsel %vm1058_vm13, %v1057_v5, 0.0 }
 0x232   : > { %1060 = vadd.xlane.f32.xlu0 %v1059_v7 }
 0x233   : > { %2018 = vadd.xlane.f32.xlu1 %v2017_v48 }
 0x236   : > { %1071 = vadd.xlane.f32.xlu0 %v1070_v14 }
 0x23a   : > { %1368 = vadd.xlane.f32.xlu0 %v1367_v32 }
 0x23e   : > { %1391 = vadd.xlane.f32.xlu0 %v1390_v36 }
 0x242   : > { %1676 = vadd.xlane.f32.xlu0 %v1675_v10 }
 0x246   : > { %1699 = vadd.xlane.f32.xlu0 %v1698_v39 }
 0x24a   : > { %1984 = vadd.xlane.f32.xlu0 %v1983_v3 }
 0x24e   : > { %2007 = vadd.xlane.f32.xlu0 %v2006_v51 }
 0x29d   : > { %v1084_v52 = vpop.xlane.xlu1 %1083 }
 0x29e   : > { %v1085_v0 = vrot.slane %v1084_v52, 4 }
 0x2a0   : > { %v1086_v46 = vadd.f32 %v1085_v0, %v1084_v52 }
 0x2a1   : > { %v1095_v43 = vpop.xlane.xlu1 %1094 }
 0x2a2   : > { %v1096_v57 = vrot.slane %v1095_v43, 4  ;;  %v1087_v49 = vrot.slane %v1086_v46, 2 }
 0x2a4   : > { %v1097_v54 = vadd.f32 %v1096_v57, %v1095_v43  ;;  %v1088_v12 = vadd.f32 %v1087_v49, %v1086_v46 }
 0x2a6   : > { %v1098_v56 = vrot.slane %v1097_v54, 2  ;;  %v1089_v47 = vrot.slane %v1088_v12, 1 }
 0x2a8   : > { %v1099_v2 = vadd.f32 %v1098_v56, %v1097_v54  ;;  %v1090_v36 = vadd.f32 %v1089_v47, %v1088_v12 }
 0x2aa   : > { %v1380_v29 = vpop.xlane.xlu1 %1379  ;;  %v1100_v58 = vrot.slane %v1099_v2, 1 }
 0x2ab   : > { %v1381_v53 = vrot.slane %v1380_v29, 4 }
 0x2ac   : > { %v1101_v10 = vadd.f32 %v1100_v58, %v1099_v2 }
 0x2ad   : > { %v1382_v8 = vadd.f32 %v1381_v53, %v1380_v29 }
 0x2ae   : > { %v1403_v44 = vpop.xlane.xlu1 %1402 }
 0x2af   : > { %v1404_v23 = vrot.slane %v1403_v44, 4  ;;  %v1383_v41 = vrot.slane %v1382_v8, 2 }
 0x2b1   : > { %v1405_v9 = vadd.f32 %v1404_v23, %v1403_v44  ;;  %v1384_v25 = vadd.f32 %v1383_v41, %v1382_v8 }
 0x2b2   : > { %v1688_v15 = vpop.xlane.xlu1 %1687 }
 0x2b3   : > { %v1689_v27 = vrot.slane %v1688_v15, 4  ;;  %v1406_v45 = vrot.slane %v1405_v9, 2  ;;  %v1385_v62 = vrot.slane %v1384_v25, 1 }
 0x2b5   : > { %v1690_v11 = vadd.f32 %v1689_v27, %v1688_v15  ;;  %v1407_v7 = vadd.f32 %v1406_v45, %v1405_v9  ;;  %v1386_v35 = vadd.f32 %v1385_v62, %v1384_v25 }
 0x2b6   : > { %v1711_v1 = vpop.xlane.xlu1 %1710 }
 0x2b7   : > { %v1712_v13 = vrot.slane %v1711_v1, 4  ;;  %v1691_v14 = vrot.slane %v1690_v11, 2  ;;  %v1408_v43 = vrot.slane %v1407_v7, 1 }
 0x2b9   : > { %v1713_v18 = vadd.f32 %v1712_v13, %v1711_v1  ;;  %v1692_v53 = vadd.f32 %v1691_v14, %v1690_v11  ;;  %v1409_v8 = vadd.f32 %v1408_v43, %v1407_v7 }
 0x2bb   : > { %v1714_v29 = vrot.slane %v1713_v18, 2  ;;  %v1693_v56 = vrot.slane %v1692_v53, 1 }
 0x2bc   : > { %v1996_v33 = vpop.xlane.xlu1 %1995 }
 0x2bd   : > { %v1997_v38 = vrot.slane %v1996_v33, 4  ;;  %v1694_v12 = vadd.f32 %v1693_v56, %v1692_v53 }
 0x2bf   : > { %v1061_v59 = vpop.xlane.xlu0 %1060  ;;  %v1998_v44 = vadd.f32 %v1997_v38, %v1996_v33 }
 0x2c0   : > { %v1062_v30 = vrot.slane %v1061_v59, 4  ;;  %v2019_v60 = vpop.xlane.xlu1 %2018 }
 0x2c1   : > { %v2020_v57 = vrot.slane %v2019_v60, 4  ;;  %v1999_v23 = vrot.slane %v1998_v44, 2 }
 0x2c2   : > { %v1063_v42 = vadd.f32 %v1062_v30, %v1061_v59 }
 0x2c3   : > { %v1072_v63 = vpop.xlane.xlu0 %1071 }
 0x2c4   : > { %v1064_v4 = vrot.slane %v1063_v42, 2  ;;  %v1073_v55 = vrot.slane %v1072_v63, 4 }
 0x2c6   : > { %v1074_v24 = vadd.f32 %v1073_v55, %v1072_v63  ;;  %v1065_v26 = vadd.f32 %v1064_v4, %v1063_v42  ;;  %v2021_v63 = vadd.f32 %v2020_v57, %v2019_v60  ;;  %v1715_v4 = vadd.f32 %v1714_v29, %v1713_v18 }
 0x2c7   : > { %v1369_v37 = vpop.xlane.xlu0 %1368 }
 0x2c8   : > { %v1075_v20 = vrot.slane %v1074_v24, 2  ;;  %v1370_v6 = vrot.slane %v1369_v37, 4  ;;  %v1066_v28 = vrot.slane %v1065_v26, 1  ;;  %v2022_v27 = vrot.slane %v2021_v63, 2 }
 0x2ca   : > { %v1371_v21 = vadd.f32 %v1370_v6, %v1369_v37  ;;  %v1067_v61 = vadd.f32 %v1066_v28, %v1065_v26  ;;  %v1076_v17 = vadd.f32 %v1075_v20, %v1074_v24  ;;  %v1716_v20 = vrot.slane %v1715_v4, 1 }
 0x2cb   : > { %v1392_v19 = vpop.xlane.xlu0 %1391  ;;  %v2000_v6 = vadd.f32 %v1999_v23, %v1998_v44 }
 0x2cc   : > { %v1372_v34 = vrot.slane %v1371_v21, 2  ;;  %v1393_v16 = vrot.slane %v1392_v19, 4  ;;  %2260 = vpush %v1067_v61  ;;  %v1077_v22 = vrot.slane %v1076_v17, 1  ;;  %v1717_v11 = vadd.f32 %v1716_v20, %v1715_v4 }
 0x2cd   : > { %v2001_v13 = vrot.slane %v2000_v6, 1 }
 0x2ce   : > { %v1394_v50 = vadd.f32 %v1393_v16, %v1392_v19  ;;  %v1078_v5 = vadd.f32 %v1077_v22, %v1076_v17  ;;  %v1373_v48 = vadd.f32 %v1372_v34, %v1371_v21  ;;  %v2023_v17 = vadd.f32 %v2022_v27, %v2021_v63 }
 0x2cf   : > { %v1677_v32 = vpop.xlane.xlu0 %1676  ;;  %v2002_v33 = vadd.f32 %v2001_v13, %v2000_v6 }
 0x2d0   : > { %v1395_v40 = vrot.slane %v1394_v50, 2  ;;  %v1678_v31 = vrot.slane %v1677_v32, 4  ;;  %2262 = vpush %v1078_v5  ;;  %v1374_v39 = vrot.slane %v1373_v48, 1  ;;  %v2024_v22 = vrot.slane %v2023_v17, 1  ;;  %v6238_v5 = vld [vmem:[#allocation50_spill] sm:$0xff] }
 0x2d1   : > { %2264 = vpush %v1090_v36  ;;  %vm2028_vm6 = vcmp.eq.s32.totalorder %v6238_v5, 0  ;;  %vm2049_vm1 = vcmp.eq.s32.totalorder %v6238_v5, 1  ;;  %vm2066_vm11 = vcmp.eq.s32.totalorder %v6238_v5, 2 }
 0x2d2   : > { %v1679_v3 = vadd.f32 %v1678_v31, %v1677_v32  ;;  %2266 = vpush %v1101_v10  ;;  %v1375_v51 = vadd.f32 %v1374_v39, %v1373_v48  ;;  %v1396_v52 = vadd.f32 %v1395_v40, %v1394_v50  ;;  %v2025_v50 = vadd.f32 %v2024_v22, %v2023_v17  ;;  %v6239_v48 = vld [vmem:[#allocation52_spill] sm:$0xff] }
 0x2d3   : > { %v1700_v0 = vpop.xlane.xlu0 %1699  ;;  %vm2029_vm2 = vcmp.eq.s32.totalorder %v6239_v48, 0  ;;  %vm2034_vm5 = vcmp.eq.s32.totalorder %v6239_v48, 1  ;;  %vm2039_vm8 = vcmp.eq.s32.totalorder %v6239_v48, 2  ;;  %vm2044_vm15 = vcmp.eq.s32.totalorder %v6239_v48, 3 }
 0x2d4   : > { %v1680_v46 = vrot.slane %v1679_v3, 2  ;;  %v1701_v59 = vrot.slane %v1700_v0, 4  ;;  %2268 = vpush %v1375_v51  ;;  %v1397_v54 = vrot.slane %v1396_v52, 1  ;;  %vm2030_vm9 = vmand %vm2028_vm6, %vm2029_vm2 }
 0x2d5   : > { %2270 = vpush %v1386_v35  ;;  %vm2035_vm13 = vmand %vm2028_vm6, %vm2034_vm5 }
 0x2d6   : > { %v1702_v30 = vadd.f32 %v1701_v59, %v1700_v0  ;;  %v1398_v15 = vadd.f32 %v1397_v54, %v1396_v52  ;;  %v1681_v42 = vadd.f32 %v1680_v46, %v1679_v3  ;;  %vm2040_vm12 = vmand %vm2028_vm6, %vm2039_vm8 }
 0x2d7   : > { %v1985_v49 = vpop.xlane.xlu0 %1984  ;;  %vm2045_vm14 = vmand %vm2028_vm6, %vm2044_vm15 }
 0x2d8   : > { %v1703_v55 = vrot.slane %v1702_v30, 2  ;;  %v1986_v41 = vrot.slane %v1985_v49, 4  ;;  %2272 = vpush %v1398_v15  ;;  %v1682_v9 = vrot.slane %v1681_v42, 1  ;;  %vm2050_vm4 = vmand %vm2049_vm1, %vm2029_vm2 }
 0x2d9   : > { %2274 = vpush %v1409_v8  ;;  %vm2054_vm7 = vmand %vm2049_vm1, %vm2034_vm5 }
 0x2da   : > { %v1987_v24 = vadd.f32 %v1986_v41, %v1985_v49  ;;  %v1683_v1 = vadd.f32 %v1682_v9, %v1681_v42  ;;  %v1704_v26 = vadd.f32 %v1703_v55, %v1702_v30  ;;  %vm2058_vm10 = vmand %vm2049_vm1, %vm2039_vm8 }
 0x2db   : > { %v2008_v37 = vpop.xlane.xlu0 %2007  ;;  %vm2062_vm3 = vmand %vm2049_vm1, %vm2044_vm15 }
 0x2dc   : > { %v1988_v28 = vrot.slane %v1987_v24, 2  ;;  %v2009_v2 = vrot.slane %v2008_v37, 4  ;;  %2276 = vpush %v1683_v1  ;;  %v1705_v25 = vrot.slane %v1704_v26, 1  ;;  %vm2067_vm0 = vmand %vm2066_vm11, %vm2029_vm2 }
 0x2dd   : > { %2278 = vpush %v1694_v12  ;;  %vm2071_vm6 = vmand %vm2066_vm11, %vm2034_vm5 }
 0x2de   : > { %v2010_v45 = vadd.f32 %v2009_v2, %v2008_v37  ;;  %v1706_v21 = vadd.f32 %v1705_v25, %v1704_v26  ;;  %v1989_v61 = vadd.f32 %v1988_v28, %v1987_v24 }
 0x2e0   : > { %v2011_v19 = vrot.slane %v2010_v45, 2  ;;  %2280 = vpush %v1706_v21  ;;  %v1990_v47 = vrot.slane %v1989_v61, 1 }
 0x2e1   : > { %2282 = vpush %v1717_v11 }
 0x2e2   : > { %v2012_v34 = vadd.f32 %v2011_v19, %v2010_v45  ;;  %v1991_v16 = vadd.f32 %v1990_v47, %v1989_v61 }
 0x2e4   : > { %2284 = vpush %v1991_v16  ;;  %v2013_v58 = vrot.slane %v2012_v34, 1 }
 0x2e5   : > { %2286 = vpush %v2002_v33 }
 0x2e6   : > { %v2014_v62 = vadd.f32 %v2013_v58, %v2012_v34 }
 0x2e8   : > { %2288 = vpush %v2014_v62 }
 0x2e9   : > { %2290 = vpush %v2025_v50 }
 0x2fd   : > { %s2261_s4 = spop %2260 }
 0x2fe   : > { %v2031_v7 = vstv %s2261_s4 }
 0x2ff   : > { %v2032_v18 = vsel %vm2030_vm9, %v2031_v7, 0.0  ;;  %vm2075_vm9 = vmand %vm2066_vm11, %vm2039_vm8 }
 0x301   : > { %s2263_s3 = spop %2262 }
 0x302   : > { %v2036_v14 = vstv %s2263_s3  ;;  %s2265_s13 = spop %2264 }
 0x303   : > { %v2037_v38 = vsel %vm2035_vm13, %v2036_v14, 0.0  ;;  %v2041_v32 = vstv %s2265_s13  ;;  %s2267_s10 = spop %2266  ;;  %vm2083_vm13 = vcmp.eq.s32.totalorder %v6238_v5, 3 }
 0x304   : > { %v2038_v36 = vadd.f32 %v2037_v38, %v2032_v18  ;;  %v2046_v40 = vstv %s2267_s10  ;;  %v2042_v31 = vsel %vm2040_vm12, %v2041_v32, 0.0  ;;  %vm2079_vm12 = vmand %vm2066_vm11, %vm2044_vm15 }
 0x305   : > { %s2269_s7 = spop %2268  ;;  %v2047_v60 = vsel %vm2045_vm14, %v2046_v40, 0.0  ;;  %vm2084_vm1 = vmand %vm2083_vm13, %vm2029_vm2 }
 0x306   : > { %v2043_v10 = vadd.f32 %v2042_v31, %v2038_v36  ;;  %v2051_v39 = vstv %s2269_s7  ;;  %s2271_s2 = spop %2270  ;;  %vm2088_vm14 = vmand %vm2083_vm13, %vm2034_vm5 }
 0x307   : > { %v2055_v3 = vstv %s2271_s2  ;;  %v2052_v51 = vsel %vm2050_vm4, %v2051_v39, 0.0  ;;  %vm2092_vm4 = vmand %vm2083_vm13, %vm2039_vm8 }
 0x308   : > { %v2048_v35 = vadd.f32 %v2047_v60, %v2043_v10  ;;  %v2056_v29 = vsel %vm2054_vm7, %v2055_v3, 0.0  ;;  %vm2096_vm2 = vmand %vm2083_vm13, %vm2044_vm15 }
 0x309   : > { %s2273_s1 = spop %2272 }
 0x30a   : > { %v2053_v52 = vadd.f32 %v2052_v51, %v2048_v35  ;;  %v2059_v43 = vstv %s2273_s1  ;;  %s2275_s25 = spop %2274 }
 0x30b   : > { %v2063_v0 = vstv %s2275_s25  ;;  %v2060_v57 = vsel %vm2058_vm10, %v2059_v43, 0.0 }
 0x30c   : > { %v2057_v44 = vadd.f32 %v2056_v29, %v2053_v52  ;;  %v2064_v59 = vsel %vm2062_vm3, %v2063_v0, 0.0 }
 0x30d   : > { %s2277_s12 = spop %2276 }
 0x30e   : > { %v2061_v53 = vadd.f32 %v2060_v57, %v2057_v44  ;;  %v2068_v46 = vstv %s2277_s12  ;;  %s2279_s24 = spop %2278 }
 0x30f   : > { %v2072_v30 = vstv %s2279_s24  ;;  %v2069_v15 = vsel %vm2067_vm0, %v2068_v46, 0.0 }
 0x310   : > { %v2065_v54 = vadd.f32 %v2064_v59, %v2061_v53  ;;  %v2073_v23 = vsel %vm2071_vm6, %v2072_v30, 0.0 }
 0x311   : > { %s2281_s16 = spop %2280 }
 0x312   : > { %v2070_v8 = vadd.f32 %v2069_v15, %v2065_v54  ;;  %v2076_v42 = vstv %s2281_s16  ;;  %s2283_s28 = spop %2282 }
 0x313   : > { %v2080_v63 = vstv %s2283_s28  ;;  %v2077_v56 = vsel %vm2075_vm9, %v2076_v42, 0.0 }
 0x314   : > { %v2074_v49 = vadd.f32 %v2073_v23, %v2070_v8  ;;  %v2081_v41 = vsel %vm2079_vm12, %v2080_v63, 0.0 }
 0x315   : > { %s2285_s30 = spop %2284 }
 0x316   : > { %v2078_v4 = vadd.f32 %v2077_v56, %v2074_v49  ;;  %v2085_v55 = vstv %s2285_s30  ;;  %s2287_s21 = spop %2286 }
 0x317   : > { %v2089_v24 = vstv %s2287_s21  ;;  %v2086_v1 = vsel %vm2084_vm1, %v2085_v55, 0.0 }
 0x318   : > { %v2082_v9 = vadd.f32 %v2081_v41, %v2078_v4  ;;  %v2090_v37 = vsel %vm2088_vm14, %v2089_v24, 0.0 }
 0x319   : > { %s2289_s22 = spop %2288 }
 0x31a   : > { %v2087_v26 = vadd.f32 %v2086_v1, %v2082_v9  ;;  %v2093_v27 = vstv %s2289_s22  ;;  %s2291_s14 = spop %2290 }
 0x31b   : > { %v2097_v20 = vstv %s2291_s14  ;;  %v2094_v6 = vsel %vm2092_vm4, %v2093_v27, 0.0 }
 0x31c   : > { %v2091_v12 = vadd.f32 %v2090_v37, %v2087_v26  ;;  %v2098_v2 = vsel %vm2096_vm2, %v2097_v20, 0.0 }
 0x31e   : > { %v2095_v28 = vadd.f32 %v2094_v6, %v2091_v12 }
 0x320   : > { %v2099_v25 = vadd.f32 %v2098_v2, %v2095_v28 }
 0x322   : > { %2100 = vst [vmem:[%s152_s6] sm:$0xf] %v2099_v25 }
 0x323 PF: > { %s6241_s9 = sld [smem:[#allocation5_spill]] }
 0x329   : > { %s13_s9 = sadd.s32 1, %s6241_s9  }
 0x32a   : > { %p10_p5 = scmp.ge.s32.totalorder %s13_s9, 8  }
 0x32c   :  { %12 = sbr.rel (!%p10_p5) target bundleno = 5 (0x5), region = 63 }
 0x333   :  { %2120 = vsyncpa [#allocation3], 1 }
 0x334   :  { %2122 = vsyncpa [#allocation3 + $0x1], 1 }

</bundles_post_ra>
